<compile_context>
chip_gen: v7x
topology: tpu7x:2x2x1
jax: 0.10.0
libtpu: 0.0.40
codegen_flags: <defaults>
</compile_context>

<pallas_src>
import jax
import jax.numpy as jnp
from jax.experimental import pallas as pl
from jax.experimental.pallas import tpu as pltpu


def _round_up(n, m):
    return (n + m - 1) // m * m


def _choose_row_tiles(m, max_tile, min_steps=2):
    """Pick (tile_rows, num_steps, padded_rows).

    Tiles are multiples of 8 rows, the grid gets >= min_steps steps whenever
    the (8-padded) row count allows it, and padding is bounded by one tile
    (instead of the previous up-to-2x `_round_up(m, tile)` behaviour).
    """
    mp8 = _round_up(max(m, 8), 8)
    steps = max(min_steps, pl.cdiv(mp8, max_tile))
    tm = _round_up(pl.cdiv(mp8, steps), 8)
    steps = pl.cdiv(mp8, tm)
    return tm, steps, tm * steps


# --------------------------------------------------------------------------
# Pallas kernels
# --------------------------------------------------------------------------

def conv_relu_pool_kernel(t_ref, w_ref, b_ref, o_ref):
    """3x3 'same' conv (im2col matmul) + bias + ReLU + 2x2 max-pool.

    t_ref : (4*TM, K) bf16 -- rows [k*TM:(k+1)*TM] are the im2col patches of
                              pool tap k for this tile's TM pooled pixels
                              (K = 9*Cin, NOT padded to 128).
    w_ref : (K, C)    bf16 -- im2col conv weight, column order (ky, kx, cin).
    b_ref : (1, C)    f32
    o_ref : (TM, C)   bf16 -- pooled activations.
    """
    tm = o_ref.shape[0]
    # One long MXU stream for all four pool taps, f32 accumulation.
    h = jnp.dot(t_ref[...], w_ref[...], preferred_element_type=jnp.float32)
    # Max over the four pool taps via static, 8-aligned row slices, then a
    # single bias + ReLU (monotonicity: relu(max + b) == max(relu(. + b))).
    m = jnp.maximum(jnp.maximum(h[0 * tm:1 * tm], h[1 * tm:2 * tm]),
                    jnp.maximum(h[2 * tm:3 * tm], h[3 * tm:4 * tm]))
    o_ref[...] = jnp.maximum(m + b_ref[...], 0.0).astype(o_ref.dtype)


def mlp_kernel(x_ref, w1_ref, b1_ref, w2_ref, b2_ref, w3_ref, b3_ref, o_ref):
    """fc1 -> ReLU -> fc2 -> ReLU -> fc3 (output padded to 128 lanes)."""
    h1 = jnp.dot(x_ref[...], w1_ref[...], preferred_element_type=jnp.float32)
    h1 = jnp.maximum(h1 + b1_ref[...], 0.0)
    h2 = jnp.dot(h1.astype(w2_ref.dtype), w2_ref[...],
                 preferred_element_type=jnp.float32)
    h2 = jnp.maximum(h2 + b2_ref[...], 0.0)
    out = jnp.dot(h2.astype(w3_ref.dtype), w3_ref[...],
                  preferred_element_type=jnp.float32)
    o_ref[...] = (out + b3_ref[...]).astype(o_ref.dtype)


# --------------------------------------------------------------------------
# Wrappers (layout plumbing + pallas_call plumbing)
# --------------------------------------------------------------------------

def _conv_pool_taps(x_nhwc):
    """im2col for a 3x3 'same' conv, grouped by 2x2 max-pool tap.

    x_nhwc: (B, H, W, C) with even H, W.  Returns 4 arrays (B*(H//2)*(W//2),
    9*C), one per position inside the 2x2 pool window, column order
    (ky, kx, cin).  Pure layout plumbing; K is kept at its natural size.
    """
    bsz, hh, ww, c = x_nhwc.shape
    ho, wo = hh // 2, ww // 2
    xp = jnp.pad(x_nhwc, ((0, 0), (1, 1), (1, 1), (0, 0)))
    cols = jnp.stack([xp[:, dy:dy + hh, dx:dx + ww, :]
                      for dy in range(3) for dx in range(3)], axis=3)  # (B,H,W,9,C)
    cols = cols.reshape(bsz, hh, ww, 9 * c)
    return [cols[:, py::2, px::2, :].reshape(bsz * ho * wo, 9 * c)
            for py in range(2) for px in range(2)]


def conv_relu_pool(x_nhwc, w, b, *, max_tile_m=2048):
    """Fused conv(3x3,'same') + bias + ReLU + maxpool(2x2) via one pallas_call."""
    bsz, hh, ww, _ = x_nhwc.shape
    ho, wo = hh // 2, ww // 2
    cout = w.shape[1]
    m = bsz * ho * wo

    taps = _conv_pool_taps(x_nhwc.astype(jnp.bfloat16))       # 4 x (m, 9*cin) bf16
    k = taps[0].shape[1]

    tm, steps, mp = _choose_row_tiles(m, max_tile_m)
    if mp != m:
        taps = [jnp.pad(t, ((0, mp - m), (0, 0))) for t in taps]
    # Interleave taps so each grid step reads one contiguous (4*tm, k) slab.
    t = jnp.stack(taps, axis=0).reshape(4, steps, tm, k)
    t = jnp.transpose(t, (1, 0, 2, 3)).reshape(steps * 4 * tm, k)

    out = pl.pallas_call(
        conv_relu_pool_kernel,
        out_shape=jax.ShapeDtypeStruct((mp, cout), jnp.bfloat16),
        grid=(steps,),
        in_specs=[pl.BlockSpec((4 * tm, k), lambda i: (i, 0)),
                  pl.BlockSpec((k, cout), lambda i: (0, 0)),   # weights VMEM-resident
                  pl.BlockSpec((1, cout), lambda i: (0, 0))],
        out_specs=pl.BlockSpec((tm, cout), lambda i: (i, 0)),
        compiler_params=pltpu.CompilerParams(
            dimension_semantics=("parallel",)),
    )(t, w.astype(jnp.bfloat16), b.astype(jnp.float32).reshape(1, cout))
    return out[:m].reshape(bsz, ho, wo, cout)


def mlp_forward(x, w1, b1, w2, b2, w3, b3, *, max_tile_b=256):
    """fc1 -> ReLU -> fc2 -> ReLU -> fc3 in one batch-tiled pallas_call."""
    bsz, k = x.shape
    nh1, nh2, nout = w1.shape[1], w2.shape[1], w3.shape[1]
    noutp = _round_up(nout, 128)                  # lane-dense logits (10 -> 128)

    tb, steps, bp = _choose_row_tiles(bsz, max_tile_b)
    x = x.astype(jnp.bfloat16)
    if bp != bsz:
        x = jnp.pad(x, ((0, bp - bsz), (0, 0)))

    w3p = jnp.pad(w3.astype(jnp.bfloat16), ((0, 0), (0, noutp - nout)))
    b3p = jnp.pad(b3.astype(jnp.float32).reshape(1, nout),
                  ((0, 0), (0, noutp - nout)))

    def const(shape):
        nd = len(shape)
        return pl.BlockSpec(shape, lambda i: (0,) * nd)

    out = pl.pallas_call(
        mlp_kernel,
        out_shape=jax.ShapeDtypeStruct((bp, noutp), jnp.float32),
        grid=(steps,),
        in_specs=[pl.BlockSpec((tb, k), lambda i: (i, 0)),
                  const((k, nh1)), const((1, nh1)),
                  const((nh1, nh2)), const((1, nh2)),
                  const((nh2, noutp)), const((1, noutp))],
        out_specs=pl.BlockSpec((tb, noutp), lambda i: (i, 0)),
        compiler_params=pltpu.CompilerParams(
            dimension_semantics=("parallel",)),    # batch shards over both TCs on v7x
    )(x,
      w1.astype(jnp.bfloat16), b1.astype(jnp.float32).reshape(1, nh1),
      w2.astype(jnp.bfloat16), b2.astype(jnp.float32).reshape(1, nh2),
      w3p, b3p)
    return out[:bsz, :nout]


def cnn_forward(x_nchw, params):
    """Full CNN forward matching the PyTorch module.

    Porting note: conv weights here are im2col columns (ky, kx, cin) x cout;
    a real torch state_dict conv weight (cout, cin, kh, kw) must be permuted
    with .permute(2, 3, 1, 0).reshape(9*cin, cout); Linear weights (out, in)
    must be transposed to (in, out).
    """
    wc1, bc1, wc2, bc2, w1, b1, w2, b2, w3, b3 = params
    bsz = x_nchw.shape[0]

    h = jnp.transpose(x_nchw, (0, 2, 3, 1))                    # NHWC
    h = conv_relu_pool(h, wc1, bc1)                            # (B,14,14,16) bf16
    h = conv_relu_pool(h, wc2, bc2)                            # (B, 7, 7,32) bf16
    # torch flattens (N, C, H, W): go NHWC -> NCHW before flattening.
    flat = jnp.transpose(h, (0, 3, 1, 2)).reshape(bsz, -1)
    return mlp_forward(flat, w1, b1, w2, b2, w3, b3)


# --------------------------------------------------------------------------
# Pure-JAX references
# --------------------------------------------------------------------------

def cnn_reference_bf16(x_nchw, params):
    """Mirror of the kernel path (same bf16 operand casts, f32 accumulation)."""
    wc1, bc1, wc2, bc2, w1, b1, w2, b2, w3, b3 = params
    bsz = x_nchw.shape[0]
    h = jnp.transpose(x_nchw, (0, 2, 3, 1))

    def conv_block(x_nhwc, w, b):
        b_, hh, ww, _ = x_nhwc.shape
        taps = _conv_pool_taps(x_nhwc.astype(jnp.bfloat16))
        hs = [jnp.dot(t, w.astype(jnp.bfloat16),
                      preferred_element_type=jnp.float32) for t in taps]
        m = jnp.maximum(jnp.maximum(hs[0], hs[1]), jnp.maximum(hs[2], hs[3]))
        a = jnp.maximum(m + b.astype(jnp.float32).reshape(1, -1), 0.0)
        return a.astype(jnp.bfloat16).reshape(b_, hh // 2, ww // 2, -1)

    h = conv_block(h, wc1, bc1)
    h = conv_block(h, wc2, bc2)
    flat = jnp.transpose(h, (0, 3, 1, 2)).reshape(bsz, -1).astype(jnp.bfloat16)
    h1 = jnp.maximum(jnp.dot(flat, w1.astype(jnp.bfloat16),
                             preferred_element_type=jnp.float32)
                     + b1.astype(jnp.float32).reshape(1, -1), 0.0)
    h2 = jnp.maximum(jnp.dot(h1.astype(jnp.bfloat16), w2.astype(jnp.bfloat16),
                             preferred_element_type=jnp.float32)
                     + b2.astype(jnp.float32).reshape(1, -1), 0.0)
    return (jnp.dot(h2.astype(jnp.bfloat16), w3.astype(jnp.bfloat16),
                    preferred_element_type=jnp.float32)
            + b3.astype(jnp.float32).reshape(1, -1))


def cnn_reference_f32(x_nchw, params):
    """Structural reference: real lax.conv + reduce_window maxpool, full f32."""
    wc1, bc1, wc2, bc2, w1, b1, w2, b2, w3, b3 = [
        p.astype(jnp.float32) for p in params]
    bsz = x_nchw.shape[0]
    h = jnp.transpose(x_nchw, (0, 2, 3, 1)).astype(jnp.float32)
    for wc, bc in ((wc1, bc1), (wc2, bc2)):
        cin, cout = wc.shape[0] // 9, wc.shape[1]
        h = jax.lax.conv_general_dilated(
            h, wc.reshape(3, 3, cin, cout), window_strides=(1, 1),
            padding="SAME", dimension_numbers=("NHWC", "HWIO", "NHWC"))
        h = jnp.maximum(h + bc.reshape(1, 1, 1, cout), 0.0)
        h = jax.lax.reduce_window(h, -jnp.inf, jax.lax.max,
                                  (1, 2, 2, 1), (1, 2, 2, 1), "VALID")
    flat = jnp.transpose(h, (0, 3, 1, 2)).reshape(bsz, -1)
    h1 = jnp.maximum(flat @ w1 + b1, 0.0)
    h2 = jnp.maximum(h1 @ w2 + b2, 0.0)
    return h2 @ w3 + b3


# --------------------------------------------------------------------------
# Parameter init (PyTorch-style uniform(-1/sqrt(fan_in), +1/sqrt(fan_in)))
# --------------------------------------------------------------------------

def _uniform(key, shape, fan_in):
    bound = 1.0 / (fan_in ** 0.5)
    return jax.random.uniform(key, shape, jnp.float32, -bound, bound)


def init_params(key, nconv1=16, nconv2=32):
    ks = jax.random.split(key, 10)
    # Conv weights stored as im2col columns (9*Cin, Cout); matmul weights bf16.
    wc1 = _uniform(ks[0], (9 * 1, nconv1), 9 * 1).astype(jnp.bfloat16)
    bc1 = _uniform(ks[1], (1, nconv1), 9 * 1)
    wc2 = _uniform(ks[2], (9 * nconv1, nconv2), 9 * nconv1).astype(jnp.bfloat16)
    bc2 = _uniform(ks[3], (1, nconv2), 9 * nconv1)
    fin = nconv2 * 7 * 7
    w1 = _uniform(ks[4], (fin, 128), fin).astype(jnp.bfloat16)
    b1 = _uniform(ks[5], (1, 128), fin)
    w2 = _uniform(ks[6], (128, 64), 128).astype(jnp.bfloat16)
    b2 = _uniform(ks[7], (1, 64), 128)
    w3 = _uniform(ks[8], (64, 10), 64).astype(jnp.bfloat16)
    b3 = _uniform(ks[9], (1, 10), 64)
    return (wc1, bc1, wc2, bc2, w1, b1, w2, b2, w3, b3)


if __name__ == "__main__":
    key = jax.random.PRNGKey(0)
    kx, kp = jax.random.split(key)

    batch = 8
    x = jax.random.normal(kx, (batch, 1, 28, 28), jnp.float32)
    # Round the input through bf16 once so kernel path and references see the
    # exact same operand values (all matmul operands are bf16 by design).
    x = x.astype(jnp.bfloat16).astype(jnp.float32)

    params = init_params(kp, nconv1=16, nconv2=32)

    fwd = jax.jit(cnn_forward)
    out = fwd(x, params)
    jax.block_until_ready(out)
    assert out.shape == (batch, 10), out.shape

    ref_bf16 = cnn_reference_bf16(x, params)   # same bf16/f32-acc math path
    ref_f32 = cnn_reference_f32(x, params)     # true conv/pool semantics, f32

    err_b = float(jnp.max(jnp.abs(out - ref_bf16)))
    err_f = float(jnp.max(jnp.abs(out - ref_f32)))
    assert jnp.allclose(out, ref_bf16, atol=5e-2, rtol=5e-2), \
        f"bf16 ref mismatch {err_b}"
    assert jnp.allclose(out, ref_f32, atol=2e-1, rtol=2e-1), \
        f"f32 ref mismatch {err_f}"

    print("KERNEL_OK")
</pallas_src>

<mosaic_0001>
module attributes {stable_mosaic.version = 11 : i64} {
  func.func @conv_relu_pool_kernel(%arg0: i32, %arg1: memref<3136x9xbf16, #tpu.memory_space<vmem>>, %arg2: memref<9x16xbf16, #tpu.memory_space<vmem>>, %arg3: memref<1x16xf32, #tpu.memory_space<vmem>>, %arg4: memref<784x16xbf16, #tpu.memory_space<vmem>>) attributes {dimension_semantics = [#tpu.dimension_semantics<parallel>], iteration_bounds = array<i64: 2>, scalar_prefetch = 0 : i64, scratch_operands = 0 : i64, tpu.core_type = #tpu.core_type<tc>, window_params = [{transform_indices = @transform_0, window_bounds = array<i64: 3136, 9>}, {pipeline_mode = #tpu.pipeline_mode<synchronous>, transform_indices = @transform_1, window_bounds = array<i64: 9, 16>}, {pipeline_mode = #tpu.pipeline_mode<synchronous>, transform_indices = @transform_2, window_bounds = array<i64: 1, 16>}, {transform_indices = @transform_3, window_bounds = array<i64: 784, 16>}]} {
    %c0 = arith.constant 0 : index
    %c0_0 = arith.constant 0 : index
    %0 = vector.load %arg1[%c0, %c0_0] : memref<3136x9xbf16, #tpu.memory_space<vmem>>, vector<3136x9xbf16>
    %c0_1 = arith.constant 0 : index
    %c0_2 = arith.constant 0 : index
    %1 = vector.load %arg2[%c0_1, %c0_2] : memref<9x16xbf16, #tpu.memory_space<vmem>>, vector<9x16xbf16>
    %cst = arith.constant dense<0.000000e+00> : vector<3136x16xf32>
    %2 = tpu.matmul %0, %1, %cst {dimension_numbers = #tpu.dot_dimension_numbers<[1], [0], [0], [1], [0, 0, 1, 1], [], []>} : vector<3136x9xbf16>, vector<9x16xbf16>, vector<3136x16xf32> -> vector<3136x16xf32>
    %3 = vector.extract_strided_slice %2 {offsets = [0, 0], sizes = [784, 16], strides = [1, 1]} : vector<3136x16xf32> to vector<784x16xf32>
    %4 = vector.extract_strided_slice %2 {offsets = [784, 0], sizes = [784, 16], strides = [1, 1]} : vector<3136x16xf32> to vector<784x16xf32>
    %5 = arith.maximumf %3, %4 : vector<784x16xf32>
    %6 = vector.extract_strided_slice %2 {offsets = [1568, 0], sizes = [784, 16], strides = [1, 1]} : vector<3136x16xf32> to vector<784x16xf32>
    %7 = vector.extract_strided_slice %2 {offsets = [2352, 0], sizes = [784, 16], strides = [1, 1]} : vector<3136x16xf32> to vector<784x16xf32>
    %8 = arith.maximumf %6, %7 : vector<784x16xf32>
    %9 = arith.maximumf %5, %8 : vector<784x16xf32>
    %c0_3 = arith.constant 0 : index
    %c0_4 = arith.constant 0 : index
    %10 = vector.load %arg3[%c0_3, %c0_4] : memref<1x16xf32, #tpu.memory_space<vmem>>, vector<1x16xf32>
    %11 = vector.broadcast %10 : vector<1x16xf32> to vector<784x16xf32>
    %12 = arith.addf %9, %11 : vector<784x16xf32>
    %cst_5 = arith.constant 0.000000e+00 : f32
    %13 = vector.broadcast %cst_5 : f32 to vector<784x16xf32>
    %14 = arith.maximumf %12, %13 : vector<784x16xf32>
    %15 = arith.truncf %14 : vector<784x16xf32> to vector<784x16xbf16>
    %c0_6 = arith.constant 0 : index
    %c0_7 = arith.constant 0 : index
    %16 = vector.load %arg4[%c0_6, %c0_7] : memref<784x16xbf16, #tpu.memory_space<vmem>>, vector<784x16xbf16>
    tpu.vector_store %arg4[%c0_6, %c0_7], %15 {strides = array<i32>} : memref<784x16xbf16, #tpu.memory_space<vmem>>, vector<784x16xbf16>,
    return
  }
  func.func @transform_0(%arg0: i32) -> (i32, i32) {
    %c0_i32 = arith.constant 0 : i32
    %c0_i32_0 = arith.constant 0 : i32
    return %arg0, %c0_i32 : i32, i32
  }
  func.func @transform_1(%arg0: i32) -> (i32, i32) {
    %c0_i32 = arith.constant 0 : i32
    %c0_i32_0 = arith.constant 0 : i32
    %c0_i32_1 = arith.constant 0 : i32
    return %c0_i32, %c0_i32_0 : i32, i32
  }
  func.func @transform_2(%arg0: i32) -> (i32, i32) {
    %c0_i32 = arith.constant 0 : i32
    %c0_i32_0 = arith.constant 0 : i32
    %c0_i32_1 = arith.constant 0 : i32
    return %c0_i32, %c0_i32_0 : i32, i32
  }
  func.func @transform_3(%arg0: i32) -> (i32, i32) {
    %c0_i32 = arith.constant 0 : i32
    %c0_i32_0 = arith.constant 0 : i32
    return %arg0, %c0_i32 : i32, i32
  }
}

module attributes {stable_mosaic.version = 11 : i64} {
  func.func @conv_relu_pool_kernel(%arg0: i32, %arg1: memref<800x144xbf16, #tpu.memory_space<vmem>>, %arg2: memref<144x32xbf16, #tpu.memory_space<vmem>>, %arg3: memref<1x32xf32, #tpu.memory_space<vmem>>, %arg4: memref<200x32xbf16, #tpu.memory_space<vmem>>) attributes {dimension_semantics = [#tpu.dimension_semantics<parallel>], iteration_bounds = array<i64: 2>, scalar_prefetch = 0 : i64, scratch_operands = 0 : i64, tpu.core_type = #tpu.core_type<tc>, window_params = [{transform_indices = @transform_0, window_bounds = array<i64: 800, 144>}, {pipeline_mode = #tpu.pipeline_mode<synchronous>, transform_indices = @transform_1, window_bounds = array<i64: 144, 32>}, {pipeline_mode = #tpu.pipeline_mode<synchronous>, transform_indices = @transform_2, window_bounds = array<i64: 1, 32>}, {transform_indices = @transform_3, window_bounds = array<i64: 200, 32>}]} {
    %c0 = arith.constant 0 : index
    %c0_0 = arith.constant 0 : index
    %0 = vector.load %arg1[%c0, %c0_0] : memref<800x144xbf16, #tpu.memory_space<vmem>>, vector<800x144xbf16>
    %c0_1 = arith.constant 0 : index
    %c0_2 = arith.constant 0 : index
    %1 = vector.load %arg2[%c0_1, %c0_2] : memref<144x32xbf16, #tpu.memory_space<vmem>>, vector<144x32xbf16>
    %cst = arith.constant dense<0.000000e+00> : vector<800x32xf32>
    %2 = tpu.matmul %0, %1, %cst {dimension_numbers = #tpu.dot_dimension_numbers<[1], [0], [0], [1], [0, 0, 1, 1], [], []>} : vector<800x144xbf16>, vector<144x32xbf16>, vector<800x32xf32> -> vector<800x32xf32>
    %3 = vector.extract_strided_slice %2 {offsets = [0, 0], sizes = [200, 32], strides = [1, 1]} : vector<800x32xf32> to vector<200x32xf32>
    %4 = vector.extract_strided_slice %2 {offsets = [200, 0], sizes = [200, 32], strides = [1, 1]} : vector<800x32xf32> to vector<200x32xf32>
    %5 = arith.maximumf %3, %4 : vector<200x32xf32>
    %6 = vector.extract_strided_slice %2 {offsets = [400, 0], sizes = [200, 32], strides = [1, 1]} : vector<800x32xf32> to vector<200x32xf32>
    %7 = vector.extract_strided_slice %2 {offsets = [600, 0], sizes = [200, 32], strides = [1, 1]} : vector<800x32xf32> to vector<200x32xf32>
    %8 = arith.maximumf %6, %7 : vector<200x32xf32>
    %9 = arith.maximumf %5, %8 : vector<200x32xf32>
    %c0_3 = arith.constant 0 : index
    %c0_4 = arith.constant 0 : index
    %10 = vector.load %arg3[%c0_3, %c0_4] : memref<1x32xf32, #tpu.memory_space<vmem>>, vector<1x32xf32>
    %11 = vector.broadcast %10 : vector<1x32xf32> to vector<200x32xf32>
    %12 = arith.addf %9, %11 : vector<200x32xf32>
    %cst_5 = arith.constant 0.000000e+00 : f32
    %13 = vector.broadcast %cst_5 : f32 to vector<200x32xf32>
    %14 = arith.maximumf %12, %13 : vector<200x32xf32>
    %15 = arith.truncf %14 : vector<200x32xf32> to vector<200x32xbf16>
    %c0_6 = arith.constant 0 : index
    %c0_7 = arith.constant 0 : index
    %16 = vector.load %arg4[%c0_6, %c0_7] : memref<200x32xbf16, #tpu.memory_space<vmem>>, vector<200x32xbf16>
    tpu.vector_store %arg4[%c0_6, %c0_7], %15 {strides = array<i32>} : memref<200x32xbf16, #tpu.memory_space<vmem>>, vector<200x32xbf16>,
    return
  }
  func.func @transform_0(%arg0: i32) -> (i32, i32) {
    %c0_i32 = arith.constant 0 : i32
    %c0_i32_0 = arith.constant 0 : i32
    return %arg0, %c0_i32 : i32, i32
  }
  func.func @transform_1(%arg0: i32) -> (i32, i32) {
    %c0_i32 = arith.constant 0 : i32
    %c0_i32_0 = arith.constant 0 : i32
    %c0_i32_1 = arith.constant 0 : i32
    return %c0_i32, %c0_i32_0 : i32, i32
  }
  func.func @transform_2(%arg0: i32) -> (i32, i32) {
    %c0_i32 = arith.constant 0 : i32
    %c0_i32_0 = arith.constant 0 : i32
    %c0_i32_1 = arith.constant 0 : i32
    return %c0_i32, %c0_i32_0 : i32, i32
  }
  func.func @transform_3(%arg0: i32) -> (i32, i32) {
    %c0_i32 = arith.constant 0 : i32
    %c0_i32_0 = arith.constant 0 : i32
    return %arg0, %c0_i32 : i32, i32
  }
}

module attributes {stable_mosaic.version = 11 : i64} {
  func.func @mlp_kernel(%arg0: i32, %arg1: memref<8x1568xbf16, #tpu.memory_space<vmem>>, %arg2: memref<1568x128xbf16, #tpu.memory_space<vmem>>, %arg3: memref<1x128xf32, #tpu.memory_space<vmem>>, %arg4: memref<128x64xbf16, #tpu.memory_space<vmem>>, %arg5: memref<1x64xf32, #tpu.memory_space<vmem>>, %arg6: memref<64x128xbf16, #tpu.memory_space<vmem>>, %arg7: memref<1x128xf32, #tpu.memory_space<vmem>>, %arg8: memref<8x128xf32, #tpu.memory_space<vmem>>) attributes {dimension_semantics = [#tpu.dimension_semantics<parallel>], iteration_bounds = array<i64: 1>, scalar_prefetch = 0 : i64, scratch_operands = 0 : i64, tpu.core_type = #tpu.core_type<tc>, window_params = [{transform_indices = @transform_0, window_bounds = array<i64: 8, 1568>}, {pipeline_mode = #tpu.pipeline_mode<synchronous>, transform_indices = @transform_1, window_bounds = array<i64: 1568, 128>}, {pipeline_mode = #tpu.pipeline_mode<synchronous>, transform_indices = @transform_2, window_bounds = array<i64: 1, 128>}, {pipeline_mode = #tpu.pipeline_mode<synchronous>, transform_indices = @transform_3, window_bounds = array<i64: 128, 64>}, {pipeline_mode = #tpu.pipeline_mode<synchronous>, transform_indices = @transform_4, window_bounds = array<i64: 1, 64>}, {pipeline_mode = #tpu.pipeline_mode<synchronous>, transform_indices = @transform_5, window_bounds = array<i64: 64, 128>}, {pipeline_mode = #tpu.pipeline_mode<synchronous>, transform_indices = @transform_6, window_bounds = array<i64: 1, 128>}, {transform_indices = @transform_7, window_bounds = array<i64: 8, 128>}]} {
    %c0 = arith.constant 0 : index
    %c0_0 = arith.constant 0 : index
    %0 = vector.load %arg1[%c0, %c0_0] : memref<8x1568xbf16, #tpu.memory_space<vmem>>, vector<8x1568xbf16>
    %c0_1 = arith.constant 0 : index
    %c0_2 = arith.constant 0 : index
    %1 = vector.load %arg2[%c0_1, %c0_2] : memref<1568x128xbf16, #tpu.memory_space<vmem>>, vector<1568x128xbf16>
    %cst = arith.constant dense<0.000000e+00> : vector<8x128xf32>
    %2 = tpu.matmul %0, %1, %cst {dimension_numbers = #tpu.dot_dimension_numbers<[1], [0], [0], [1], [0, 0, 1, 1], [], []>} : vector<8x1568xbf16>, vector<1568x128xbf16>, vector<8x128xf32> -> vector<8x128xf32>
    %c0_3 = arith.constant 0 : index
    %c0_4 = arith.constant 0 : index
    %3 = vector.load %arg3[%c0_3, %c0_4] : memref<1x128xf32, #tpu.memory_space<vmem>>, vector<1x128xf32>
    %4 = vector.broadcast %3 : vector<1x128xf32> to vector<8x128xf32>
    %5 = arith.addf %2, %4 : vector<8x128xf32>
    %cst_5 = arith.constant 0.000000e+00 : f32
    %6 = vector.broadcast %cst_5 : f32 to vector<8x128xf32>
    %7 = arith.maximumf %5, %6 : vector<8x128xf32>
    %8 = arith.truncf %7 : vector<8x128xf32> to vector<8x128xbf16>
    %c0_6 = arith.constant 0 : index
    %c0_7 = arith.constant 0 : index
    %9 = vector.load %arg4[%c0_6, %c0_7] : memref<128x64xbf16, #tpu.memory_space<vmem>>, vector<128x64xbf16>
    %cst_8 = arith.constant dense<0.000000e+00> : vector<8x64xf32>
    %10 = tpu.matmul %8, %9, %cst_8 {dimension_numbers = #tpu.dot_dimension_numbers<[1], [0], [0], [1], [0, 0, 1, 1], [], []>} : vector<8x128xbf16>, vector<128x64xbf16>, vector<8x64xf32> -> vector<8x64xf32>
    %c0_9 = arith.constant 0 : index
    %c0_10 = arith.constant 0 : index
    %11 = vector.load %arg5[%c0_9, %c0_10] : memref<1x64xf32, #tpu.memory_space<vmem>>, vector<1x64xf32>
    %12 = vector.broadcast %11 : vector<1x64xf32> to vector<8x64xf32>
    %13 = arith.addf %10, %12 : vector<8x64xf32>
    %cst_11 = arith.constant 0.000000e+00 : f32
    %14 = vector.broadcast %cst_11 : f32 to vector<8x64xf32>
    %15 = arith.maximumf %13, %14 : vector<8x64xf32>
    %16 = arith.truncf %15 : vector<8x64xf32> to vector<8x64xbf16>
    %c0_12 = arith.constant 0 : index
    %c0_13 = arith.constant 0 : index
    %17 = vector.load %arg6[%c0_12, %c0_13] : memref<64x128xbf16, #tpu.memory_space<vmem>>, vector<64x128xbf16>
    %cst_14 = arith.constant dense<0.000000e+00> : vector<8x128xf32>
    %18 = tpu.matmul %16, %17, %cst_14 {dimension_numbers = #tpu.dot_dimension_numbers<[1], [0], [0], [1], [0, 0, 1, 1], [], []>} : vector<8x64xbf16>, vector<64x128xbf16>, vector<8x128xf32> -> vector<8x128xf32>
    %c0_15 = arith.constant 0 : index
    %c0_16 = arith.constant 0 : index
    %19 = vector.load %arg7[%c0_15, %c0_16] : memref<1x128xf32, #tpu.memory_space<vmem>>, vector<1x128xf32>
    %20 = vector.broadcast %19 : vector<1x128xf32> to vector<8x128xf32>
    %21 = arith.addf %18, %20 : vector<8x128xf32>
    %c0_17 = arith.constant 0 : index
    %c0_18 = arith.constant 0 : index
    %22 = vector.load %arg8[%c0_17, %c0_18] : memref<8x128xf32, #tpu.memory_space<vmem>>, vector<8x128xf32>
    tpu.vector_store %arg8[%c0_17, %c0_18], %21 {strides = array<i32>} : memref<8x128xf32, #tpu.memory_space<vmem>>, vector<8x128xf32>,
    return
  }
  func.func @transform_0(%arg0: i32) -> (i32, i32) {
    %c0_i32 = arith.constant 0 : i32
    %c0_i32_0 = arith.constant 0 : i32
    return %arg0, %c0_i32 : i32, i32
  }
  func.func @transform_1(%arg0: i32) -> (i32, i32) {
    %c0_i32 = arith.constant 0 : i32
    %c0_i32_0 = arith.constant 0 : i32
    %c0_i32_1 = arith.constant 0 : i32
    return %c0_i32, %c0_i32_0 : i32, i32
  }
  func.func @transform_2(%arg0: i32) -> (i32, i32) {
    %c0_i32 = arith.constant 0 : i32
    %c0_i32_0 = arith.constant 0 : i32
    %c0_i32_1 = arith.constant 0 : i32
    return %c0_i32, %c0_i32_0 : i32, i32
  }
  func.func @transform_3(%arg0: i32) -> (i32, i32) {
    %c0_i32 = arith.constant 0 : i32
    %c0_i32_0 = arith.constant 0 : i32
    %c0_i32_1 = arith.constant 0 : i32
    return %c0_i32, %c0_i32_0 : i32, i32
  }
  func.func @transform_4(%arg0: i32) -> (i32, i32) {
    %c0_i32 = arith.constant 0 : i32
    %c0_i32_0 = arith.constant 0 : i32
    %c0_i32_1 = arith.constant 0 : i32
    return %c0_i32, %c0_i32_0 : i32, i32
  }
  func.func @transform_5(%arg0: i32) -> (i32, i32) {
    %c0_i32 = arith.constant 0 : i32
    %c0_i32_0 = arith.constant 0 : i32
    %c0_i32_1 = arith.constant 0 : i32
    return %c0_i32, %c0_i32_0 : i32, i32
  }
  func.func @transform_6(%arg0: i32) -> (i32, i32) {
    %c0_i32 = arith.constant 0 : i32
    %c0_i32_0 = arith.constant 0 : i32
    %c0_i32_1 = arith.constant 0 : i32
    return %c0_i32, %c0_i32_0 : i32, i32
  }
  func.func @transform_7(%arg0: i32) -> (i32, i32) {
    %c0_i32 = arith.constant 0 : i32
    %c0_i32_0 = arith.constant 0 : i32
    return %arg0, %c0_i32 : i32, i32
  }
}

</mosaic_0001>

<bundles_post_ra>
// kernel: cnn_forward.3
= control target key start
LH: loop header
LB: loop body
LE: loop exit
PB: predicated region body
PF: predicated region fallthrough
CT: control target
= control target key end

     0   :  { %s6223_s12 = smov 0   ;;  %s7535_s0 = inlined_call_operand.vmem [shape: bf16[6272,9], index: 0, kind: input, shape index: {}]   ;;  %s7536_s1 = inlined_call_operand.vmem [shape: bf16[9,16], index: 1, kind: input, shape index: {}]   ;;  %s7537_s2 = inlined_call_operand.vmem [shape: f32[1,16], index: 2, kind: input, shape index: {}]   ;;  %s7538_s3 = inlined_call_operand.vmem [shape: bf16[1568,16], index: 3, kind: output, shape index: {}]  }
   0x1 LB: > { %s4795_s13 = sadd.s32 4294967295, %s6200_s12   ;;  %p4799_p0 = scmp.ge.s32.totalorder %s6200_s12, 1  ;;  %s6200_s12 = sphi %s6223_s12, %s13_s12  }
   0x2   : > { %p138_p1 = scmp.lt.s32.totalorder %s6200_s12, 3 }
   0x4   : > { %p139_p2 = pnand %p4799_p0, %p138_p1 }
   0x6   : > { %142 = sbr.rel (%p139_p2) target bundleno = 632 (0x278), region = 32 }
   0xd   : > { %v5996_v0 = vld [vmem:[%s7536_s1] sm:$0x1f]   ;;  %vm2143_vm0 = vcmask 1043456   ;;  %vm2144_vm1 = vcmask 1044480   ;;  %s162_s16 = smul.u32 392, %s4795_s13  ;;  %v6202_v1 = vmov 65535  }
   0xe   : > { %v2145_v2 = vsel %vm2143_vm0, 4294967295, %v6202_v1  ;;  %vm1554_vm2 = vcmask 72704   ;;  %s168_s21 = smul.u32 98, %s4795_s13  ;;  %vm4640_vm3 = vcmask 125952  }
   0xf   : > { %v2146_v3 = vsel %vm2144_vm1, %v2145_v2, 0  ;;  %p163_p3 = scmp.lt.s32.totalorder %s162_s16, 783 }
  0x10   : > { %v2148_v4 = vand.u32 %v5996_v0, %v2146_v3  ;;  %p169_p4 = scmp.lt.s32.totalorder %s168_s21, 195 }
  0x11   : > { %s7830_s16 = smov (!%p163_p3, %s162_s16), 783 }
  0x12   : > { %5591 = vmatprep.subr.bf16.mxu0 %v2148_v4  ;;  %5985 = vmatprep.subr.bf16.mxu1 %v2148_v4  ;;  %s4800_s17 = sshll.u32 %s7830_s16, 2  ;;  %s7832_s21 = smov (!%p169_p4, %s168_s21), 195 }
  0x13   : > { %5592 = vmatpush3.bf16.msra.mxu0 %v2148_v4  ;;  %5986 = vmatpush3.bf16.msra.mxu1 %v2148_v4  ;;  %s6239_s20 = scalar_lea.vmem %s7535_s0, %s4800_s17  ;;  %s4801_s24 = sshll.u32 %s7832_s21, 2 }
  0x14   : > { %v5997_v5 = vld [vmem:[%s6239_s20] sm:$0xff]   ;;  %v5998_v6 = vld [vmem:[%s6239_s20 + $0x310] sm:$0xff]   ;;  %v5999_v7 = vld [vmem:[%s6239_s20 + $0x8] sm:$0xff]   ;;  %s7041_s27 = scalar_lea.vmem %s7538_s3, %s4801_s24 }
  0x15   : > { %5593 = vmatprep.mubr.msk.bf16.mxu0 %vm1554_vm2, %v5997_v5  ;;  %5789 = vmatprep.mubr.msk.bf16.mxu1 %vm1554_vm2, %v5998_v6  ;;  %v6000_v8 = vld [vmem:[%s6239_s20 + $0x318] sm:$0xff]   ;;  %v6001_v9 = vld [vmem:[%s6239_s20 + $0x10] sm:$0xff]   ;;  %v6002_v10 = vld [vmem:[%s6239_s20 + $0x320] sm:$0xff]  }
  0x16   : > { %5594 = vmatmul.mubr.msk.bf16.vlgmr.msra.gmra.mrb[0].mxu0 %vm1554_vm2, %v5999_v7  ;;  %5790 = vmatmul.mubr.msk.bf16.vlgmr.msra.gmra.mrb[0].mxu1 %vm1554_vm2, %v6000_v8  ;;  %v6003_v11 = vld [vmem:[%s6239_s20 + $0x18] sm:$0xff]   ;;  %v6004_v12 = vld [vmem:[%s6239_s20 + $0x328] sm:$0xff]   ;;  %v6005_v13 = vld [vmem:[%s6239_s20 + $0x20] sm:$0xff]  }
  0x17   : > { %5597 = vmatprep.mubr.msk.bf16.mxu0 %vm1554_vm2, %v6001_v9  ;;  %5793 = vmatprep.mubr.msk.bf16.mxu1 %vm1554_vm2, %v6002_v10  ;;  %v6006_v14 = vld [vmem:[%s6239_s20 + $0x330] sm:$0xff]   ;;  %v6007_v15 = vld [vmem:[%s6239_s20 + $0x28] sm:$0xff]   ;;  %v6008_v16 = vld [vmem:[%s6239_s20 + $0x338] sm:$0xff]  }
  0x18   : > { %v6009_v17 = vld [vmem:[%s6239_s20 + $0x30] sm:$0xff]   ;;  %v6010_v18 = vld [vmem:[%s6239_s20 + $0x340] sm:$0xff]   ;;  %v6011_v19 = vld [vmem:[%s6239_s20 + $0x38] sm:$0xff]  }
  0x19   : > { %v6012_v20 = vld [vmem:[%s6239_s20 + $0x348] sm:$0xff]   ;;  %v6013_v21 = vld [vmem:[%s6239_s20 + $0x40] sm:$0xff]   ;;  %v6014_v22 = vld [vmem:[%s6239_s20 + $0x350] sm:$0xff]  }
  0x1a   : > { %v6015_v23 = vld [vmem:[%s6239_s20 + $0x48] sm:$0xff]   ;;  %v6016_v24 = vld [vmem:[%s6239_s20 + $0x358] sm:$0xff]   ;;  %v6017_v25 = vld [vmem:[%s6239_s20 + $0x50] sm:$0xff]  }
  0x1b   : > { %v6018_v26 = vld [vmem:[%s6239_s20 + $0x360] sm:$0xff]   ;;  %v6019_v27 = vld [vmem:[%s6239_s20 + $0x58] sm:$0xff]   ;;  %v6020_v28 = vld [vmem:[%s6239_s20 + $0x368] sm:$0xff]  }
  0x1c   : > { %v6021_v29 = vld [vmem:[%s6239_s20 + $0x60] sm:$0xff]   ;;  %v6022_v30 = vld [vmem:[%s6239_s20 + $0x370] sm:$0xff]   ;;  %v6023_v31 = vld [vmem:[%s6239_s20 + $0x68] sm:$0xff]  }
  0x1d   : > { %v6024_v32 = vld [vmem:[%s6239_s20 + $0x378] sm:$0xff]   ;;  %v6025_v33 = vld [vmem:[%s6239_s20 + $0x70] sm:$0xff]   ;;  %v6026_v34 = vld [vmem:[%s6239_s20 + $0x380] sm:$0xff]  }
  0x1e   : > { %5598 = vmatmul.mubr.msk.bf16.gmra.mrb[4].mxu0 %vm1554_vm2, %v6003_v11  ;;  %5794 = vmatmul.mubr.msk.bf16.gmra.mrb[4].mxu1 %vm1554_vm2, %v6004_v12  ;;  %v6027_v35 = vld [vmem:[%s6239_s20 + $0x78] sm:$0xff]   ;;  %v6028_v36 = vld [vmem:[%s6239_s20 + $0x388] sm:$0xff]   ;;  %v6029_v37 = vld [vmem:[%s6239_s20 + $0x80] sm:$0xff]  }
  0x1f   : > { %5601 = vmatprep.mubr.msk.bf16.mxu0 %vm1554_vm2, %v6005_v13  ;;  %5797 = vmatprep.mubr.msk.bf16.mxu1 %vm1554_vm2, %v6006_v14  ;;  %v6030_v38 = vld [vmem:[%s6239_s20 + $0x390] sm:$0xff]   ;;  %v6031_v39 = vld [vmem:[%s6239_s20 + $0x88] sm:$0xff]   ;;  %v6032_v40 = vld [vmem:[%s6239_s20 + $0x398] sm:$0xff]  }
  0x20   : > { %v6033_v41 = vld [vmem:[%s6239_s20 + $0x90] sm:$0xff]   ;;  %v6034_v42 = vld [vmem:[%s6239_s20 + $0x3a0] sm:$0xff]   ;;  %v6035_v43 = vld [vmem:[%s6239_s20 + $0x98] sm:$0xff]  }
  0x21   : > { %v6036_v44 = vld [vmem:[%s6239_s20 + $0x3a8] sm:$0xff]   ;;  %v6037_v45 = vld [vmem:[%s6239_s20 + $0xa0] sm:$0xff]   ;;  %v6038_v46 = vld [vmem:[%s6239_s20 + $0x3b0] sm:$0xff]  }
  0x22   : > { %v6039_v47 = vld [vmem:[%s6239_s20 + $0xa8] sm:$0xff]   ;;  %v6040_v48 = vld [vmem:[%s6239_s20 + $0x3b8] sm:$0xff]   ;;  %v6041_v49 = vld [vmem:[%s6239_s20 + $0xb0] sm:$0xff]  }
  0x23   : > { %v6042_v50 = vld [vmem:[%s6239_s20 + $0x3c0] sm:$0xff]   ;;  %v6043_v51 = vld [vmem:[%s6239_s20 + $0xb8] sm:$0xff]   ;;  %v6044_v52 = vld [vmem:[%s6239_s20 + $0x3c8] sm:$0xff]  }
  0x24   : > { %v6045_v53 = vld [vmem:[%s6239_s20 + $0xc0] sm:$0xff]   ;;  %v6046_v54 = vld [vmem:[%s6239_s20 + $0x3d0] sm:$0xff]   ;;  %v6047_v55 = vld [vmem:[%s6239_s20 + $0xc8] sm:$0xff]  }
  0x25   : > { %v6048_v56 = vld [vmem:[%s6239_s20 + $0x3d8] sm:$0xff]   ;;  %v6049_v57 = vld [vmem:[%s6239_s20 + $0xd0] sm:$0xff]   ;;  %v6050_v58 = vld [vmem:[%s6239_s20 + $0x3e0] sm:$0xff]  }
  0x26   : > { %5602 = vmatmul.mubr.msk.bf16.gmra.mrb[8].mxu0 %vm1554_vm2, %v6007_v15  ;;  %5798 = vmatmul.mubr.msk.bf16.gmra.mrb[8].mxu1 %vm1554_vm2, %v6008_v16  ;;  %v6051_v59 = vld [vmem:[%s6239_s20 + $0xd8] sm:$0xff]   ;;  %v6052_v60 = vld [vmem:[%s6239_s20 + $0x3e8] sm:$0xff]   ;;  %v6053_v61 = vld [vmem:[%s6239_s20 + $0xe0] sm:$0xff]  }
  0x27   : > { %5605 = vmatprep.mubr.msk.bf16.mxu0 %vm1554_vm2, %v6009_v17  ;;  %5801 = vmatprep.mubr.msk.bf16.mxu1 %vm1554_vm2, %v6010_v18  ;;  %v6054_v62 = vld [vmem:[%s6239_s20 + $0x3f0] sm:$0xff]   ;;  %v6055_v63 = vld [vmem:[%s6239_s20 + $0xe8] sm:$0xff]   ;;  %v6056_v0 = vld [vmem:[%s6239_s20 + $0x3f8] sm:$0xff]  }
  0x28   : > { %v6057_v1 = vld [vmem:[%s6239_s20 + $0xf0] sm:$0xff]   ;;  %v6058_v2 = vld [vmem:[%s6239_s20 + $0x400] sm:$0xff]   ;;  %v6059_v3 = vld [vmem:[%s6239_s20 + $0xf8] sm:$0xff]  }
  0x29   : > { %v6060_v4 = vld [vmem:[%s6239_s20 + $0x408] sm:$0xff]   ;;  %v6061_v5 = vld [vmem:[%s6239_s20 + $0x100] sm:$0xff]   ;;  %v6062_v6 = vld [vmem:[%s6239_s20 + $0x410] sm:$0xff]  }
  0x2a   : > { %v6063_v7 = vld [vmem:[%s6239_s20 + $0x108] sm:$0xff]   ;;  %v6064_v8 = vld [vmem:[%s6239_s20 + $0x418] sm:$0xff]   ;;  %v6065_v9 = vld [vmem:[%s6239_s20 + $0x110] sm:$0xff]  }
  0x2b   : > { %v6066_v10 = vld [vmem:[%s6239_s20 + $0x420] sm:$0xff]   ;;  %v6067_v11 = vld [vmem:[%s6239_s20 + $0x118] sm:$0xff]   ;;  %v6068_v12 = vld [vmem:[%s6239_s20 + $0x428] sm:$0xff]  }
  0x2c   : > { %v6069_v13 = vld [vmem:[%s6239_s20 + $0x120] sm:$0xff]   ;;  %v6070_v14 = vld [vmem:[%s6239_s20 + $0x430] sm:$0xff]   ;;  %v6071_v15 = vld [vmem:[%s6239_s20 + $0x128] sm:$0xff]  }
  0x2d   : > { %v6072_v16 = vld [vmem:[%s6239_s20 + $0x438] sm:$0xff]   ;;  %v6073_v17 = vld [vmem:[%s6239_s20 + $0x130] sm:$0xff]   ;;  %v6074_v18 = vld [vmem:[%s6239_s20 + $0x440] sm:$0xff]  }
  0x2e   : > { %5606 = vmatmul.mubr.msk.bf16.gmra.mrb[12].mxu0 %vm1554_vm2, %v6011_v19  ;;  %5802 = vmatmul.mubr.msk.bf16.gmra.mrb[12].mxu1 %vm1554_vm2, %v6012_v20  ;;  %v6075_v19 = vld [vmem:[%s6239_s20 + $0x138] sm:$0xff]   ;;  %v6076_v20 = vld [vmem:[%s6239_s20 + $0x448] sm:$0xff]  }
  0x2f   : > { %5609 = vmatprep.mubr.msk.bf16.mxu0 %vm1554_vm2, %v6013_v21  ;;  %5805 = vmatprep.mubr.msk.bf16.mxu1 %vm1554_vm2, %v6014_v22  ;;  %v6077_v21 = vld [vmem:[%s6239_s20 + $0x140] sm:$0xff]   ;;  %v6078_v22 = vld [vmem:[%s6239_s20 + $0x450] sm:$0xff]  }
  0x36   : > { %5610 = vmatmul.mubr.msk.bf16.gmra.mrb[16].mxu0 %vm1554_vm2, %v6015_v23  ;;  %5806 = vmatmul.mubr.msk.bf16.gmra.mrb[16].mxu1 %vm1554_vm2, %v6016_v24  ;;  %v6079_v23 = vld [vmem:[%s6239_s20 + $0x148] sm:$0xff]   ;;  %v6080_v24 = vld [vmem:[%s6239_s20 + $0x458] sm:$0xff]  }
  0x37   : > { %5613 = vmatprep.mubr.msk.bf16.mxu0 %vm1554_vm2, %v6017_v25  ;;  %5809 = vmatprep.mubr.msk.bf16.mxu1 %vm1554_vm2, %v6018_v26  ;;  %v6081_v25 = vld [vmem:[%s6239_s20 + $0x150] sm:$0xff]   ;;  %v6082_v26 = vld [vmem:[%s6239_s20 + $0x460] sm:$0xff]  }
  0x3e   : > { %5614 = vmatmul.mubr.msk.bf16.gmra.mrb[20].mxu0 %vm1554_vm2, %v6019_v27  ;;  %5810 = vmatmul.mubr.msk.bf16.gmra.mrb[20].mxu1 %vm1554_vm2, %v6020_v28  ;;  %v6083_v27 = vld [vmem:[%s6239_s20 + $0x158] sm:$0xff]   ;;  %v6084_v28 = vld [vmem:[%s6239_s20 + $0x468] sm:$0xff]  }
  0x3f   : > { %5617 = vmatprep.mubr.msk.bf16.mxu0 %vm1554_vm2, %v6021_v29  ;;  %5813 = vmatprep.mubr.msk.bf16.mxu1 %vm1554_vm2, %v6022_v30  ;;  %v6085_v29 = vld [vmem:[%s6239_s20 + $0x160] sm:$0xff]   ;;  %v6086_v30 = vld [vmem:[%s6239_s20 + $0x470] sm:$0xff]  }
  0x46   : > { %5618 = vmatmul.mubr.msk.bf16.gmra.mrb[24].mxu0 %vm1554_vm2, %v6023_v31  ;;  %5814 = vmatmul.mubr.msk.bf16.gmra.mrb[24].mxu1 %vm1554_vm2, %v6024_v32  ;;  %v6087_v31 = vld [vmem:[%s6239_s20 + $0x168] sm:$0xff]   ;;  %v6088_v32 = vld [vmem:[%s6239_s20 + $0x478] sm:$0xff]  }
  0x47   : > { %5621 = vmatprep.mubr.msk.bf16.mxu0 %vm1554_vm2, %v6025_v33  ;;  %5817 = vmatprep.mubr.msk.bf16.mxu1 %vm1554_vm2, %v6026_v34  ;;  %v6089_v33 = vld [vmem:[%s6239_s20 + $0x170] sm:$0xff]   ;;  %v6090_v34 = vld [vmem:[%s6239_s20 + $0x480] sm:$0xff]  }
  0x4e   : > { %5622 = vmatmul.mubr.msk.bf16.gmra.mrb[28].mxu0 %vm1554_vm2, %v6027_v35  ;;  %5818 = vmatmul.mubr.msk.bf16.gmra.mrb[28].mxu1 %vm1554_vm2, %v6028_v36  ;;  %v6091_v35 = vld [vmem:[%s6239_s20 + $0x178] sm:$0xff]   ;;  %v6092_v36 = vld [vmem:[%s6239_s20 + $0x488] sm:$0xff]  }
  0x4f   : > { %5625 = vmatprep.mubr.msk.bf16.mxu0 %vm1554_vm2, %v6029_v37  ;;  %5821 = vmatprep.mubr.msk.bf16.mxu1 %vm1554_vm2, %v6030_v38  ;;  %v6093_v37 = vld [vmem:[%s6239_s20 + $0x180] sm:$0xff]   ;;  %v6094_v38 = vld [vmem:[%s6239_s20 + $0x490] sm:$0xff]  }
  0x56   : > { %5626 = vmatmul.mubr.msk.bf16.gmra.mrb[32].mxu0 %vm1554_vm2, %v6031_v39  ;;  %5822 = vmatmul.mubr.msk.bf16.gmra.mrb[32].mxu1 %vm1554_vm2, %v6032_v40  ;;  %v6095_v39 = vld [vmem:[%s6239_s20 + $0x188] sm:$0xff]   ;;  %v6096_v40 = vld [vmem:[%s6239_s20 + $0x498] sm:$0xff]  }
  0x57   : > { %5629 = vmatprep.mubr.msk.bf16.mxu0 %vm1554_vm2, %v6033_v41  ;;  %5825 = vmatprep.mubr.msk.bf16.mxu1 %vm1554_vm2, %v6034_v42  ;;  %v6097_v41 = vld [vmem:[%s6239_s20 + $0x190] sm:$0xff]   ;;  %v6098_v42 = vld [vmem:[%s6239_s20 + $0x4a0] sm:$0xff]  }
  0x5e   : > { %5630 = vmatmul.mubr.msk.bf16.gmra.mrb[36].mxu0 %vm1554_vm2, %v6035_v43  ;;  %5826 = vmatmul.mubr.msk.bf16.gmra.mrb[36].mxu1 %vm1554_vm2, %v6036_v44  ;;  %v6099_v43 = vld [vmem:[%s6239_s20 + $0x198] sm:$0xff]   ;;  %v6100_v44 = vld [vmem:[%s6239_s20 + $0x4a8] sm:$0xff]  }
  0x5f   : > { %5633 = vmatprep.mubr.msk.bf16.mxu0 %vm1554_vm2, %v6037_v45  ;;  %5829 = vmatprep.mubr.msk.bf16.mxu1 %vm1554_vm2, %v6038_v46  ;;  %v6101_v45 = vld [vmem:[%s6239_s20 + $0x1a0] sm:$0xff]   ;;  %v6102_v46 = vld [vmem:[%s6239_s20 + $0x4b0] sm:$0xff]  }
  0x66   : > { %5634 = vmatmul.mubr.msk.bf16.gmra.mrb[40].mxu0 %vm1554_vm2, %v6039_v47  ;;  %5830 = vmatmul.mubr.msk.bf16.gmra.mrb[40].mxu1 %vm1554_vm2, %v6040_v48  ;;  %v6103_v47 = vld [vmem:[%s6239_s20 + $0x1a8] sm:$0xff]   ;;  %v6104_v48 = vld [vmem:[%s6239_s20 + $0x4b8] sm:$0xff]  }
  0x67   : > { %5637 = vmatprep.mubr.msk.bf16.mxu0 %vm1554_vm2, %v6041_v49  ;;  %5833 = vmatprep.mubr.msk.bf16.mxu1 %vm1554_vm2, %v6042_v50  ;;  %v6105_v49 = vld [vmem:[%s6239_s20 + $0x1b0] sm:$0xff]   ;;  %v6106_v50 = vld [vmem:[%s6239_s20 + $0x4c0] sm:$0xff]  }
  0x6e   : > { %5638 = vmatmul.mubr.msk.bf16.gmra.mrb[44].mxu0 %vm1554_vm2, %v6043_v51  ;;  %5834 = vmatmul.mubr.msk.bf16.gmra.mrb[44].mxu1 %vm1554_vm2, %v6044_v52 }
  0x6f   : > { %5641 = vmatprep.mubr.msk.bf16.mxu0 %vm1554_vm2, %v6045_v53  ;;  %5837 = vmatprep.mubr.msk.bf16.mxu1 %vm1554_vm2, %v6046_v54  ;;  %v6107_v54 = vld [vmem:[%s6239_s20 + $0x1b8] sm:$0xff]  }
  0x76   : > { %5642 = vmatmul.mubr.msk.bf16.gmra.mrb[48].mxu0 %vm1554_vm2, %v6047_v55  ;;  %5838 = vmatmul.mubr.msk.bf16.gmra.mrb[48].mxu1 %vm1554_vm2, %v6048_v56 }
  0x77   : > { %5645 = vmatprep.mubr.msk.bf16.mxu0 %vm1554_vm2, %v6049_v57  ;;  %5841 = vmatprep.mubr.msk.bf16.mxu1 %vm1554_vm2, %v6050_v58  ;;  %v6108_v57 = vld [vmem:[%s6239_s20 + $0x4c8] sm:$0xff]   ;;  %v6109_v58 = vld [vmem:[%s6239_s20 + $0x1c0] sm:$0xff]  }
  0x7e   : > { %5646 = vmatmul.mubr.msk.bf16.gmra.mrb[52].mxu0 %vm1554_vm2, %v6051_v59  ;;  %5842 = vmatmul.mubr.msk.bf16.gmra.mrb[52].mxu1 %vm1554_vm2, %v6052_v60 }
  0x7f   : > { %5649 = vmatprep.mubr.msk.bf16.mxu0 %vm1554_vm2, %v6053_v61  ;;  %5845 = vmatprep.mubr.msk.bf16.mxu1 %vm1554_vm2, %v6054_v62  ;;  %v6110_v61 = vld [vmem:[%s6239_s20 + $0x4d0] sm:$0xff]  }
  0x86   : > { %5650 = vmatmul.mubr.msk.bf16.gmra.mrb[56].mxu0 %vm1554_vm2, %v6055_v63  ;;  %5846 = vmatmul.mubr.msk.bf16.gmra.mrb[56].mxu1 %vm1554_vm2, %v6056_v0 }
  0x87   : > { %5653 = vmatprep.mubr.msk.bf16.mxu0 %vm1554_vm2, %v6057_v1  ;;  %5849 = vmatprep.mubr.msk.bf16.mxu1 %vm1554_vm2, %v6058_v2  ;;  %v6111_v2 = vld [vmem:[%s6239_s20 + $0x1c8] sm:$0xff]  }
  0x8e   : > { %5654 = vmatmul.mubr.msk.bf16.gmra.mrb[60].mxu0 %vm1554_vm2, %v6059_v3  ;;  %5850 = vmatmul.mubr.msk.bf16.gmra.mrb[60].mxu1 %vm1554_vm2, %v6060_v4 }
  0x8f   : > { %5657 = vmatprep.mubr.msk.bf16.mxu0 %vm1554_vm2, %v6061_v5  ;;  %5853 = vmatprep.mubr.msk.bf16.mxu1 %vm1554_vm2, %v6062_v6  ;;  %v6112_v5 = vld [vmem:[%s6239_s20 + $0x4d8] sm:$0xff]   ;;  %v6113_v6 = vld [vmem:[%s6239_s20 + $0x1d0] sm:$0xff]  }
  0x96   : > { %5658 = vmatmul.mubr.msk.bf16.gmra.mrb[64].mxu0 %vm1554_vm2, %v6063_v7  ;;  %5854 = vmatmul.mubr.msk.bf16.gmra.mrb[64].mxu1 %vm1554_vm2, %v6064_v8 }
  0x97   : > { %5661 = vmatprep.mubr.msk.bf16.mxu0 %vm1554_vm2, %v6065_v9  ;;  %5857 = vmatprep.mubr.msk.bf16.mxu1 %vm1554_vm2, %v6066_v10  ;;  %v6114_v9 = vld [vmem:[%s6239_s20 + $0x4e0] sm:$0xff]  }
  0x9e   : > { %5662 = vmatmul.mubr.msk.bf16.gmra.mrb[68].mxu0 %vm1554_vm2, %v6067_v11  ;;  %5858 = vmatmul.mubr.msk.bf16.gmra.mrb[68].mxu1 %vm1554_vm2, %v6068_v12 }
  0x9f   : > { %5665 = vmatprep.mubr.msk.bf16.mxu0 %vm1554_vm2, %v6069_v13  ;;  %5861 = vmatprep.mubr.msk.bf16.mxu1 %vm1554_vm2, %v6070_v14  ;;  %v6115_v14 = vld [vmem:[%s6239_s20 + $0x1d8] sm:$0xff]  }
  0xa6   : > { %5666 = vmatmul.mubr.msk.bf16.gmra.mrb[72].mxu0 %vm1554_vm2, %v6071_v15  ;;  %5862 = vmatmul.mubr.msk.bf16.gmra.mrb[72].mxu1 %vm1554_vm2, %v6072_v16 }
  0xa7   : > { %5669 = vmatprep.mubr.msk.bf16.mxu0 %vm1554_vm2, %v6073_v17  ;;  %5865 = vmatprep.mubr.msk.bf16.mxu1 %vm1554_vm2, %v6074_v18  ;;  %v6116_v17 = vld [vmem:[%s6239_s20 + $0x4e8] sm:$0xff]   ;;  %v6117_v18 = vld [vmem:[%s6239_s20 + $0x1e0] sm:$0xff]  }
  0xae   : > { %5670 = vmatmul.mubr.msk.bf16.gmra.mrb[76].mxu0 %vm1554_vm2, %v6075_v19  ;;  %5866 = vmatmul.mubr.msk.bf16.gmra.mrb[76].mxu1 %vm1554_vm2, %v6076_v20 }
  0xaf   : > { %5673 = vmatprep.mubr.msk.bf16.mxu0 %vm1554_vm2, %v6077_v21  ;;  %5869 = vmatprep.mubr.msk.bf16.mxu1 %vm1554_vm2, %v6078_v22  ;;  %v6118_v21 = vld [vmem:[%s6239_s20 + $0x4f0] sm:$0xff]  }
  0xb6   : > { %5674 = vmatmul.mubr.msk.bf16.gmra.mrb[80].mxu0 %vm1554_vm2, %v6079_v23  ;;  %5870 = vmatmul.mubr.msk.bf16.gmra.mrb[80].mxu1 %vm1554_vm2, %v6080_v24 }
  0xb7   : > { %5677 = vmatprep.mubr.msk.bf16.mxu0 %vm1554_vm2, %v6081_v25  ;;  %5873 = vmatprep.mubr.msk.bf16.mxu1 %vm1554_vm2, %v6082_v26  ;;  %v6119_v26 = vld [vmem:[%s6239_s20 + $0x1e8] sm:$0xff]  }
  0xbe   : > { %5678 = vmatmul.mubr.msk.bf16.gmra.mrb[84].mxu0 %vm1554_vm2, %v6083_v27  ;;  %5874 = vmatmul.mubr.msk.bf16.gmra.mrb[84].mxu1 %vm1554_vm2, %v6084_v28 }
  0xbf   : > { %5681 = vmatprep.mubr.msk.bf16.mxu0 %vm1554_vm2, %v6085_v29  ;;  %5877 = vmatprep.mubr.msk.bf16.mxu1 %vm1554_vm2, %v6086_v30  ;;  %v6120_v29 = vld [vmem:[%s6239_s20 + $0x4f8] sm:$0xff]   ;;  %v6121_v30 = vld [vmem:[%s6239_s20 + $0x1f0] sm:$0xff]  }
  0xc6   : > { %5682 = vmatmul.mubr.msk.bf16.gmra.mrb[88].mxu0 %vm1554_vm2, %v6087_v31  ;;  %5878 = vmatmul.mubr.msk.bf16.gmra.mrb[88].mxu1 %vm1554_vm2, %v6088_v32 }
  0xc7   : > { %5685 = vmatprep.mubr.msk.bf16.mxu0 %vm1554_vm2, %v6089_v33  ;;  %5881 = vmatprep.mubr.msk.bf16.mxu1 %vm1554_vm2, %v6090_v34  ;;  %v6122_v33 = vld [vmem:[%s6239_s20 + $0x500] sm:$0xff]  }
  0xce   : > { %5686 = vmatmul.mubr.msk.bf16.gmra.mrb[92].mxu0 %vm1554_vm2, %v6091_v35  ;;  %5882 = vmatmul.mubr.msk.bf16.gmra.mrb[92].mxu1 %vm1554_vm2, %v6092_v36 }
  0xcf   : > { %5689 = vmatprep.mubr.msk.bf16.mxu0 %vm1554_vm2, %v6093_v37  ;;  %5885 = vmatprep.mubr.msk.bf16.mxu1 %vm1554_vm2, %v6094_v38  ;;  %v6123_v38 = vld [vmem:[%s6239_s20 + $0x1f8] sm:$0xff]  }
  0xd6   : > { %5690 = vmatmul.mubr.msk.bf16.gmra.mrb[96].mxu0 %vm1554_vm2, %v6095_v39  ;;  %5886 = vmatmul.mubr.msk.bf16.gmra.mrb[96].mxu1 %vm1554_vm2, %v6096_v40 }
  0xd7   : > { %5693 = vmatprep.mubr.msk.bf16.mxu0 %vm1554_vm2, %v6097_v41  ;;  %5889 = vmatprep.mubr.msk.bf16.mxu1 %vm1554_vm2, %v6098_v42  ;;  %v6124_v41 = vld [vmem:[%s6239_s20 + $0x508] sm:$0xff]   ;;  %v6125_v42 = vld [vmem:[%s6239_s20 + $0x200] sm:$0xff]  }
  0xde   : > { %5694 = vmatmul.mubr.msk.bf16.gmra.mrb[100].mxu0 %vm1554_vm2, %v6099_v43  ;;  %5890 = vmatmul.mubr.msk.bf16.gmra.mrb[100].mxu1 %vm1554_vm2, %v6100_v44 }
  0xdf   : > { %5697 = vmatprep.mubr.msk.bf16.mxu0 %vm1554_vm2, %v6101_v45  ;;  %5893 = vmatprep.mubr.msk.bf16.mxu1 %vm1554_vm2, %v6102_v46  ;;  %v6126_v45 = vld [vmem:[%s6239_s20 + $0x510] sm:$0xff]  }
  0xe6   : > { %5698 = vmatmul.mubr.msk.bf16.gmra.mrb[104].mxu0 %vm1554_vm2, %v6103_v47  ;;  %5894 = vmatmul.mubr.msk.bf16.gmra.mrb[104].mxu1 %vm1554_vm2, %v6104_v48 }
  0xe7   : > { %5701 = vmatprep.mubr.msk.bf16.mxu0 %vm1554_vm2, %v6105_v49  ;;  %5897 = vmatprep.mubr.msk.bf16.mxu1 %vm1554_vm2, %v6106_v50  ;;  %v6127_v50 = vld [vmem:[%s6239_s20 + $0x208] sm:$0xff]  }
  0xe9   : > { %v6461_v51 = vpop.f32.mrb[0].mxu0  ;;  %v6463_v52 = vpop.f32.mrb[0].mxu1 }
  0xea   : > { %v6465_v53 = vpop.f32.mrb[1].mxu0  ;;  %v6468_v55 = vpop.f32.mrb[1].mxu1 }
  0xeb   : > { %v6470_v56 = vpop.f32.mrb[2].mxu0  ;;  %v6474_v59 = vpop.f32.mrb[2].mxu1 }
  0xec   : > { %v6476_v60 = vpop.f32.mrb[3].mxu0  ;;  %v6479_v62 = vpop.f32.mrb[3].mxu1 }
  0xee   : > { %5702 = vmatmul.mubr.msk.bf16.gmra.mrb[108].mxu0 %vm1554_vm2, %v6107_v54  ;;  %5898 = vmatmul.mubr.msk.bf16.gmra.mrb[108].mxu1 %vm1554_vm2, %v6108_v57 }
  0xef   : > { %5705 = vmatprep.mubr.msk.bf16.mxu0 %vm1554_vm2, %v6109_v58  ;;  %5901 = vmatprep.mubr.msk.bf16.mxu1 %vm1554_vm2, %v6110_v61  ;;  %v6128_v58 = vld [vmem:[%s6239_s20 + $0x518] sm:$0xff]   ;;  %v6129_v61 = vld [vmem:[%s6239_s20 + $0x210] sm:$0xff]  }
  0xf1   : > { %v6485_v63 = vpop.f32.mrb[4].mxu0  ;;  %v6487_v0 = vpop.f32.mrb[4].mxu1 }
  0xf2   : > { %v6489_v1 = vpop.f32.mrb[5].mxu0  ;;  %v6492_v3 = vpop.f32.mrb[5].mxu1 }
  0xf3   : > { %v6494_v4 = vpop.f32.mrb[6].mxu0  ;;  %v6498_v7 = vpop.f32.mrb[6].mxu1 }
  0xf4   : > { %v6500_v8 = vpop.f32.mrb[7].mxu0  ;;  %v6503_v10 = vpop.f32.mrb[7].mxu1 }
  0xf6   : > { %5706 = vmatmul.mubr.msk.bf16.gmra.mrb[112].mxu0 %vm1554_vm2, %v6111_v2  ;;  %5902 = vmatmul.mubr.msk.bf16.gmra.mrb[112].mxu1 %vm1554_vm2, %v6112_v5 }
  0xf7   : > { %5709 = vmatprep.mubr.msk.bf16.mxu0 %vm1554_vm2, %v6113_v6  ;;  %5905 = vmatprep.mubr.msk.bf16.mxu1 %vm1554_vm2, %v6114_v9  ;;  %v6130_v6 = vld [vmem:[%s6239_s20 + $0x520] sm:$0xff]  }
  0xf9   : > { %v6509_v11 = vpop.f32.mrb[8].mxu0  ;;  %v6511_v12 = vpop.f32.mrb[8].mxu1 }
  0xfa   : > { %v6513_v13 = vpop.f32.mrb[9].mxu0  ;;  %v6516_v15 = vpop.f32.mrb[9].mxu1 }
  0xfb   : > { %v6518_v16 = vpop.f32.mrb[10].mxu0  ;;  %v6522_v19 = vpop.f32.mrb[10].mxu1 }
  0xfc   : > { %v6524_v20 = vpop.f32.mrb[11].mxu0  ;;  %v6527_v22 = vpop.f32.mrb[11].mxu1 }
  0xfe   : > { %5710 = vmatmul.mubr.msk.bf16.gmra.mrb[116].mxu0 %vm1554_vm2, %v6115_v14  ;;  %5906 = vmatmul.mubr.msk.bf16.gmra.mrb[116].mxu1 %vm1554_vm2, %v6116_v17 }
  0xff   : > { %5713 = vmatprep.mubr.msk.bf16.mxu0 %vm1554_vm2, %v6117_v18  ;;  %5909 = vmatprep.mubr.msk.bf16.mxu1 %vm1554_vm2, %v6118_v21  ;;  %v6131_v21 = vld [vmem:[%s6239_s20 + $0x218] sm:$0xff]  }
 0x101   : > { %v6533_v23 = vpop.f32.mrb[12].mxu0  ;;  %v6535_v24 = vpop.f32.mrb[12].mxu1 }
 0x102   : > { %v6537_v25 = vpop.f32.mrb[13].mxu0  ;;  %v6540_v27 = vpop.f32.mrb[13].mxu1 }
 0x103   : > { %v6542_v28 = vpop.f32.mrb[14].mxu0  ;;  %v6546_v31 = vpop.f32.mrb[14].mxu1 }
 0x104   : > { %v6548_v32 = vpop.f32.mrb[15].mxu0  ;;  %v6551_v34 = vpop.f32.mrb[15].mxu1 }
 0x106   : > { %5714 = vmatmul.mubr.msk.bf16.gmra.mrb[120].mxu0 %vm1554_vm2, %v6119_v26  ;;  %5910 = vmatmul.mubr.msk.bf16.gmra.mrb[120].mxu1 %vm1554_vm2, %v6120_v29 }
 0x107   : > { %5717 = vmatprep.mubr.msk.bf16.mxu0 %vm1554_vm2, %v6121_v30  ;;  %5913 = vmatprep.mubr.msk.bf16.mxu1 %vm1554_vm2, %v6122_v33  ;;  %v6132_v30 = vld [vmem:[%s6239_s20 + $0x528] sm:$0xff]   ;;  %v6133_v33 = vld [vmem:[%s6239_s20 + $0x220] sm:$0xff]  }
 0x109   : > { %v6557_v35 = vpop.f32.mrb[16].mxu0  ;;  %v6559_v36 = vpop.f32.mrb[16].mxu1 }
 0x10a   : > { %v6561_v37 = vpop.f32.mrb[17].mxu0  ;;  %v6564_v39 = vpop.f32.mrb[17].mxu1 }
 0x10b   : > { %v6566_v40 = vpop.f32.mrb[18].mxu0  ;;  %v6570_v43 = vpop.f32.mrb[18].mxu1 }
 0x10c   : > { %v6572_v44 = vpop.f32.mrb[19].mxu0  ;;  %v6575_v46 = vpop.f32.mrb[19].mxu1 }
 0x10e   : > { %5718 = vmatmul.mubr.msk.bf16.gmra.mrb[124].mxu0 %vm1554_vm2, %v6123_v38  ;;  %5914 = vmatmul.mubr.msk.bf16.gmra.mrb[124].mxu1 %vm1554_vm2, %v6124_v41 }
 0x10f   : > { %5721 = vmatprep.mubr.msk.bf16.mxu0 %vm1554_vm2, %v6125_v42  ;;  %5917 = vmatprep.mubr.msk.bf16.mxu1 %vm1554_vm2, %v6126_v45  ;;  %v6134_v42 = vld [vmem:[%s6239_s20 + $0x530] sm:$0xff]  }
 0x111   : > { %v6581_v47 = vpop.f32.mrb[20].mxu0  ;;  %v6583_v48 = vpop.f32.mrb[20].mxu1 }
 0x112   : > { %v6585_v49 = vpop.f32.mrb[21].mxu0  ;;  %v6588_v54 = vpop.f32.mrb[21].mxu1 }
 0x113   : > { %v6590_v57 = vpop.f32.mrb[22].mxu0  ;;  %v6594_v2 = vpop.f32.mrb[22].mxu1 }
 0x114   : > { %7539 = vst [vmem:[#allocation2_spill] sm:$0xff] %v6594_v2  ;;  %v6596_v5 = vpop.f32.mrb[23].mxu0  ;;  %v6599_v9 = vpop.f32.mrb[23].mxu1 }
 0x116   : > { %5722 = vmatmul.mubr.msk.bf16.gmra.mrb[128].mxu0 %vm1554_vm2, %v6127_v50  ;;  %5918 = vmatmul.mubr.msk.bf16.gmra.mrb[128].mxu1 %vm1554_vm2, %v6128_v58 }
 0x117   : > { %5725 = vmatprep.mubr.msk.bf16.mxu0 %vm1554_vm2, %v6129_v61  ;;  %5921 = vmatprep.mubr.msk.bf16.mxu1 %vm1554_vm2, %v6130_v6  ;;  %v6135_v6 = vld [vmem:[%s6239_s20 + $0x228] sm:$0xff]  }
 0x119   : > { %v6605_v14 = vpop.f32.mrb[24].mxu0  ;;  %v6607_v17 = vpop.f32.mrb[24].mxu1 }
 0x11a   : > { %7540 = vst [vmem:[#allocation3_spill] sm:$0xff] %v6605_v14  ;;  %7541 = vst [vmem:[#allocation4_spill] sm:$0xff] %v6607_v17  ;;  %v6609_v18 = vpop.f32.mrb[25].mxu0  ;;  %v6612_v26 = vpop.f32.mrb[25].mxu1  ;;  %v6136_v17 = vld [vmem:[%s6239_s20 + $0x538] sm:$0xff]  }
 0x11b   : > { %v6614_v29 = vpop.f32.mrb[26].mxu0  ;;  %v6618_v38 = vpop.f32.mrb[26].mxu1 }
 0x11c   : > { %7542 = vst [vmem:[#allocation5_spill] sm:$0xff] %v6614_v29  ;;  %7543 = vst [vmem:[#allocation6_spill] sm:$0xff] %v6618_v38  ;;  %v6620_v41 = vpop.f32.mrb[27].mxu0  ;;  %v6623_v45 = vpop.f32.mrb[27].mxu1 }
 0x11e   : > { %5726 = vmatmul.mubr.msk.bf16.gmra.mrb[132].mxu0 %vm1554_vm2, %v6131_v21  ;;  %5922 = vmatmul.mubr.msk.bf16.gmra.mrb[132].mxu1 %vm1554_vm2, %v6132_v30  ;;  %v6137_v21 = vld [vmem:[%s6239_s20 + $0x230] sm:$0xff]  }
 0x11f   : > { %5729 = vmatprep.mubr.msk.bf16.mxu0 %vm1554_vm2, %v6133_v33  ;;  %5925 = vmatprep.mubr.msk.bf16.mxu1 %vm1554_vm2, %v6134_v42  ;;  %v6138_v42 = vld [vmem:[%s6239_s20 + $0x540] sm:$0xff]  }
 0x121   : > { %v6629_v50 = vpop.f32.mrb[28].mxu0  ;;  %v6631_v58 = vpop.f32.mrb[28].mxu1 }
 0x122   : > { %7544 = vst [vmem:[#allocation7_spill] sm:$0xff] %v6629_v50  ;;  %7545 = vst [vmem:[#allocation8_spill] sm:$0xff] %v6631_v58  ;;  %v6633_v61 = vpop.f32.mrb[29].mxu0  ;;  %v6636_v38 = vpop.f32.mrb[29].mxu1 }
 0x123   : > { %7546 = vst [vmem:[#allocation9_spill] sm:$0xff] %v6633_v61  ;;  %7547 = vst [vmem:[#allocation10_spill] sm:$0xff] %v6636_v38  ;;  %v6638_v29 = vpop.f32.mrb[30].mxu0  ;;  %v6642_v30 = vpop.f32.mrb[30].mxu1 }
 0x124   : > { %7548 = vst [vmem:[#allocation11_spill] sm:$0xff] %v6638_v29  ;;  %7549 = vst [vmem:[#allocation12_spill] sm:$0xff] %v6642_v30  ;;  %v6644_v33 = vpop.f32.mrb[31].mxu0  ;;  %v6647_v50 = vpop.f32.mrb[31].mxu1  ;;  %v6139_v30 = vld [vmem:[%s6239_s20 + $0x238] sm:$0xff]  }
 0x125   : > { %7550 = vst [vmem:[#allocation13_spill] sm:$0xff] %v6644_v33  ;;  %7551 = vst [vmem:[#allocation14_spill] sm:$0xff] %v6647_v50  ;;  %v6140_v50 = vld [vmem:[%s6239_s20 + $0x548] sm:$0xff]  }
 0x126   : > { %5730 = vmatmul.mubr.msk.bf16.gmra.mrb[136].mxu0 %vm1554_vm2, %v6135_v6  ;;  %5926 = vmatmul.mubr.msk.bf16.gmra.mrb[136].mxu1 %vm1554_vm2, %v6136_v17  ;;  %v6141_v6 = vld [vmem:[%s6239_s20 + $0x240] sm:$0xff]  }
 0x127   : > { %5733 = vmatprep.mubr.msk.bf16.mxu0 %vm1554_vm2, %v6137_v21  ;;  %5929 = vmatprep.mubr.msk.bf16.mxu1 %vm1554_vm2, %v6138_v42  ;;  %v6142_v42 = vld [vmem:[%s6239_s20 + $0x550] sm:$0xff]  }
 0x129   : > { %v6653_v29 = vpop.f32.mrb[32].mxu0  ;;  %v6655_v58 = vpop.f32.mrb[32].mxu1 }
 0x12a   : > { %7552 = vst [vmem:[#allocation15_spill] sm:$0xff] %v6653_v29  ;;  %7553 = vst [vmem:[#allocation16_spill] sm:$0xff] %v6655_v58  ;;  %v6657_v14 = vpop.f32.mrb[33].mxu0  ;;  %v6660_v33 = vpop.f32.mrb[33].mxu1 }
 0x12b   : > { %7554 = vst [vmem:[#allocation17_spill] sm:$0xff] %v6657_v14  ;;  %7555 = vst [vmem:[#allocation18_spill] sm:$0xff] %v6660_v33  ;;  %v6662_v38 = vpop.f32.mrb[34].mxu0  ;;  %v6666_v17 = vpop.f32.mrb[34].mxu1 }
 0x12c   : > { %7556 = vst [vmem:[#allocation19_spill] sm:$0xff] %v6662_v38  ;;  %7557 = vst [vmem:[#allocation20_spill] sm:$0xff] %v6666_v17  ;;  %v6668_v21 = vpop.f32.mrb[35].mxu0  ;;  %v6671_v29 = vpop.f32.mrb[35].mxu1  ;;  %v6143_v17 = vld [vmem:[%s6239_s20 + $0x248] sm:$0xff]  }
 0x12d   : > { %7558 = vst [vmem:[#allocation21_spill] sm:$0xff] %v6668_v21  ;;  %7559 = vst [vmem:[#allocation22_spill] sm:$0xff] %v6671_v29  ;;  %v6144_v29 = vld [vmem:[%s6239_s20 + $0x558] sm:$0xff]  }
 0x12e   : > { %5734 = vmatmul.mubr.msk.bf16.gmra.mrb[140].mxu0 %vm1554_vm2, %v6139_v30  ;;  %5930 = vmatmul.mubr.msk.bf16.gmra.mrb[140].mxu1 %vm1554_vm2, %v6140_v50  ;;  %v6145_v30 = vld [vmem:[%s6239_s20 + $0x250] sm:$0xff]  }
 0x12f   : > { %5737 = vmatprep.mubr.msk.bf16.mxu0 %vm1554_vm2, %v6141_v6  ;;  %5933 = vmatprep.mubr.msk.bf16.mxu1 %vm1554_vm2, %v6142_v42  ;;  %v6146_v42 = vld [vmem:[%s6239_s20 + $0x560] sm:$0xff]  }
 0x131   : > { %v6677_v38 = vpop.f32.mrb[36].mxu0  ;;  %v6679_v58 = vpop.f32.mrb[36].mxu1 }
 0x132   : > { %7560 = vst [vmem:[#allocation23_spill] sm:$0xff] %v6677_v38  ;;  %7561 = vst [vmem:[#allocation24_spill] sm:$0xff] %v6679_v58  ;;  %v6681_v33 = vpop.f32.mrb[37].mxu0  ;;  %v6684_v21 = vpop.f32.mrb[37].mxu1 }
 0x133   : > { %7562 = vst [vmem:[#allocation25_spill] sm:$0xff] %v6681_v33  ;;  %7563 = vst [vmem:[#allocation26_spill] sm:$0xff] %v6684_v21  ;;  %v6686_v14 = vpop.f32.mrb[38].mxu0  ;;  %v6690_v50 = vpop.f32.mrb[38].mxu1 }
 0x134   : > { %7564 = vst [vmem:[#allocation27_spill] sm:$0xff] %v6686_v14  ;;  %7565 = vst [vmem:[#allocation28_spill] sm:$0xff] %v6690_v50  ;;  %v6692_v6 = vpop.f32.mrb[39].mxu0  ;;  %v6695_v38 = vpop.f32.mrb[39].mxu1  ;;  %v6147_v50 = vld [vmem:[%s6239_s20 + $0x258] sm:$0xff]  }
 0x135   : > { %7566 = vst [vmem:[#allocation29_spill] sm:$0xff] %v6692_v6  ;;  %7567 = vst [vmem:[#allocation30_spill] sm:$0xff] %v6695_v38  ;;  %v6148_v38 = vld [vmem:[%s6239_s20 + $0x568] sm:$0xff]  }
 0x136   : > { %5738 = vmatmul.mubr.msk.bf16.gmra.mrb[144].mxu0 %vm1554_vm2, %v6143_v17  ;;  %5934 = vmatmul.mubr.msk.bf16.gmra.mrb[144].mxu1 %vm1554_vm2, %v6144_v29  ;;  %v6149_v17 = vld [vmem:[%s6239_s20 + $0x260] sm:$0xff]  }
 0x137   : > { %5741 = vmatprep.mubr.msk.bf16.mxu0 %vm1554_vm2, %v6145_v30  ;;  %5937 = vmatprep.mubr.msk.bf16.mxu1 %vm1554_vm2, %v6146_v42  ;;  %v6150_v42 = vld [vmem:[%s6239_s20 + $0x570] sm:$0xff]  }
 0x139   : > { %v6701_v14 = vpop.f32.mrb[40].mxu0  ;;  %v6703_v58 = vpop.f32.mrb[40].mxu1 }
 0x13a   : > { %7568 = vst [vmem:[#allocation31_spill] sm:$0xff] %v6701_v14  ;;  %7569 = vst [vmem:[#allocation32_spill] sm:$0xff] %v6703_v58  ;;  %v6705_v21 = vpop.f32.mrb[41].mxu0  ;;  %v6708_v6 = vpop.f32.mrb[41].mxu1 }
 0x13b   : > { %7570 = vst [vmem:[#allocation33_spill] sm:$0xff] %v6705_v21  ;;  %7571 = vst [vmem:[#allocation34_spill] sm:$0xff] %v6708_v6  ;;  %v6710_v33 = vpop.f32.mrb[42].mxu0  ;;  %v6714_v29 = vpop.f32.mrb[42].mxu1 }
 0x13c   : > { %7572 = vst [vmem:[#allocation35_spill] sm:$0xff] %v6710_v33  ;;  %7573 = vst [vmem:[#allocation36_spill] sm:$0xff] %v6714_v29  ;;  %v6716_v30 = vpop.f32.mrb[43].mxu0  ;;  %v6719_v14 = vpop.f32.mrb[43].mxu1  ;;  %v6151_v29 = vld [vmem:[%s6239_s20 + $0x268] sm:$0xff]  }
 0x13d   : > { %7574 = vst [vmem:[#allocation37_spill] sm:$0xff] %v6716_v30  ;;  %7575 = vst [vmem:[#allocation38_spill] sm:$0xff] %v6719_v14  ;;  %v6152_v14 = vld [vmem:[%s6239_s20 + $0x578] sm:$0xff]  }
 0x13e   : > { %5742 = vmatmul.mubr.msk.bf16.gmra.mrb[148].mxu0 %vm1554_vm2, %v6147_v50  ;;  %5938 = vmatmul.mubr.msk.bf16.gmra.mrb[148].mxu1 %vm1554_vm2, %v6148_v38  ;;  %v6153_v50 = vld [vmem:[%s6239_s20 + $0x270] sm:$0xff]  }
 0x13f   : > { %5745 = vmatprep.mubr.msk.bf16.mxu0 %vm1554_vm2, %v6149_v17  ;;  %5941 = vmatprep.mubr.msk.bf16.mxu1 %vm1554_vm2, %v6150_v42  ;;  %v6154_v42 = vld [vmem:[%s6239_s20 + $0x580] sm:$0xff]  }
 0x141   : > { %v6725_v33 = vpop.f32.mrb[44].mxu0  ;;  %v6727_v58 = vpop.f32.mrb[44].mxu1 }
 0x142   : > { %7576 = vst [vmem:[#allocation39_spill] sm:$0xff] %v6725_v33  ;;  %7577 = vst [vmem:[#allocation40_spill] sm:$0xff] %v6727_v58  ;;  %v6729_v6 = vpop.f32.mrb[45].mxu0  ;;  %v6732_v30 = vpop.f32.mrb[45].mxu1 }
 0x143   : > { %7578 = vst [vmem:[#allocation41_spill] sm:$0xff] %v6729_v6  ;;  %7579 = vst [vmem:[#allocation42_spill] sm:$0xff] %v6732_v30  ;;  %v6734_v21 = vpop.f32.mrb[46].mxu0  ;;  %v6738_v38 = vpop.f32.mrb[46].mxu1 }
 0x144   : > { %7580 = vst [vmem:[#allocation43_spill] sm:$0xff] %v6734_v21  ;;  %7581 = vst [vmem:[#allocation44_spill] sm:$0xff] %v6738_v38  ;;  %v6740_v17 = vpop.f32.mrb[47].mxu0  ;;  %v6743_v33 = vpop.f32.mrb[47].mxu1  ;;  %v6155_v38 = vld [vmem:[%s6239_s20 + $0x278] sm:$0xff]  }
 0x145   : > { %7582 = vst [vmem:[#allocation45_spill] sm:$0xff] %v6740_v17  ;;  %7583 = vst [vmem:[#allocation46_spill] sm:$0xff] %v6743_v33  ;;  %v6156_v33 = vld [vmem:[%s6239_s20 + $0x588] sm:$0xff]  }
 0x146   : > { %5746 = vmatmul.mubr.msk.bf16.gmra.mrb[152].mxu0 %vm1554_vm2, %v6151_v29  ;;  %5942 = vmatmul.mubr.msk.bf16.gmra.mrb[152].mxu1 %vm1554_vm2, %v6152_v14  ;;  %v6157_v29 = vld [vmem:[%s6239_s20 + $0x280] sm:$0xff]  }
 0x147   : > { %5749 = vmatprep.mubr.msk.bf16.mxu0 %vm1554_vm2, %v6153_v50  ;;  %5945 = vmatprep.mubr.msk.bf16.mxu1 %vm1554_vm2, %v6154_v42  ;;  %v6158_v42 = vld [vmem:[%s6239_s20 + $0x590] sm:$0xff]  }
 0x149   : > { %v6749_v21 = vpop.f32.mrb[48].mxu0  ;;  %v6751_v58 = vpop.f32.mrb[48].mxu1 }
 0x14a   : > { %7584 = vst [vmem:[#allocation47_spill] sm:$0xff] %v6749_v21  ;;  %7585 = vst [vmem:[#allocation48_spill] sm:$0xff] %v6751_v58  ;;  %v6753_v30 = vpop.f32.mrb[49].mxu0  ;;  %v6756_v17 = vpop.f32.mrb[49].mxu1 }
 0x14b   : > { %7586 = vst [vmem:[#allocation49_spill] sm:$0xff] %v6753_v30  ;;  %7587 = vst [vmem:[#allocation50_spill] sm:$0xff] %v6756_v17  ;;  %v6758_v6 = vpop.f32.mrb[50].mxu0  ;;  %v6762_v14 = vpop.f32.mrb[50].mxu1 }
 0x14c   : > { %7588 = vst [vmem:[#allocation51_spill] sm:$0xff] %v6758_v6  ;;  %7589 = vst [vmem:[#allocation52_spill] sm:$0xff] %v6762_v14  ;;  %v6764_v50 = vpop.f32.mrb[51].mxu0  ;;  %v6767_v21 = vpop.f32.mrb[51].mxu1  ;;  %v6159_v14 = vld [vmem:[%s6239_s20 + $0x288] sm:$0xff]  }
 0x14d   : > { %7590 = vst [vmem:[#allocation53_spill] sm:$0xff] %v6764_v50  ;;  %7591 = vst [vmem:[#allocation54_spill] sm:$0xff] %v6767_v21  ;;  %v6160_v21 = vld [vmem:[%s6239_s20 + $0x598] sm:$0xff]  }
 0x14e   : > { %5750 = vmatmul.mubr.msk.bf16.gmra.mrb[156].mxu0 %vm1554_vm2, %v6155_v38  ;;  %5946 = vmatmul.mubr.msk.bf16.gmra.mrb[156].mxu1 %vm1554_vm2, %v6156_v33  ;;  %v6161_v38 = vld [vmem:[%s6239_s20 + $0x290] sm:$0xff]  }
 0x14f   : > { %5753 = vmatprep.mubr.msk.bf16.mxu0 %vm1554_vm2, %v6157_v29  ;;  %5949 = vmatprep.mubr.msk.bf16.mxu1 %vm1554_vm2, %v6158_v42  ;;  %v6162_v42 = vld [vmem:[%s6239_s20 + $0x5a0] sm:$0xff]  }
 0x151   : > { %v6773_v6 = vpop.f32.mrb[52].mxu0  ;;  %v6775_v58 = vpop.f32.mrb[52].mxu1 }
 0x152   : > { %7592 = vst [vmem:[#allocation55_spill] sm:$0xff] %v6773_v6  ;;  %7593 = vst [vmem:[#allocation56_spill] sm:$0xff] %v6775_v58  ;;  %v6777_v17 = vpop.f32.mrb[53].mxu0  ;;  %v6780_v50 = vpop.f32.mrb[53].mxu1 }
 0x153   : > { %7594 = vst [vmem:[#allocation57_spill] sm:$0xff] %v6777_v17  ;;  %7595 = vst [vmem:[#allocation58_spill] sm:$0xff] %v6780_v50  ;;  %v6782_v30 = vpop.f32.mrb[54].mxu0  ;;  %v6786_v33 = vpop.f32.mrb[54].mxu1 }
 0x154   : > { %7596 = vst [vmem:[#allocation59_spill] sm:$0xff] %v6782_v30  ;;  %7597 = vst [vmem:[#allocation60_spill] sm:$0xff] %v6786_v33  ;;  %v6788_v29 = vpop.f32.mrb[55].mxu0  ;;  %v6791_v6 = vpop.f32.mrb[55].mxu1  ;;  %v6163_v33 = vld [vmem:[%s6239_s20 + $0x298] sm:$0xff]  }
 0x155   : > { %7598 = vst [vmem:[#allocation61_spill] sm:$0xff] %v6788_v29  ;;  %7599 = vst [vmem:[#allocation62_spill] sm:$0xff] %v6791_v6  ;;  %v6164_v6 = vld [vmem:[%s6239_s20 + $0x5a8] sm:$0xff]  }
 0x156   : > { %5754 = vmatmul.mubr.msk.bf16.gmra.mrb[160].mxu0 %vm1554_vm2, %v6159_v14  ;;  %5950 = vmatmul.mubr.msk.bf16.gmra.mrb[160].mxu1 %vm1554_vm2, %v6160_v21  ;;  %v6165_v14 = vld [vmem:[%s6239_s20 + $0x2a0] sm:$0xff]  }
 0x157   : > { %5757 = vmatprep.mubr.msk.bf16.mxu0 %vm1554_vm2, %v6161_v38  ;;  %5953 = vmatprep.mubr.msk.bf16.mxu1 %vm1554_vm2, %v6162_v42  ;;  %v6166_v42 = vld [vmem:[%s6239_s20 + $0x5b0] sm:$0xff]  }
 0x159   : > { %v6797_v30 = vpop.f32.mrb[56].mxu0  ;;  %v6799_v58 = vpop.f32.mrb[56].mxu1 }
 0x15a   : > { %7600 = vst [vmem:[#allocation63_spill] sm:$0xff] %v6797_v30  ;;  %7601 = vst [vmem:[#allocation64_spill] sm:$0xff] %v6799_v58  ;;  %v6801_v50 = vpop.f32.mrb[57].mxu0  ;;  %v6804_v29 = vpop.f32.mrb[57].mxu1 }
 0x15b   : > { %7602 = vst [vmem:[#allocation65_spill] sm:$0xff] %v6801_v50  ;;  %7603 = vst [vmem:[#allocation66_spill] sm:$0xff] %v6804_v29  ;;  %v6806_v17 = vpop.f32.mrb[58].mxu0  ;;  %v6810_v21 = vpop.f32.mrb[58].mxu1 }
 0x15c   : > { %7604 = vst [vmem:[#allocation67_spill] sm:$0xff] %v6806_v17  ;;  %7605 = vst [vmem:[#allocation68_spill] sm:$0xff] %v6810_v21  ;;  %v6812_v38 = vpop.f32.mrb[59].mxu0  ;;  %v6815_v30 = vpop.f32.mrb[59].mxu1  ;;  %v6167_v21 = vld [vmem:[%s6239_s20 + $0x2a8] sm:$0xff]  }
 0x15d   : > { %7606 = vst [vmem:[#allocation69_spill] sm:$0xff] %v6812_v38  ;;  %7607 = vst [vmem:[#allocation70_spill] sm:$0xff] %v6815_v30  ;;  %v6168_v30 = vld [vmem:[%s6239_s20 + $0x5b8] sm:$0xff]  }
 0x15e   : > { %5758 = vmatmul.mubr.msk.bf16.gmra.mrb[164].mxu0 %vm1554_vm2, %v6163_v33  ;;  %5954 = vmatmul.mubr.msk.bf16.gmra.mrb[164].mxu1 %vm1554_vm2, %v6164_v6  ;;  %v6169_v33 = vld [vmem:[%s6239_s20 + $0x2b0] sm:$0xff]  }
 0x15f   : > { %5761 = vmatprep.mubr.msk.bf16.mxu0 %vm1554_vm2, %v6165_v14  ;;  %5957 = vmatprep.mubr.msk.bf16.mxu1 %vm1554_vm2, %v6166_v42  ;;  %v6170_v42 = vld [vmem:[%s6239_s20 + $0x5c0] sm:$0xff]  }
 0x161   : > { %v6821_v17 = vpop.f32.mrb[60].mxu0  ;;  %v6823_v58 = vpop.f32.mrb[60].mxu1 }
 0x162   : > { %7608 = vst [vmem:[#allocation71_spill] sm:$0xff] %v6821_v17  ;;  %7609 = vst [vmem:[#allocation72_spill] sm:$0xff] %v6823_v58  ;;  %v6825_v29 = vpop.f32.mrb[61].mxu0  ;;  %v6828_v38 = vpop.f32.mrb[61].mxu1 }
 0x163   : > { %7610 = vst [vmem:[#allocation73_spill] sm:$0xff] %v6825_v29  ;;  %7611 = vst [vmem:[#allocation74_spill] sm:$0xff] %v6828_v38  ;;  %v6830_v50 = vpop.f32.mrb[62].mxu0  ;;  %v6834_v6 = vpop.f32.mrb[62].mxu1 }
 0x164   : > { %7612 = vst [vmem:[#allocation75_spill] sm:$0xff] %v6830_v50  ;;  %7613 = vst [vmem:[#allocation76_spill] sm:$0xff] %v6834_v6  ;;  %v6836_v14 = vpop.f32.mrb[63].mxu0  ;;  %v6839_v17 = vpop.f32.mrb[63].mxu1  ;;  %v6171_v6 = vld [vmem:[%s6239_s20 + $0x2b8] sm:$0xff]  }
 0x165   : > { %7614 = vst [vmem:[#allocation77_spill] sm:$0xff] %v6836_v14  ;;  %7615 = vst [vmem:[#allocation78_spill] sm:$0xff] %v6839_v17  ;;  %v6172_v17 = vld [vmem:[%s6239_s20 + $0x5c8] sm:$0xff]  }
 0x166   : > { %5762 = vmatmul.mubr.msk.bf16.gmra.mrb[168].mxu0 %vm1554_vm2, %v6167_v21  ;;  %5958 = vmatmul.mubr.msk.bf16.gmra.mrb[168].mxu1 %vm1554_vm2, %v6168_v30  ;;  %v6173_v21 = vld [vmem:[%s6239_s20 + $0x2c0] sm:$0xff]  }
 0x167   : > { %5765 = vmatprep.mubr.msk.bf16.mxu0 %vm1554_vm2, %v6169_v33  ;;  %5961 = vmatprep.mubr.msk.bf16.mxu1 %vm1554_vm2, %v6170_v42  ;;  %v6174_v42 = vld [vmem:[%s6239_s20 + $0x5d0] sm:$0xff]  }
 0x169   : > { %v6845_v50 = vpop.f32.mrb[64].mxu0  ;;  %v6847_v58 = vpop.f32.mrb[64].mxu1 }
 0x16a   : > { %7616 = vst [vmem:[#allocation79_spill] sm:$0xff] %v6845_v50  ;;  %7617 = vst [vmem:[#allocation80_spill] sm:$0xff] %v6847_v58  ;;  %v6849_v38 = vpop.f32.mrb[65].mxu0  ;;  %v6852_v14 = vpop.f32.mrb[65].mxu1 }
 0x16b   : > { %7618 = vst [vmem:[#allocation81_spill] sm:$0xff] %v6849_v38  ;;  %7619 = vst [vmem:[#allocation82_spill] sm:$0xff] %v6852_v14  ;;  %v6854_v29 = vpop.f32.mrb[66].mxu0  ;;  %v6858_v30 = vpop.f32.mrb[66].mxu1 }
 0x16c   : > { %7620 = vst [vmem:[#allocation83_spill] sm:$0xff] %v6854_v29  ;;  %7621 = vst [vmem:[#allocation84_spill] sm:$0xff] %v6858_v30  ;;  %v6860_v33 = vpop.f32.mrb[67].mxu0  ;;  %v6863_v50 = vpop.f32.mrb[67].mxu1  ;;  %v6175_v30 = vld [vmem:[%s6239_s20 + $0x2c8] sm:$0xff]  }
 0x16d   : > { %7622 = vst [vmem:[#allocation85_spill] sm:$0xff] %v6860_v33  ;;  %7623 = vst [vmem:[#allocation86_spill] sm:$0xff] %v6863_v50  ;;  %v6176_v50 = vld [vmem:[%s6239_s20 + $0x5d8] sm:$0xff]  }
 0x16e   : > { %5766 = vmatmul.mubr.msk.bf16.gmra.mrb[172].mxu0 %vm1554_vm2, %v6171_v6  ;;  %5962 = vmatmul.mubr.msk.bf16.gmra.mrb[172].mxu1 %vm1554_vm2, %v6172_v17  ;;  %v6177_v6 = vld [vmem:[%s6239_s20 + $0x2d0] sm:$0xff]  }
 0x16f   : > { %5769 = vmatprep.mubr.msk.bf16.mxu0 %vm1554_vm2, %v6173_v21  ;;  %5965 = vmatprep.mubr.msk.bf16.mxu1 %vm1554_vm2, %v6174_v42  ;;  %v6178_v42 = vld [vmem:[%s6239_s20 + $0x5e0] sm:$0xff]  }
 0x171   : > { %v6869_v29 = vpop.f32.mrb[68].mxu0  ;;  %v6871_v58 = vpop.f32.mrb[68].mxu1 }
 0x172   : > { %7624 = vst [vmem:[#allocation87_spill] sm:$0xff] %v6869_v29  ;;  %7625 = vst [vmem:[#allocation88_spill] sm:$0xff] %v6871_v58  ;;  %v6873_v14 = vpop.f32.mrb[69].mxu0  ;;  %v6876_v33 = vpop.f32.mrb[69].mxu1 }
 0x173   : > { %7626 = vst [vmem:[#allocation89_spill] sm:$0xff] %v6873_v14  ;;  %7627 = vst [vmem:[#allocation90_spill] sm:$0xff] %v6876_v33  ;;  %v6878_v38 = vpop.f32.mrb[70].mxu0  ;;  %v6882_v17 = vpop.f32.mrb[70].mxu1 }
 0x174   : > { %7628 = vst [vmem:[#allocation91_spill] sm:$0xff] %v6878_v38  ;;  %7629 = vst [vmem:[#allocation92_spill] sm:$0xff] %v6882_v17  ;;  %v6884_v21 = vpop.f32.mrb[71].mxu0  ;;  %v6887_v29 = vpop.f32.mrb[71].mxu1  ;;  %v6179_v17 = vld [vmem:[%s6239_s20 + $0x2d8] sm:$0xff]  }
 0x175   : > { %7630 = vst [vmem:[#allocation93_spill] sm:$0xff] %v6884_v21  ;;  %7631 = vst [vmem:[#allocation94_spill] sm:$0xff] %v6887_v29  ;;  %v6180_v29 = vld [vmem:[%s6239_s20 + $0x5e8] sm:$0xff]  }
 0x176   : > { %5770 = vmatmul.mubr.msk.bf16.gmra.mrb[176].mxu0 %vm1554_vm2, %v6175_v30  ;;  %5966 = vmatmul.mubr.msk.bf16.gmra.mrb[176].mxu1 %vm1554_vm2, %v6176_v50  ;;  %v6181_v30 = vld [vmem:[%s6239_s20 + $0x2e0] sm:$0xff]  }
 0x177   : > { %5773 = vmatprep.mubr.msk.bf16.mxu0 %vm1554_vm2, %v6177_v6  ;;  %5969 = vmatprep.mubr.msk.bf16.mxu1 %vm1554_vm2, %v6178_v42  ;;  %v6182_v42 = vld [vmem:[%s6239_s20 + $0x5f0] sm:$0xff]  }
 0x179   : > { %v6893_v38 = vpop.f32.mrb[72].mxu0  ;;  %v6895_v58 = vpop.f32.mrb[72].mxu1 }
 0x17a   : > { %7632 = vst [vmem:[#allocation95_spill] sm:$0xff] %v6893_v38  ;;  %7633 = vst [vmem:[#allocation96_spill] sm:$0xff] %v6895_v58  ;;  %v6897_v33 = vpop.f32.mrb[73].mxu0  ;;  %v6900_v21 = vpop.f32.mrb[73].mxu1 }
 0x17b   : > { %7634 = vst [vmem:[#allocation97_spill] sm:$0xff] %v6897_v33  ;;  %7635 = vst [vmem:[#allocation98_spill] sm:$0xff] %v6900_v21  ;;  %v6902_v14 = vpop.f32.mrb[74].mxu0  ;;  %v6906_v50 = vpop.f32.mrb[74].mxu1 }
 0x17c   : > { %7636 = vst [vmem:[#allocation99_spill] sm:$0xff] %v6902_v14  ;;  %7637 = vst [vmem:[#allocation100_spill] sm:$0xff] %v6906_v50  ;;  %v6908_v6 = vpop.f32.mrb[75].mxu0  ;;  %v6911_v38 = vpop.f32.mrb[75].mxu1  ;;  %v6183_v50 = vld [vmem:[%s6239_s20 + $0x2e8] sm:$0xff]  }
 0x17d   : > { %7638 = vst [vmem:[#allocation101_spill] sm:$0xff] %v6908_v6  ;;  %7639 = vst [vmem:[#allocation102_spill] sm:$0xff] %v6911_v38  ;;  %v6184_v38 = vld [vmem:[%s6239_s20 + $0x5f8] sm:$0xff]  }
 0x17e   : > { %5774 = vmatmul.mubr.msk.bf16.gmra.mrb[180].mxu0 %vm1554_vm2, %v6179_v17  ;;  %5970 = vmatmul.mubr.msk.bf16.gmra.mrb[180].mxu1 %vm1554_vm2, %v6180_v29  ;;  %v6185_v17 = vld [vmem:[%s6239_s20 + $0x2f0] sm:$0xff]  }
 0x17f   : > { %5777 = vmatprep.mubr.msk.bf16.mxu0 %vm1554_vm2, %v6181_v30  ;;  %5973 = vmatprep.mubr.msk.bf16.mxu1 %vm1554_vm2, %v6182_v42  ;;  %v6186_v42 = vld [vmem:[%s6239_s20 + $0x600] sm:$0xff]  }
 0x181   : > { %v6917_v14 = vpop.f32.mrb[76].mxu0  ;;  %v6919_v58 = vpop.f32.mrb[76].mxu1 }
 0x182   : > { %7640 = vst [vmem:[#allocation103_spill] sm:$0xff] %v6917_v14  ;;  %7641 = vst [vmem:[#allocation104_spill] sm:$0xff] %v6919_v58  ;;  %v6921_v21 = vpop.f32.mrb[77].mxu0  ;;  %v6924_v6 = vpop.f32.mrb[77].mxu1 }
 0x183   : > { %7642 = vst [vmem:[#allocation105_spill] sm:$0xff] %v6921_v21  ;;  %7643 = vst [vmem:[#allocation106_spill] sm:$0xff] %v6924_v6  ;;  %v6926_v33 = vpop.f32.mrb[78].mxu0  ;;  %v6930_v29 = vpop.f32.mrb[78].mxu1 }
 0x184   : > { %7644 = vst [vmem:[#allocation107_spill] sm:$0xff] %v6926_v33  ;;  %7645 = vst [vmem:[#allocation108_spill] sm:$0xff] %v6930_v29  ;;  %v6932_v30 = vpop.f32.mrb[79].mxu0  ;;  %v6935_v14 = vpop.f32.mrb[79].mxu1  ;;  %v6187_v29 = vld [vmem:[%s6239_s20 + $0x2f8] sm:$0xff]  }
 0x185   : > { %7646 = vst [vmem:[#allocation109_spill] sm:$0xff] %v6932_v30  ;;  %7647 = vst [vmem:[#allocation110_spill] sm:$0xff] %v6935_v14  ;;  %v6188_v14 = vld [vmem:[%s6239_s20 + $0x608] sm:$0xff]  }
 0x186   : > { %5778 = vmatmul.mubr.msk.bf16.gmra.mrb[184].mxu0 %vm1554_vm2, %v6183_v50  ;;  %5974 = vmatmul.mubr.msk.bf16.gmra.mrb[184].mxu1 %vm1554_vm2, %v6184_v38  ;;  %v6189_v50 = vld [vmem:[%s6239_s20 + $0x300] sm:$0xff]  }
 0x187   : > { %5781 = vmatprep.mubr.msk.bf16.mxu0 %vm1554_vm2, %v6185_v17  ;;  %5977 = vmatprep.mubr.msk.bf16.mxu1 %vm1554_vm2, %v6186_v42  ;;  %v6190_v42 = vld [vmem:[%s6239_s20 + $0x610] sm:$0xff]  }
 0x189   : > { %v6941_v33 = vpop.f32.mrb[80].mxu0  ;;  %v6943_v58 = vpop.f32.mrb[80].mxu1 }
 0x18a   : > { %7648 = vst [vmem:[#allocation111_spill] sm:$0xff] %v6941_v33  ;;  %7649 = vst [vmem:[#allocation112_spill] sm:$0xff] %v6943_v58  ;;  %v6945_v6 = vpop.f32.mrb[81].mxu0  ;;  %v6948_v30 = vpop.f32.mrb[81].mxu1 }
 0x18b   : > { %7650 = vst [vmem:[#allocation113_spill] sm:$0xff] %v6945_v6  ;;  %7651 = vst [vmem:[#allocation114_spill] sm:$0xff] %v6948_v30  ;;  %v6950_v21 = vpop.f32.mrb[82].mxu0  ;;  %v6954_v38 = vpop.f32.mrb[82].mxu1 }
 0x18c   : > { %7652 = vst [vmem:[#allocation115_spill] sm:$0xff] %v6950_v21  ;;  %7653 = vst [vmem:[#allocation116_spill] sm:$0xff] %v6954_v38  ;;  %v6956_v17 = vpop.f32.mrb[83].mxu0  ;;  %v6959_v61 = vpop.f32.mrb[83].mxu1  ;;  %v6191_v38 = vld [vmem:[%s6239_s20 + $0x308] sm:$0xff]  }
 0x18d   : > { %7654 = vst [vmem:[#allocation117_spill] sm:$0xff] %v6956_v17  ;;  %7655 = vst [vmem:[#allocation118_spill] sm:$0xff] %v6959_v61  ;;  %v6192_v61 = vld [vmem:[%s6239_s20 + $0x618] sm:$0xff]  }
 0x18e   : > { %5782 = vmatmul.mubr.msk.bf16.gmra.mrb[188].mxu0 %vm1554_vm2, %v6187_v29  ;;  %5978 = vmatmul.mubr.msk.bf16.gmra.mrb[188].mxu1 %vm1554_vm2, %v6188_v14 }
 0x18f   : > { %5785 = vmatprep.mubr.msk.bf16.mxu0 %vm1554_vm2, %v6189_v50  ;;  %5981 = vmatprep.mubr.msk.bf16.mxu1 %vm1554_vm2, %v6190_v42 }
 0x191   : > { %v6965_v58 = vpop.f32.mrb[84].mxu0  ;;  %v6967_v21 = vpop.f32.mrb[84].mxu1 }
 0x192   : > { %7656 = vst [vmem:[#allocation119_spill] sm:$0xff] %v6965_v58  ;;  %7657 = vst [vmem:[#allocation120_spill] sm:$0xff] %v6967_v21  ;;  %v6969_v33 = vpop.f32.mrb[85].mxu0  ;;  %v6972_v30 = vpop.f32.mrb[85].mxu1 }
 0x193   : > { %7658 = vst [vmem:[#allocation121_spill] sm:$0xff] %v6969_v33  ;;  %7659 = vst [vmem:[#allocation122_spill] sm:$0xff] %v6972_v30  ;;  %v6974_v17 = vpop.f32.mrb[86].mxu0  ;;  %v6977_v6 = vpop.f32.mrb[86].mxu1 }
 0x194   : > { %7660 = vst [vmem:[#allocation123_spill] sm:$0xff] %v6974_v17  ;;  %7661 = vst [vmem:[#allocation124_spill] sm:$0xff] %v6977_v6  ;;  %v6979_v29 = vpop.f32.mrb[87].mxu0  ;;  %v6981_v14 = vpop.f32.mrb[87].mxu1 }
 0x195   : > { %7662 = vst [vmem:[#allocation125_spill] sm:$0xff] %v6979_v29  ;;  %7663 = vst [vmem:[#allocation126_spill] sm:$0xff] %v6981_v14 }
 0x196   : > { %5786 = vmatmul.mubr.msk.bf16.gmra.mrb[192].mxu0 %vm1554_vm2, %v6191_v38  ;;  %5982 = vmatmul.mubr.msk.bf16.gmra.mrb[192].mxu1 %vm1554_vm2, %v6192_v61 }
 0x199   : > { %v6985_v50 = vpop.f32.mrb[88].mxu0  ;;  %v6987_v42 = vpop.f32.mrb[88].mxu1 }
 0x19a   : > { %7664 = vst [vmem:[#allocation127_spill] sm:$0xff] %v6985_v50  ;;  %7665 = vst [vmem:[#allocation128_spill] sm:$0xff] %v6987_v42  ;;  %v6989_v21 = vpop.f32.mrb[89].mxu0  ;;  %v6991_v58 = vpop.f32.mrb[89].mxu1 }
 0x19b   : > { %7666 = vst [vmem:[#allocation129_spill] sm:$0xff] %v6989_v21  ;;  %7667 = vst [vmem:[#allocation130_spill] sm:$0xff] %v6991_v58  ;;  %v6993_v17 = vpop.f32.mrb[90].mxu0  ;;  %v6995_v6 = vpop.f32.mrb[90].mxu1 }
 0x19c   : > { %7668 = vst [vmem:[#allocation131_spill] sm:$0xff] %v6993_v17  ;;  %7669 = vst [vmem:[#allocation132_spill] sm:$0xff] %v6995_v6  ;;  %v6997_v29 = vpop.f32.mrb[91].mxu0  ;;  %v6999_v14 = vpop.f32.mrb[91].mxu1 }
 0x19d   : > { %7670 = vst [vmem:[#allocation133_spill] sm:$0xff] %v6997_v29  ;;  %7671 = vst [vmem:[#allocation134_spill] sm:$0xff] %v6999_v14 }
 0x1a1   : > { %v7001_v30 = vpop.f32.mrb[92].mxu0  ;;  %v7003_v38 = vpop.f32.mrb[92].mxu1 }
 0x1a2   : > { %7672 = vst [vmem:[#allocation135_spill] sm:$0xff] %v7001_v30  ;;  %7673 = vst [vmem:[#allocation136_spill] sm:$0xff] %v7003_v38  ;;  %v7005_v61 = vpop.f32.mrb[93].mxu0  ;;  %v7007_v50 = vpop.f32.mrb[93].mxu1 }
 0x1a3   : > { %7674 = vst [vmem:[#allocation137_spill] sm:$0xff] %v7005_v61  ;;  %7675 = vst [vmem:[#allocation138_spill] sm:$0xff] %v7007_v50  ;;  %v7009_v42 = vpop.f32.mrb[94].mxu0  ;;  %v7013_v58 = vpop.f32.mrb[94].mxu1 }
 0x1a4   : > { %7676 = vst [vmem:[#allocation139_spill] sm:$0xff] %v7009_v42  ;;  %7677 = vst [vmem:[#allocation140_spill] sm:$0xff] %v7013_v58  ;;  %v7015_v17 = vpop.f32.mrb[95].mxu0  ;;  %v7017_v6 = vpop.f32.mrb[95].mxu1  ;;  %v7028_v58 = vld [vmem:[%s7537_s2] ss:$0 sm:$0xff] }
 0x1a5   : > { %7678 = vst [vmem:[#allocation141_spill] sm:$0xff] %v7015_v17  ;;  %7679 = vst [vmem:[#allocation142_spill] sm:$0xff] %v7017_v6 }
 0x1a9   : > { %v5691_v14 = vpop.f32.mrb[96].mxu0  ;;  %v5887_v29 = vpop.f32.mrb[96].mxu1 }
 0x1aa   : > { %v3751_v30 = vmax.f32 %v6465_v53, %v5691_v14  ;;  %v7020_v38 = vpop.f32.mrb[97].mxu0  ;;  %v3849_v50 = vmax.f32 %v6468_v55, %v5887_v29  ;;  %v7023_v61 = vpop.f32.mrb[97].mxu1 }
 0x1ab   : > { %7680 = vst [vmem:[#allocation143_spill] sm:$0xff] %v7020_v38  ;;  %7681 = vst [vmem:[#allocation144_spill] sm:$0xff] %v7023_v61  ;;  %v5692_v42 = vpop.f32.mrb[98].mxu0  ;;  %v5888_v17 = vpop.f32.mrb[98].mxu1 }
 0x1ac   : > { %v3752_v6 = vmax.f32 %v6476_v60, %v5692_v42  ;;  %v7031_v21 = vpop.f32.mrb[99].mxu0  ;;  %v3947_v53 = vmax.f32 %v3751_v30, %v3849_v50  ;;  %v3850_v14 = vmax.f32 %v6479_v62, %v5888_v17  ;;  %v7034_v38 = vpop.f32.mrb[99].mxu1 }
 0x1ad   : > { %7682 = vst [vmem:[#allocation145_spill] sm:$0xff] %v7031_v21  ;;  %7683 = vst [vmem:[#allocation146_spill] sm:$0xff] %v7034_v38 }
 0x1ae   : > { %v4052_v55 = vadd.f32 %v7028_v58, %v3947_v53  ;;  %v3948_v29 = vmax.f32 %v3752_v6, %v3850_v14 }
 0x1b0   : > { %v4150_v61 = vmax.f32 %v4052_v55, 0.0  ;;  %v4053_v33 = vadd.f32 %v7028_v58, %v3948_v29 }
 0x1b1   : > { %v5695_v2 = vpop.f32.mrb[100].mxu0  ;;  %v5891_v62 = vpop.f32.mrb[100].mxu1 }
 0x1b2   : > { %v3755_v60 = vmax.f32 %v6489_v1, %v5695_v2  ;;  %v2584_v30 = vpop.f32.mrb[101].mxu0  ;;  %v5296_v17 = vpack.c.bf16 %v4150_v61, %v4150_v61  ;;  %v4151_v50 = vmax.f32 %v4053_v33, 0.0  ;;  %v3853_v42 = vmax.f32 %v6492_v3, %v5891_v62  ;;  %v3368_v53 = vpop.f32.mrb[101].mxu1 }
 0x1b3   : > { %v3753_v6 = vmax.f32 %v6461_v51, %v2584_v30  ;;  %v5696_v14 = vpop.f32.mrb[102].mxu0  ;;  %v3851_v55 = vmax.f32 %v6463_v52, %v3368_v53  ;;  %v5892_v38 = vpop.f32.mrb[102].mxu1 }
 0x1b4   : > { %v3756_v29 = vmax.f32 %v6500_v8, %v5696_v14  ;;  %v2587_v21 = vpop.f32.mrb[103].mxu0  ;;  %4641 = vst.msk [vmem:[%s7041_s27] sm:$0xf] %vm4640_vm3, %v5296_v17  ;;  %v5297_v1 = vpack.c.bf16 %v4151_v50, %v4151_v50  ;;  %v3951_v2 = vmax.f32 %v3755_v60, %v3853_v42  ;;  %v3854_v61 = vmax.f32 %v6503_v10, %v5892_v38  ;;  %v3371_v3 = vpop.f32.mrb[103].mxu1 }
 0x1b5   : > { %v3754_v33 = vmax.f32 %v6470_v56, %v2587_v21  ;;  %v3949_v62 = vmax.f32 %v3753_v6, %v3851_v55  ;;  %v3852_v51 = vmax.f32 %v6474_v59, %v3371_v3 }
 0x1b6   : > { %4642 = vst.msk [vmem:[%s7041_s27 + $0x4] sm:$0xf] %vm4640_vm3, %v5297_v1  ;;  %v4056_v52 = vadd.f32 %v7028_v58, %v3951_v2  ;;  %v3952_v30 = vmax.f32 %v3756_v29, %v3854_v61 }
 0x1b7   : > { %v4054_v8 = vadd.f32 %v7028_v58, %v3949_v62  ;;  %v3950_v53 = vmax.f32 %v3754_v33, %v3852_v51 }
 0x1b8   : > { %v4154_v14 = vmax.f32 %v4056_v52, 0.0  ;;  %v4057_v17 = vadd.f32 %v7028_v58, %v3952_v30 }
 0x1b9   : > { %v5699_v60 = vpop.f32.mrb[104].mxu0  ;;  %v4152_v50 = vmax.f32 %v4054_v8, 0.0  ;;  %v4055_v10 = vadd.f32 %v7028_v58, %v3950_v53  ;;  %v5895_v21 = vpop.f32.mrb[104].mxu1 }
 0x1ba   : > { %v3759_v56 = vmax.f32 %v6513_v13, %v5699_v60  ;;  %v2600_v59 = vpop.f32.mrb[105].mxu0  ;;  %v5300_v38 = vpack.c.bf16 %v4154_v14, %v4154_v14  ;;  %v4155_v42 = vmax.f32 %v4057_v17, 0.0  ;;  %v3857_v6 = vmax.f32 %v6516_v15, %v5895_v21  ;;  %v3384_v29 = vpop.f32.mrb[105].mxu1 }
 0x1bb   : > { %v3757_v55 = vmax.f32 %v6485_v63, %v2600_v59  ;;  %v5700_v1 = vpop.f32.mrb[106].mxu0  ;;  %v5298_v2 = vpack.c.bf16 %v4152_v50, %v4152_v50  ;;  %v4153_v61 = vmax.f32 %v4055_v10, 0.0  ;;  %v3855_v33 = vmax.f32 %v6487_v0, %v3384_v29  ;;  %v5896_v13 = vpop.f32.mrb[106].mxu1 }
 0x1bc   : > { %v3760_v3 = vmax.f32 %v6524_v20, %v5700_v1  ;;  %v2603_v62 = vpop.f32.mrb[107].mxu0  ;;  %4645 = vst.msk [vmem:[%s7041_s27 + $0x10] sm:$0xf] %vm4640_vm3, %v5300_v38  ;;  %v5301_v51 = vpack.c.bf16 %v4155_v42, %v4155_v42  ;;  %v3955_v52 = vmax.f32 %v3759_v56, %v3857_v6  ;;  %v3858_v15 = vmax.f32 %v6527_v22, %v5896_v13  ;;  %v3387_v30 = vpop.f32.mrb[107].mxu1 }
 0x1bd   : > { %v3758_v63 = vmax.f32 %v6494_v4, %v2603_v62  ;;  %4643 = vst.msk [vmem:[%s7041_s27 + $0x8] sm:$0xf] %vm4640_vm3, %v5298_v2  ;;  %v5299_v8 = vpack.c.bf16 %v4153_v61, %v4153_v61  ;;  %v3953_v53 = vmax.f32 %v3757_v55, %v3855_v33  ;;  %v3856_v0 = vmax.f32 %v6498_v7, %v3387_v30 }
 0x1be   : > { %4646 = vst.msk [vmem:[%s7041_s27 + $0x14] sm:$0xf] %vm4640_vm3, %v5301_v51  ;;  %v4060_v20 = vadd.f32 %v7028_v58, %v3955_v52  ;;  %v3956_v14 = vmax.f32 %v3760_v3, %v3858_v15 }
 0x1bf   : > { %4644 = vst.msk [vmem:[%s7041_s27 + $0xc] sm:$0xf] %vm4640_vm3, %v5299_v8  ;;  %v4058_v17 = vadd.f32 %v7028_v58, %v3953_v53  ;;  %v3954_v60 = vmax.f32 %v3758_v63, %v3856_v0 }
 0x1c0   : > { %v4158_v22 = vmax.f32 %v4060_v20, 0.0  ;;  %v4061_v4 = vadd.f32 %v7028_v58, %v3956_v14 }
 0x1c1   : > { %v5703_v50 = vpop.f32.mrb[108].mxu0  ;;  %v4156_v10 = vmax.f32 %v4058_v17, 0.0  ;;  %v4059_v56 = vadd.f32 %v7028_v58, %v3954_v60  ;;  %v5899_v21 = vpop.f32.mrb[108].mxu1 }
 0x1c2   : > { %v3763_v7 = vmax.f32 %v6537_v25, %v5703_v50  ;;  %v2616_v59 = vpop.f32.mrb[109].mxu0  ;;  %v5304_v38 = vpack.c.bf16 %v4158_v22, %v4158_v22  ;;  %v4159_v42 = vmax.f32 %v4061_v4, 0.0  ;;  %v3861_v6 = vmax.f32 %v6540_v27, %v5899_v21  ;;  %v3400_v29 = vpop.f32.mrb[109].mxu1 }
 0x1c3   : > { %v3761_v55 = vmax.f32 %v6509_v11, %v2616_v59  ;;  %v5704_v1 = vpop.f32.mrb[110].mxu0  ;;  %v5302_v2 = vpack.c.bf16 %v4156_v10, %v4156_v10  ;;  %v4157_v61 = vmax.f32 %v4059_v56, 0.0  ;;  %v3859_v33 = vmax.f32 %v6511_v12, %v3400_v29  ;;  %v5900_v25 = vpop.f32.mrb[110].mxu1 }
 0x1c4   : > { %v3764_v3 = vmax.f32 %v6548_v32, %v5704_v1  ;;  %v2619_v13 = vpop.f32.mrb[111].mxu0  ;;  %4649 = vst.msk [vmem:[%s7041_s27 + $0x20] sm:$0xf] %vm4640_vm3, %v5304_v38  ;;  %v5305_v62 = vpack.c.bf16 %v4159_v42, %v4159_v42  ;;  %v3959_v51 = vmax.f32 %v3763_v7, %v3861_v6  ;;  %v3862_v27 = vmax.f32 %v6551_v34, %v5900_v25  ;;  %v3403_v52 = vpop.f32.mrb[111].mxu1 }
 0x1c5   : > { %v3762_v11 = vmax.f32 %v6518_v16, %v2619_v13  ;;  %4647 = vst.msk [vmem:[%s7041_s27 + $0x18] sm:$0xf] %vm4640_vm3, %v5302_v2  ;;  %v5303_v15 = vpack.c.bf16 %v4157_v61, %v4157_v61  ;;  %v3957_v63 = vmax.f32 %v3761_v55, %v3859_v33  ;;  %v3860_v12 = vmax.f32 %v6522_v19, %v3403_v52 }
 0x1c6   : > { %4650 = vst.msk [vmem:[%s7041_s27 + $0x24] sm:$0xf] %vm4640_vm3, %v5305_v62  ;;  %v4064_v32 = vadd.f32 %v7028_v58, %v3959_v51  ;;  %v3960_v30 = vmax.f32 %v3764_v3, %v3862_v27 }
 0x1c7   : > { %4648 = vst.msk [vmem:[%s7041_s27 + $0x1c] sm:$0xf] %vm4640_vm3, %v5303_v15  ;;  %v4062_v8 = vadd.f32 %v7028_v58, %v3957_v63  ;;  %v3958_v53 = vmax.f32 %v3762_v11, %v3860_v12 }
 0x1c8   : > { %v4162_v34 = vmax.f32 %v4064_v32, 0.0  ;;  %v4065_v16 = vadd.f32 %v7028_v58, %v3960_v30 }
 0x1c9   : > { %v5707_v0 = vpop.f32.mrb[112].mxu0  ;;  %v4160_v20 = vmax.f32 %v4062_v8, 0.0  ;;  %v4063_v14 = vadd.f32 %v7028_v58, %v3958_v53  ;;  %v5903_v17 = vpop.f32.mrb[112].mxu1 }
 0x1ca   : > { %v3767_v19 = vmax.f32 %v6561_v37, %v5707_v0  ;;  %v2632_v60 = vpop.f32.mrb[113].mxu0  ;;  %v5308_v22 = vpack.c.bf16 %v4162_v34, %v4162_v34  ;;  %v4163_v4 = vmax.f32 %v4065_v16, 0.0  ;;  %v3865_v50 = vmax.f32 %v6564_v39, %v5903_v17  ;;  %v3416_v56 = vpop.f32.mrb[113].mxu1 }
 0x1cb   : > { %v3765_v10 = vmax.f32 %v6533_v23, %v2632_v60  ;;  %v5708_v7 = vpop.f32.mrb[114].mxu0  ;;  %v5306_v21 = vpack.c.bf16 %v4160_v20, %v4160_v20  ;;  %v4161_v59 = vmax.f32 %v4063_v14, 0.0  ;;  %v3863_v38 = vmax.f32 %v6535_v24, %v3416_v56  ;;  %v5904_v37 = vpop.f32.mrb[114].mxu1 }
 0x1cc   : > { %v3768_v42 = vmax.f32 %v6572_v44, %v5708_v7  ;;  %v2635_v6 = vpop.f32.mrb[115].mxu0  ;;  %4653 = vst.msk [vmem:[%s7041_s27 + $0x30] sm:$0xf] %vm4640_vm3, %v5308_v22  ;;  %v5309_v55 = vpack.c.bf16 %v4163_v4, %v4163_v4  ;;  %v3963_v29 = vmax.f32 %v3767_v19, %v3865_v50  ;;  %v3866_v39 = vmax.f32 %v6575_v46, %v5904_v37  ;;  %v3419_v1 = vpop.f32.mrb[115].mxu1 }
 0x1cd   : > { %v3766_v23 = vmax.f32 %v6542_v28, %v2635_v6  ;;  %4651 = vst.msk [vmem:[%s7041_s27 + $0x28] sm:$0xf] %vm4640_vm3, %v5306_v21  ;;  %v5307_v2 = vpack.c.bf16 %v4161_v59, %v4161_v59  ;;  %v3961_v61 = vmax.f32 %v3765_v10, %v3863_v38  ;;  %v3864_v24 = vmax.f32 %v6546_v31, %v3419_v1 }
 0x1ce   : > { %4654 = vst.msk [vmem:[%s7041_s27 + $0x34] sm:$0xf] %vm4640_vm3, %v5309_v55  ;;  %v4068_v44 = vadd.f32 %v7028_v58, %v3963_v29  ;;  %v3964_v33 = vmax.f32 %v3768_v42, %v3866_v39 }
 0x1cf   : > { %4652 = vst.msk [vmem:[%s7041_s27 + $0x2c] sm:$0xf] %vm4640_vm3, %v5307_v2  ;;  %v4066_v3 = vadd.f32 %v7028_v58, %v3961_v61  ;;  %v3962_v25 = vmax.f32 %v3766_v23, %v3864_v24 }
 0x1d0   : > { %v4166_v46 = vmax.f32 %v4068_v44, 0.0  ;;  %v4069_v28 = vadd.f32 %v7028_v58, %v3964_v33 }
 0x1d1   : > { %v5711_v13 = vpop.f32.mrb[116].mxu0  ;;  %v4164_v62 = vmax.f32 %v4066_v3, 0.0  ;;  %v4067_v51 = vadd.f32 %v7028_v58, %v3962_v25  ;;  %v5907_v27 = vpop.f32.mrb[116].mxu1 }
 0x1d2   : > { %v3771_v31 = vmax.f32 %v6585_v49, %v5711_v13  ;;  %v2648_v11 = vpop.f32.mrb[117].mxu0  ;;  %v5312_v52 = vpack.c.bf16 %v4166_v46, %v4166_v46  ;;  %v4167_v15 = vmax.f32 %v4069_v28, 0.0  ;;  %v3869_v63 = vmax.f32 %v6588_v54, %v5907_v27  ;;  %v3432_v32 = vpop.f32.mrb[117].mxu1  ;;  %v7684_v46 = vld [vmem:[#allocation2_spill] sm:$0xff] }
 0x1d3   : > { %v3769_v12 = vmax.f32 %v6557_v35, %v2648_v11  ;;  %v5712_v30 = vpop.f32.mrb[118].mxu0  ;;  %v5310_v8 = vpack.c.bf16 %v4164_v62, %v4164_v62  ;;  %v4165_v53 = vmax.f32 %v4067_v51, 0.0  ;;  %v3867_v34 = vmax.f32 %v6559_v36, %v3432_v32  ;;  %v5908_v49 = vpop.f32.mrb[118].mxu1  ;;  %v7685_v11 = vld [vmem:[#allocation9_spill] sm:$0xff] }
 0x1d4   : > { %v3772_v16 = vmax.f32 %v6596_v5, %v5712_v30  ;;  %v2651_v0 = vpop.f32.mrb[119].mxu0  ;;  %4657 = vst.msk [vmem:[%s7041_s27 + $0x40] sm:$0xf] %vm4640_vm3, %v5312_v52  ;;  %v5313_v20 = vpack.c.bf16 %v4167_v15, %v4167_v15  ;;  %v3967_v14 = vmax.f32 %v3771_v31, %v3869_v63  ;;  %v3870_v54 = vmax.f32 %v6599_v9, %v5908_v49  ;;  %v3435_v19 = vpop.f32.mrb[119].mxu1  ;;  %v7686_v30 = vld [vmem:[#allocation10_spill] sm:$0xff] }
 0x1d5   : > { %v3770_v35 = vmax.f32 %v6566_v40, %v2651_v0  ;;  %4655 = vst.msk [vmem:[%s7041_s27 + $0x38] sm:$0xf] %vm4640_vm3, %v5310_v8  ;;  %v5311_v17 = vpack.c.bf16 %v4165_v53, %v4165_v53  ;;  %v3965_v60 = vmax.f32 %v3769_v12, %v3867_v34  ;;  %v3868_v36 = vmax.f32 %v6570_v43, %v3435_v19  ;;  %v7687_v53 = vld [vmem:[#allocation3_spill] sm:$0xff] }
 0x1d6   : > { %4658 = vst.msk [vmem:[%s7041_s27 + $0x44] sm:$0xf] %vm4640_vm3, %v5313_v20  ;;  %v4072_v5 = vadd.f32 %v7028_v58, %v3967_v14  ;;  %v3968_v22 = vmax.f32 %v3772_v16, %v3870_v54  ;;  %v7688_v14 = vld [vmem:[#allocation4_spill] sm:$0xff] }
 0x1d7   : > { %4656 = vst.msk [vmem:[%s7041_s27 + $0x3c] sm:$0xf] %vm4640_vm3, %v5311_v17  ;;  %v4070_v4 = vadd.f32 %v7028_v58, %v3965_v60  ;;  %v3966_v50 = vmax.f32 %v3770_v35, %v3868_v36  ;;  %v7689_v35 = vld [vmem:[#allocation13_spill] sm:$0xff] }
 0x1d8   : > { %v4170_v9 = vmax.f32 %v4072_v5, 0.0  ;;  %v4073_v40 = vadd.f32 %v7028_v58, %v3968_v22  ;;  %v7690_v22 = vld [vmem:[#allocation14_spill] sm:$0xff] }
 0x1d9   : > { %v5715_v10 = vpop.f32.mrb[120].mxu0  ;;  %v4168_v56 = vmax.f32 %v4070_v4, 0.0  ;;  %v4071_v7 = vadd.f32 %v7028_v58, %v3966_v50  ;;  %v5911_v21 = vpop.f32.mrb[120].mxu1  ;;  %v7691_v50 = vld [vmem:[#allocation5_spill] sm:$0xff] }
 0x1da   : > { %v3775_v43 = vmax.f32 %v6609_v18, %v5715_v10  ;;  %v2664_v59 = vpop.f32.mrb[121].mxu0  ;;  %v5316_v38 = vpack.c.bf16 %v4170_v9, %v4170_v9  ;;  %v4171_v42 = vmax.f32 %v4073_v40, 0.0  ;;  %v3873_v37 = vmax.f32 %v6612_v26, %v5911_v21  ;;  %v3448_v55 = vpop.f32.mrb[121].mxu1 }
 0x1db   : > { %v3773_v6 = vmax.f32 %v6581_v47, %v2664_v59  ;;  %v5716_v29 = vpop.f32.mrb[122].mxu0  ;;  %v5314_v39 = vpack.c.bf16 %v4168_v56, %v4168_v56  ;;  %v4169_v23 = vmax.f32 %v4071_v7, 0.0  ;;  %v3871_v1 = vmax.f32 %v6583_v48, %v3448_v55  ;;  %v5912_v18 = vpop.f32.mrb[122].mxu1  ;;  %v7692_v7 = vld [vmem:[#allocation6_spill] sm:$0xff] }
 0x1dc   : > { %v3776_v2 = vmax.f32 %v6620_v41, %v5716_v29  ;;  %v2667_v61 = vpop.f32.mrb[123].mxu0  ;;  %4661 = vst.msk [vmem:[%s7041_s27 + $0x50] sm:$0xf] %vm4640_vm3, %v5316_v38  ;;  %v5317_v24 = vpack.c.bf16 %v4171_v42, %v4171_v42  ;;  %v3971_v44 = vmax.f32 %v3775_v43, %v3873_v37  ;;  %v3874_v26 = vmax.f32 %v6623_v45, %v5912_v18  ;;  %v3451_v33 = vpop.f32.mrb[123].mxu1 }
 0x1dd   : > { %v3774_v47 = vmax.f32 %v6590_v57, %v2667_v61  ;;  %4659 = vst.msk [vmem:[%s7041_s27 + $0x48] sm:$0xf] %vm4640_vm3, %v5314_v39  ;;  %v5315_v3 = vpack.c.bf16 %v4169_v23, %v4169_v23  ;;  %v3969_v25 = vmax.f32 %v3773_v6, %v3871_v1  ;;  %v3872_v48 = vmax.f32 %v7684_v46, %v3451_v33  ;;  %v7693_v23 = vld [vmem:[#allocation17_spill] sm:$0xff] }
 0x1de   : > { %4662 = vst.msk [vmem:[%s7041_s27 + $0x54] sm:$0xf] %vm4640_vm3, %v5317_v24  ;;  %v4076_v41 = vadd.f32 %v7028_v58, %v3971_v44  ;;  %v3972_v28 = vmax.f32 %v3776_v2, %v3874_v26  ;;  %v7694_v44 = vld [vmem:[#allocation18_spill] sm:$0xff] }
 0x1df   : > { %4660 = vst.msk [vmem:[%s7041_s27 + $0x4c] sm:$0xf] %vm4640_vm3, %v5315_v3  ;;  %v4074_v13 = vadd.f32 %v7028_v58, %v3969_v25  ;;  %v3970_v62 = vmax.f32 %v3774_v47, %v3872_v48  ;;  %v7695_v47 = vld [vmem:[#allocation7_spill] sm:$0xff] }
 0x1e0   : > { %v4174_v45 = vmax.f32 %v4076_v41, 0.0  ;;  %v4077_v57 = vadd.f32 %v7028_v58, %v3972_v28  ;;  %v7696_v41 = vld [vmem:[#allocation8_spill] sm:$0xff] }
 0x1e1   : > { %v5719_v51 = vpop.f32.mrb[124].mxu0  ;;  %v4172_v31 = vmax.f32 %v4074_v13, 0.0  ;;  %v4075_v27 = vadd.f32 %v7028_v58, %v3970_v62  ;;  %v5915_v15 = vpop.f32.mrb[124].mxu1  ;;  %v7697_v13 = vld [vmem:[#allocation21_spill] sm:$0xff] }
 0x1e2   : > { %v3779_v52 = vmax.f32 %v7685_v11, %v5719_v51  ;;  %v2680_v63 = vpop.f32.mrb[125].mxu0  ;;  %v5320_v12 = vpack.c.bf16 %v4174_v45, %v4174_v45  ;;  %v4175_v32 = vmax.f32 %v4077_v57, 0.0  ;;  %v3877_v8 = vmax.f32 %v7686_v30, %v5915_v15  ;;  %v3464_v16 = vpop.f32.mrb[125].mxu1  ;;  %v7700_v30 = vld [vmem:[#allocation12_spill] sm:$0xff] }
 0x1e3   : > { %v3777_v34 = vmax.f32 %v7687_v53, %v2680_v63  ;;  %v5720_v49 = vpop.f32.mrb[126].mxu0  ;;  %v5318_v0 = vpack.c.bf16 %v4172_v31, %v4172_v31  ;;  %v4173_v20 = vmax.f32 %v4075_v27, 0.0  ;;  %v3875_v54 = vmax.f32 %v7688_v14, %v3464_v16  ;;  %v5916_v17 = vpop.f32.mrb[126].mxu1  ;;  %v7698_v27 = vld [vmem:[#allocation22_spill] sm:$0xff] }
 0x1e4   : > { %v3780_v19 = vmax.f32 %v7689_v35, %v5720_v49  ;;  %v2683_v60 = vpop.f32.mrb[127].mxu0  ;;  %4665 = vst.msk [vmem:[%s7041_s27 + $0x60] sm:$0xf] %vm4640_vm3, %v5320_v12  ;;  %v5321_v36 = vpack.c.bf16 %v4175_v32, %v4175_v32  ;;  %v3975_v5 = vmax.f32 %v3779_v52, %v3877_v8  ;;  %v3878_v4 = vmax.f32 %v7690_v22, %v5916_v17  ;;  %v3467_v40 = vpop.f32.mrb[127].mxu1  ;;  %v7699_v52 = vld [vmem:[#allocation11_spill] sm:$0xff] }
 0x1e5   : > { %v3778_v9 = vmax.f32 %v7691_v50, %v2683_v60  ;;  %4663 = vst.msk [vmem:[%s7041_s27 + $0x58] sm:$0xf] %vm4640_vm3, %v5318_v0  ;;  %v5319_v10 = vpack.c.bf16 %v4173_v20, %v4173_v20  ;;  %v3973_v56 = vmax.f32 %v3777_v34, %v3875_v54  ;;  %v3876_v43 = vmax.f32 %v7692_v7, %v3467_v40 }
 0x1e6   : > { %4666 = vst.msk [vmem:[%s7041_s27 + $0x64] sm:$0xf] %vm4640_vm3, %v5321_v36  ;;  %v4080_v21 = vadd.f32 %v7028_v58, %v3975_v5  ;;  %v3976_v59 = vmax.f32 %v3780_v19, %v3878_v4  ;;  %v7701_v19 = vld [vmem:[#allocation25_spill] sm:$0xff]  ;;  %v7702_v4 = vld [vmem:[#allocation26_spill] sm:$0xff] }
 0x1e7   : > { %4664 = vst.msk [vmem:[%s7041_s27 + $0x5c] sm:$0xf] %vm4640_vm3, %v5319_v10  ;;  %v4078_v38 = vadd.f32 %v7028_v58, %v3973_v56  ;;  %v3974_v42 = vmax.f32 %v3778_v9, %v3876_v43  ;;  %v7703_v9 = vld [vmem:[#allocation15_spill] sm:$0xff] }
 0x1e8   : > { %v4178_v37 = vmax.f32 %v4080_v21, 0.0  ;;  %v4081_v6 = vadd.f32 %v7028_v58, %v3976_v59  ;;  %v7704_v21 = vld [vmem:[#allocation16_spill] sm:$0xff] }
 0x1e9   : > { %v5723_v55 = vpop.f32.mrb[128].mxu0  ;;  %v4176_v29 = vmax.f32 %v4078_v38, 0.0  ;;  %v4079_v39 = vadd.f32 %v7028_v58, %v3974_v42  ;;  %v5919_v2 = vpop.f32.mrb[128].mxu1  ;;  %v7705_v38 = vld [vmem:[#allocation29_spill] sm:$0xff] }
 0x1ea   : > { %v3783_v1 = vmax.f32 %v7693_v23, %v5723_v55  ;;  %v2696_v18 = vpop.f32.mrb[129].mxu0  ;;  %v5324_v61 = vpack.c.bf16 %v4178_v37, %v4178_v37  ;;  %v4179_v24 = vmax.f32 %v4081_v6, 0.0  ;;  %v3881_v26 = vmax.f32 %v7694_v44, %v5919_v2  ;;  %v3480_v3 = vpop.f32.mrb[129].mxu1  ;;  %v7708_v44 = vld [vmem:[#allocation20_spill] sm:$0xff] }
 0x1eb   : > { %v3781_v33 = vmax.f32 %v7695_v47, %v2696_v18  ;;  %v5724_v25 = vpop.f32.mrb[130].mxu0  ;;  %v5322_v46 = vpack.c.bf16 %v4176_v29, %v4176_v29  ;;  %v4177_v48 = vmax.f32 %v4079_v39, 0.0  ;;  %v3879_v28 = vmax.f32 %v7696_v41, %v3480_v3  ;;  %v5920_v45 = vpop.f32.mrb[130].mxu1  ;;  %v7706_v39 = vld [vmem:[#allocation30_spill] sm:$0xff] }
 0x1ec   : > { %v3784_v62 = vmax.f32 %v7697_v13, %v5724_v25  ;;  %v2699_v57 = vpop.f32.mrb[131].mxu0  ;;  %4669 = vst.msk [vmem:[%s7041_s27 + $0x70] sm:$0xf] %vm4640_vm3, %v5324_v61  ;;  %v5325_v51 = vpack.c.bf16 %v4179_v24, %v4179_v24  ;;  %v3979_v31 = vmax.f32 %v3783_v1, %v3881_v26  ;;  %v3882_v11 = vmax.f32 %v7698_v27, %v5920_v45  ;;  %v3483_v63 = vpop.f32.mrb[131].mxu1  ;;  %v7707_v1 = vld [vmem:[#allocation19_spill] sm:$0xff] }
 0x1ed   : > { %v3782_v15 = vmax.f32 %v7699_v52, %v2699_v57  ;;  %4667 = vst.msk [vmem:[%s7041_s27 + $0x68] sm:$0xf] %vm4640_vm3, %v5322_v46  ;;  %v5323_v12 = vpack.c.bf16 %v4177_v48, %v4177_v48  ;;  %v3977_v32 = vmax.f32 %v3781_v33, %v3879_v28  ;;  %v3880_v8 = vmax.f32 %v7700_v30, %v3483_v63 }
 0x1ee   : > { %4670 = vst.msk [vmem:[%s7041_s27 + $0x74] sm:$0xf] %vm4640_vm3, %v5325_v51  ;;  %v4084_v53 = vadd.f32 %v7028_v58, %v3979_v31  ;;  %v3980_v34 = vmax.f32 %v3784_v62, %v3882_v11  ;;  %v7709_v62 = vld [vmem:[#allocation33_spill] sm:$0xff]  ;;  %v7710_v11 = vld [vmem:[#allocation34_spill] sm:$0xff] }
 0x1ef   : > { %4668 = vst.msk [vmem:[%s7041_s27 + $0x6c] sm:$0xf] %vm4640_vm3, %v5323_v12  ;;  %v4082_v16 = vadd.f32 %v7028_v58, %v3977_v32  ;;  %v3978_v49 = vmax.f32 %v3782_v15, %v3880_v8  ;;  %v7711_v15 = vld [vmem:[#allocation23_spill] sm:$0xff] }
 0x1f0   : > { %v4182_v0 = vmax.f32 %v4084_v53, 0.0  ;;  %v4085_v20 = vadd.f32 %v7028_v58, %v3980_v34  ;;  %v7712_v53 = vld [vmem:[#allocation24_spill] sm:$0xff] }
 0x1f1   : > { %v5727_v14 = vpop.f32.mrb[132].mxu0  ;;  %v4180_v54 = vmax.f32 %v4082_v16, 0.0  ;;  %v4083_v35 = vadd.f32 %v7028_v58, %v3978_v49  ;;  %v5923_v60 = vpop.f32.mrb[132].mxu1  ;;  %v7713_v16 = vld [vmem:[#allocation37_spill] sm:$0xff] }
 0x1f2   : > { %v3787_v17 = vmax.f32 %v7701_v19, %v5727_v14  ;;  %v2712_v36 = vpop.f32.mrb[133].mxu0  ;;  %v5328_v5 = vpack.c.bf16 %v4182_v0, %v4182_v0  ;;  %v4183_v22 = vmax.f32 %v4085_v20, 0.0  ;;  %v3885_v50 = vmax.f32 %v7702_v4, %v5923_v60  ;;  %v3496_v10 = vpop.f32.mrb[133].mxu1  ;;  %v7716_v4 = vld [vmem:[#allocation28_spill] sm:$0xff] }
 0x1f3   : > { %v3785_v40 = vmax.f32 %v7703_v9, %v2712_v36  ;;  %v5728_v56 = vpop.f32.mrb[134].mxu0  ;;  %v5326_v7 = vpack.c.bf16 %v4180_v54, %v4180_v54  ;;  %v4181_v43 = vmax.f32 %v4083_v35, 0.0  ;;  %v3883_v59 = vmax.f32 %v7704_v21, %v3496_v10  ;;  %v5924_v37 = vpop.f32.mrb[134].mxu1  ;;  %v7714_v35 = vld [vmem:[#allocation38_spill] sm:$0xff] }
 0x1f4   : > { %v3788_v42 = vmax.f32 %v7705_v38, %v5728_v56  ;;  %v2715_v6 = vpop.f32.mrb[135].mxu0  ;;  %4673 = vst.msk [vmem:[%s7041_s27 + $0x80] sm:$0xf] %vm4640_vm3, %v5328_v5  ;;  %v5329_v55 = vpack.c.bf16 %v4183_v22, %v4183_v22  ;;  %v3983_v29 = vmax.f32 %v3787_v17, %v3885_v50  ;;  %v3886_v23 = vmax.f32 %v7706_v39, %v5924_v37  ;;  %v3499_v18 = vpop.f32.mrb[135].mxu1  ;;  %v7715_v17 = vld [vmem:[#allocation27_spill] sm:$0xff] }
 0x1f5   : > { %v3786_v2 = vmax.f32 %v7707_v1, %v2715_v6  ;;  %4671 = vst.msk [vmem:[%s7041_s27 + $0x78] sm:$0xf] %vm4640_vm3, %v5326_v7  ;;  %v5327_v61 = vpack.c.bf16 %v4181_v43, %v4181_v43  ;;  %v3981_v24 = vmax.f32 %v3785_v40, %v3883_v59  ;;  %v3884_v26 = vmax.f32 %v7708_v44, %v3499_v18 }
 0x1f6   : > { %4674 = vst.msk [vmem:[%s7041_s27 + $0x84] sm:$0xf] %vm4640_vm3, %v5329_v55  ;;  %v4088_v47 = vadd.f32 %v7028_v58, %v3983_v29  ;;  %v3984_v33 = vmax.f32 %v3788_v42, %v3886_v23  ;;  %v7717_v42 = vld [vmem:[#allocation41_spill] sm:$0xff]  ;;  %v7718_v23 = vld [vmem:[#allocation42_spill] sm:$0xff] }
 0x1f7   : > { %4672 = vst.msk [vmem:[%s7041_s27 + $0x7c] sm:$0xf] %vm4640_vm3, %v5327_v61  ;;  %v4086_v3 = vadd.f32 %v7028_v58, %v3981_v24  ;;  %v3982_v25 = vmax.f32 %v3786_v2, %v3884_v26  ;;  %v7719_v2 = vld [vmem:[#allocation31_spill] sm:$0xff] }
 0x1f8   : > { %v4186_v46 = vmax.f32 %v4088_v47, 0.0  ;;  %v4089_v48 = vadd.f32 %v7028_v58, %v3984_v33  ;;  %v7720_v47 = vld [vmem:[#allocation32_spill] sm:$0xff] }
 0x1f9   : > { %v5731_v41 = vpop.f32.mrb[136].mxu0  ;;  %v4184_v28 = vmax.f32 %v4086_v3, 0.0  ;;  %v4087_v13 = vadd.f32 %v7028_v58, %v3982_v25  ;;  %v5927_v57 = vpop.f32.mrb[136].mxu1  ;;  %v7721_v3 = vld [vmem:[#allocation45_spill] sm:$0xff] }
 0x1fa   : > { %v3791_v45 = vmax.f32 %v7709_v62, %v5731_v41  ;;  %v2728_v51 = vpop.f32.mrb[137].mxu0  ;;  %v5332_v31 = vpack.c.bf16 %v4186_v46, %v4186_v46  ;;  %v4187_v27 = vmax.f32 %v4089_v48, 0.0  ;;  %v3889_v52 = vmax.f32 %v7710_v11, %v5927_v57  ;;  %v3512_v12 = vpop.f32.mrb[137].mxu1  ;;  %v7724_v11 = vld [vmem:[#allocation36_spill] sm:$0xff] }
 0x1fb   : > { %v3789_v63 = vmax.f32 %v7711_v15, %v2728_v51  ;;  %v5732_v32 = vpop.f32.mrb[138].mxu0  ;;  %v5330_v30 = vpack.c.bf16 %v4184_v28, %v4184_v28  ;;  %v4185_v8 = vmax.f32 %v4087_v13, 0.0  ;;  %v3887_v34 = vmax.f32 %v7712_v53, %v3512_v12  ;;  %v5928_v0 = vpop.f32.mrb[138].mxu1  ;;  %v7722_v13 = vld [vmem:[#allocation46_spill] sm:$0xff] }
 0x1fc   : > { %v3792_v49 = vmax.f32 %v7713_v16, %v5732_v32  ;;  %v2731_v20 = vpop.f32.mrb[139].mxu0  ;;  %4677 = vst.msk [vmem:[%s7041_s27 + $0x90] sm:$0xf] %vm4640_vm3, %v5332_v31  ;;  %v5333_v14 = vpack.c.bf16 %v4187_v27, %v4187_v27  ;;  %v3987_v54 = vmax.f32 %v3791_v45, %v3889_v52  ;;  %v3890_v19 = vmax.f32 %v7714_v35, %v5928_v0  ;;  %v3515_v36 = vpop.f32.mrb[139].mxu1  ;;  %v7723_v45 = vld [vmem:[#allocation35_spill] sm:$0xff] }
 0x1fd   : > { %v3790_v60 = vmax.f32 %v7715_v17, %v2731_v20  ;;  %4675 = vst.msk [vmem:[%s7041_s27 + $0x88] sm:$0xf] %vm4640_vm3, %v5330_v30  ;;  %v5331_v5 = vpack.c.bf16 %v4185_v8, %v4185_v8  ;;  %v3985_v22 = vmax.f32 %v3789_v63, %v3887_v34  ;;  %v3888_v50 = vmax.f32 %v7716_v4, %v3515_v36 }
 0x1fe   : > { %4678 = vst.msk [vmem:[%s7041_s27 + $0x94] sm:$0xf] %vm4640_vm3, %v5333_v14  ;;  %v4092_v9 = vadd.f32 %v7028_v58, %v3987_v54  ;;  %v3988_v40 = vmax.f32 %v3792_v49, %v3890_v19  ;;  %v7725_v49 = vld [vmem:[#allocation49_spill] sm:$0xff]  ;;  %v7726_v19 = vld [vmem:[#allocation50_spill] sm:$0xff] }
 0x1ff   : > { %4676 = vst.msk [vmem:[%s7041_s27 + $0x8c] sm:$0xf] %vm4640_vm3, %v5331_v5  ;;  %v4090_v10 = vadd.f32 %v7028_v58, %v3985_v22  ;;  %v3986_v56 = vmax.f32 %v3790_v60, %v3888_v50  ;;  %v7727_v60 = vld [vmem:[#allocation39_spill] sm:$0xff] }
 0x200   : > { %v4190_v7 = vmax.f32 %v4092_v9, 0.0  ;;  %v4093_v43 = vadd.f32 %v7028_v58, %v3988_v40  ;;  %v7728_v9 = vld [vmem:[#allocation40_spill] sm:$0xff] }
 0x201   : > { %v5735_v21 = vpop.f32.mrb[140].mxu0  ;;  %v4188_v59 = vmax.f32 %v4090_v10, 0.0  ;;  %v4091_v38 = vadd.f32 %v7028_v58, %v3986_v56  ;;  %v5931_v6 = vpop.f32.mrb[140].mxu1  ;;  %v7729_v10 = vld [vmem:[#allocation53_spill] sm:$0xff] }
 0x202   : > { %v3795_v37 = vmax.f32 %v7717_v42, %v5735_v21  ;;  %v2744_v55 = vpop.f32.mrb[141].mxu0  ;;  %v5336_v29 = vpack.c.bf16 %v4190_v7, %v4190_v7  ;;  %v4191_v39 = vmax.f32 %v4093_v43, 0.0  ;;  %v3893_v1 = vmax.f32 %v7718_v23, %v5931_v6  ;;  %v3528_v61 = vpop.f32.mrb[141].mxu1  ;;  %v7732_v23 = vld [vmem:[#allocation44_spill] sm:$0xff] }
 0x203   : > { %v3793_v18 = vmax.f32 %v7719_v2, %v2744_v55  ;;  %v5736_v24 = vpop.f32.mrb[142].mxu0  ;;  %v5334_v44 = vpack.c.bf16 %v4188_v59, %v4188_v59  ;;  %v4189_v26 = vmax.f32 %v4091_v38, 0.0  ;;  %v3891_v33 = vmax.f32 %v7720_v47, %v3528_v61  ;;  %v5932_v46 = vpop.f32.mrb[142].mxu1  ;;  %v7730_v38 = vld [vmem:[#allocation54_spill] sm:$0xff] }
 0x204   : > { %v3796_v25 = vmax.f32 %v7721_v3, %v5736_v24  ;;  %v2747_v48 = vpop.f32.mrb[143].mxu0  ;;  %4681 = vst.msk [vmem:[%s7041_s27 + $0xa0] sm:$0xf] %vm4640_vm3, %v5336_v29  ;;  %v5337_v41 = vpack.c.bf16 %v4191_v39, %v4191_v39  ;;  %v3991_v28 = vmax.f32 %v3795_v37, %v3893_v1  ;;  %v3894_v62 = vmax.f32 %v7722_v13, %v5932_v46  ;;  %v3531_v51 = vpop.f32.mrb[143].mxu1  ;;  %v7731_v37 = vld [vmem:[#allocation43_spill] sm:$0xff] }
 0x205   : > { %v3794_v57 = vmax.f32 %v7723_v45, %v2747_v48  ;;  %4679 = vst.msk [vmem:[%s7041_s27 + $0x98] sm:$0xf] %vm4640_vm3, %v5334_v44  ;;  %v5335_v31 = vpack.c.bf16 %v4189_v26, %v4189_v26  ;;  %v3989_v27 = vmax.f32 %v3793_v18, %v3891_v33  ;;  %v3892_v52 = vmax.f32 %v7724_v11, %v3531_v51 }
 0x206   : > { %4682 = vst.msk [vmem:[%s7041_s27 + $0xa4] sm:$0xf] %vm4640_vm3, %v5337_v41  ;;  %v4096_v15 = vadd.f32 %v7028_v58, %v3991_v28  ;;  %v3992_v63 = vmax.f32 %v3796_v25, %v3894_v62  ;;  %v7733_v25 = vld [vmem:[#allocation57_spill] sm:$0xff]  ;;  %v7734_v62 = vld [vmem:[#allocation58_spill] sm:$0xff] }
 0x207   : > { %4680 = vst.msk [vmem:[%s7041_s27 + $0x9c] sm:$0xf] %vm4640_vm3, %v5335_v31  ;;  %v4094_v12 = vadd.f32 %v7028_v58, %v3989_v27  ;;  %v3990_v32 = vmax.f32 %v3794_v57, %v3892_v52  ;;  %v7735_v57 = vld [vmem:[#allocation47_spill] sm:$0xff] }
 0x208   : > { %v4194_v30 = vmax.f32 %v4096_v15, 0.0  ;;  %v4097_v8 = vadd.f32 %v7028_v58, %v3992_v63  ;;  %v7736_v15 = vld [vmem:[#allocation48_spill] sm:$0xff] }
 0x209   : > { %v5739_v53 = vpop.f32.mrb[144].mxu0  ;;  %v4192_v34 = vmax.f32 %v4094_v12, 0.0  ;;  %v4095_v16 = vadd.f32 %v7028_v58, %v3990_v32  ;;  %v5935_v20 = vpop.f32.mrb[144].mxu1  ;;  %v7737_v12 = vld [vmem:[#allocation61_spill] sm:$0xff] }
 0x20a   : > { %v3799_v0 = vmax.f32 %v7725_v49, %v5739_v53  ;;  %v2760_v14 = vpop.f32.mrb[145].mxu0  ;;  %v5340_v54 = vpack.c.bf16 %v4194_v30, %v4194_v30  ;;  %v4195_v35 = vmax.f32 %v4097_v8, 0.0  ;;  %v3897_v17 = vmax.f32 %v7726_v19, %v5935_v20  ;;  %v3544_v5 = vpop.f32.mrb[145].mxu1  ;;  %v7740_v19 = vld [vmem:[#allocation52_spill] sm:$0xff] }
 0x20b   : > { %v3797_v36 = vmax.f32 %v7727_v60, %v2760_v14  ;;  %v5740_v22 = vpop.f32.mrb[146].mxu0  ;;  %v5338_v4 = vpack.c.bf16 %v4192_v34, %v4192_v34  ;;  %v4193_v50 = vmax.f32 %v4095_v16, 0.0  ;;  %v3895_v40 = vmax.f32 %v7728_v9, %v3544_v5  ;;  %v5936_v7 = vpop.f32.mrb[146].mxu1  ;;  %v7738_v16 = vld [vmem:[#allocation62_spill] sm:$0xff] }
 0x20c   : > { %v3800_v56 = vmax.f32 %v7729_v10, %v5740_v22  ;;  %v2763_v43 = vpop.f32.mrb[147].mxu0  ;;  %4685 = vst.msk [vmem:[%s7041_s27 + $0xb0] sm:$0xf] %vm4640_vm3, %v5340_v54  ;;  %v5341_v21 = vpack.c.bf16 %v4195_v35, %v4195_v35  ;;  %v3995_v59 = vmax.f32 %v3799_v0, %v3897_v17  ;;  %v3898_v42 = vmax.f32 %v7730_v38, %v5936_v7  ;;  %v3547_v55 = vpop.f32.mrb[147].mxu1  ;;  %v7739_v0 = vld [vmem:[#allocation51_spill] sm:$0xff] }
 0x20d   : > { %v3798_v6 = vmax.f32 %v7731_v37, %v2763_v43  ;;  %4683 = vst.msk [vmem:[%s7041_s27 + $0xa8] sm:$0xf] %vm4640_vm3, %v5338_v4  ;;  %v5339_v29 = vpack.c.bf16 %v4193_v50, %v4193_v50  ;;  %v3993_v39 = vmax.f32 %v3797_v36, %v3895_v40  ;;  %v3896_v1 = vmax.f32 %v7732_v23, %v3547_v55 }
 0x20e   : > { %4686 = vst.msk [vmem:[%s7041_s27 + $0xb4] sm:$0xf] %vm4640_vm3, %v5341_v21  ;;  %v4100_v2 = vadd.f32 %v7028_v58, %v3995_v59  ;;  %v3996_v18 = vmax.f32 %v3800_v56, %v3898_v42  ;;  %v7741_v56 = vld [vmem:[#allocation65_spill] sm:$0xff]  ;;  %v7742_v42 = vld [vmem:[#allocation66_spill] sm:$0xff] }
 0x20f   : > { %4684 = vst.msk [vmem:[%s7041_s27 + $0xac] sm:$0xf] %vm4640_vm3, %v5339_v29  ;;  %v4098_v61 = vadd.f32 %v7028_v58, %v3993_v39  ;;  %v3994_v24 = vmax.f32 %v3798_v6, %v3896_v1  ;;  %v7743_v6 = vld [vmem:[#allocation55_spill] sm:$0xff] }
 0x210   : > { %v4198_v44 = vmax.f32 %v4100_v2, 0.0  ;;  %v4101_v26 = vadd.f32 %v7028_v58, %v3996_v18  ;;  %v7744_v2 = vld [vmem:[#allocation56_spill] sm:$0xff] }
 0x211   : > { %v5743_v47 = vpop.f32.mrb[148].mxu0  ;;  %v4196_v33 = vmax.f32 %v4098_v61, 0.0  ;;  %v4099_v3 = vadd.f32 %v7028_v58, %v3994_v24  ;;  %v5939_v48 = vpop.f32.mrb[148].mxu1  ;;  %v7745_v61 = vld [vmem:[#allocation69_spill] sm:$0xff] }
 0x212   : > { %v3803_v46 = vmax.f32 %v7733_v25, %v5743_v47  ;;  %v2776_v41 = vpop.f32.mrb[149].mxu0  ;;  %v5344_v28 = vpack.c.bf16 %v4198_v44, %v4198_v44  ;;  %v4199_v13 = vmax.f32 %v4101_v26, 0.0  ;;  %v3901_v45 = vmax.f32 %v7734_v62, %v5939_v48  ;;  %v3560_v31 = vpop.f32.mrb[149].mxu1  ;;  %v7748_v62 = vld [vmem:[#allocation60_spill] sm:$0xff] }
 0x213   : > { %v3801_v51 = vmax.f32 %v7735_v57, %v2776_v41  ;;  %v5744_v27 = vpop.f32.mrb[150].mxu0  ;;  %v5342_v11 = vpack.c.bf16 %v4196_v33, %v4196_v33  ;;  %v4197_v52 = vmax.f32 %v4099_v3, 0.0  ;;  %v3899_v63 = vmax.f32 %v7736_v15, %v3560_v31  ;;  %v5940_v30 = vpop.f32.mrb[150].mxu1  ;;  %v7746_v3 = vld [vmem:[#allocation70_spill] sm:$0xff] }
 0x214   : > { %v3804_v32 = vmax.f32 %v7737_v12, %v5744_v27  ;;  %v2779_v8 = vpop.f32.mrb[151].mxu0  ;;  %4689 = vst.msk [vmem:[%s7041_s27 + $0xc0] sm:$0xf] %vm4640_vm3, %v5344_v28  ;;  %v5345_v53 = vpack.c.bf16 %v4199_v13, %v4199_v13  ;;  %v3999_v34 = vmax.f32 %v3803_v46, %v3901_v45  ;;  %v3902_v49 = vmax.f32 %v7738_v16, %v5940_v30  ;;  %v3563_v14 = vpop.f32.mrb[151].mxu1  ;;  %v7747_v46 = vld [vmem:[#allocation59_spill] sm:$0xff]  ;;  %v7749_v30 = vld [vmem:[#allocation73_spill] sm:$0xff] }
 0x215   : > { %v3802_v20 = vmax.f32 %v7739_v0, %v2779_v8  ;;  %4687 = vst.msk [vmem:[%s7041_s27 + $0xb8] sm:$0xf] %vm4640_vm3, %v5342_v11  ;;  %v5343_v54 = vpack.c.bf16 %v4197_v52, %v4197_v52  ;;  %v3997_v35 = vmax.f32 %v3801_v51, %v3899_v63  ;;  %v3900_v17 = vmax.f32 %v7740_v19, %v3563_v14  ;;  %v7321_v12 = vld [vmem:[%s7537_s2] ss:$0 sm:$0xff]  ;;  %v7751_v14 = vld [vmem:[#allocation63_spill] sm:$0xff] }
 0x216   : > { %4690 = vst.msk [vmem:[%s7041_s27 + $0xc4] sm:$0xf] %vm4640_vm3, %v5345_v53  ;;  %v4104_v60 = vadd.f32 %v7028_v58, %v3999_v34  ;;  %v4000_v36 = vmax.f32 %v3804_v32, %v3902_v49  ;;  %v7750_v0 = vld [vmem:[#allocation74_spill] sm:$0xff] }
 0x217   : > { %4688 = vst.msk [vmem:[%s7041_s27 + $0xbc] sm:$0xf] %vm4640_vm3, %v5343_v54  ;;  %v4102_v5 = vadd.f32 %v7028_v58, %v3997_v35  ;;  %v3998_v22 = vmax.f32 %v3802_v20, %v3900_v17 }
 0x218   : > { %v4202_v4 = vmax.f32 %v4104_v60, 0.0  ;;  %v4105_v50 = vadd.f32 %v7028_v58, %v4000_v36  ;;  %v7752_v60 = vld [vmem:[#allocation64_spill] sm:$0xff] }
 0x219   : > { %v5747_v9 = vpop.f32.mrb[152].mxu0  ;;  %v4200_v40 = vmax.f32 %v4102_v5, 0.0  ;;  %v4103_v10 = vadd.f32 %v7028_v58, %v3998_v22  ;;  %v5943_v43 = vpop.f32.mrb[152].mxu1  ;;  %v7753_v5 = vld [vmem:[#allocation77_spill] sm:$0xff] }
 0x21a   : > { %v3807_v7 = vmax.f32 %v7741_v56, %v5747_v9  ;;  %v2792_v21 = vpop.f32.mrb[153].mxu0  ;;  %v5348_v59 = vpack.c.bf16 %v4202_v4, %v4202_v4  ;;  %v4203_v38 = vmax.f32 %v4105_v50, 0.0  ;;  %v3905_v37 = vmax.f32 %v7742_v42, %v5943_v43  ;;  %v3576_v29 = vpop.f32.mrb[153].mxu1  ;;  %v7756_v42 = vld [vmem:[#allocation68_spill] sm:$0xff] }
 0x21b   : > { %v3805_v55 = vmax.f32 %v7743_v6, %v2792_v21  ;;  %v5748_v39 = vpop.f32.mrb[154].mxu0  ;;  %v5346_v23 = vpack.c.bf16 %v4200_v40, %v4200_v40  ;;  %v4201_v1 = vmax.f32 %v4103_v10, 0.0  ;;  %v3903_v18 = vmax.f32 %v7744_v2, %v3576_v29  ;;  %v5944_v44 = vpop.f32.mrb[154].mxu1  ;;  %v7754_v10 = vld [vmem:[#allocation78_spill] sm:$0xff] }
 0x21c   : > { %v3808_v24 = vmax.f32 %v7745_v61, %v5748_v39  ;;  %v2795_v26 = vpop.f32.mrb[155].mxu0  ;;  %4693 = vst.msk [vmem:[%s7041_s27 + $0xd0] sm:$0xf] %vm4640_vm3, %v5348_v59  ;;  %v5349_v47 = vpack.c.bf16 %v4203_v38, %v4203_v38  ;;  %v4003_v33 = vmax.f32 %v3807_v7, %v3905_v37  ;;  %v3906_v25 = vmax.f32 %v7746_v3, %v5944_v44  ;;  %v3579_v41 = vpop.f32.mrb[155].mxu1  ;;  %v7755_v7 = vld [vmem:[#allocation67_spill] sm:$0xff] }
 0x21d   : > { %v3806_v48 = vmax.f32 %v7747_v46, %v2795_v26  ;;  %4691 = vst.msk [vmem:[%s7041_s27 + $0xc8] sm:$0xf] %vm4640_vm3, %v5346_v23  ;;  %v5347_v28 = vpack.c.bf16 %v4201_v1, %v4201_v1  ;;  %v4001_v13 = vmax.f32 %v3805_v55, %v3903_v18  ;;  %v3904_v45 = vmax.f32 %v7748_v62, %v3579_v41 }
 0x21e   : > { %4694 = vst.msk [vmem:[%s7041_s27 + $0xd4] sm:$0xf] %vm4640_vm3, %v5349_v47  ;;  %v4108_v57 = vadd.f32 %v7028_v58, %v4003_v33  ;;  %v4004_v51 = vmax.f32 %v3808_v24, %v3906_v25  ;;  %v7757_v24 = vld [vmem:[#allocation81_spill] sm:$0xff]  ;;  %v7758_v25 = vld [vmem:[#allocation82_spill] sm:$0xff] }
 0x21f   : > { %4692 = vst.msk [vmem:[%s7041_s27 + $0xcc] sm:$0xf] %vm4640_vm3, %v5347_v28  ;;  %v4106_v31 = vadd.f32 %v7028_v58, %v4001_v13  ;;  %v4002_v27 = vmax.f32 %v3806_v48, %v3904_v45  ;;  %v7759_v48 = vld [vmem:[#allocation71_spill] sm:$0xff] }
 0x220   : > { %v4206_v11 = vmax.f32 %v4108_v57, 0.0  ;;  %v4109_v52 = vadd.f32 %v7028_v58, %v4004_v51  ;;  %v7760_v57 = vld [vmem:[#allocation72_spill] sm:$0xff] }
 0x221   : > { %v5751_v15 = vpop.f32.mrb[156].mxu0  ;;  %v4204_v63 = vmax.f32 %v4106_v31, 0.0  ;;  %v4107_v32 = vadd.f32 %v7321_v12, %v4002_v27  ;;  %v5947_v53 = vpop.f32.mrb[156].mxu1  ;;  %v7761_v31 = vld [vmem:[#allocation85_spill] sm:$0xff] }
 0x222   : > { %v3811_v8 = vmax.f32 %v7749_v30, %v5751_v15  ;;  %v2808_v34 = vpop.f32.mrb[157].mxu0  ;;  %v5352_v16 = vpack.c.bf16 %v4206_v11, %v4206_v11  ;;  %v4207_v49 = vmax.f32 %v4109_v52, 0.0  ;;  %v3909_v20 = vmax.f32 %v7750_v0, %v5947_v53  ;;  %v3592_v54 = vpop.f32.mrb[157].mxu1  ;;  %v7764_v0 = vld [vmem:[#allocation76_spill] sm:$0xff] }
 0x223   : > { %v3809_v58 = vmax.f32 %v7751_v14, %v2808_v34  ;;  %v5752_v35 = vpop.f32.mrb[158].mxu0  ;;  %v5350_v19 = vpack.c.bf16 %v4204_v63, %v4204_v63  ;;  %v4205_v17 = vmax.f32 %v4107_v32, 0.0  ;;  %v3907_v36 = vmax.f32 %v7752_v60, %v3592_v54  ;;  %v5948_v4 = vpop.f32.mrb[158].mxu1  ;;  %v7762_v32 = vld [vmem:[#allocation86_spill] sm:$0xff] }
 0x224   : > { %v3812_v22 = vmax.f32 %v7753_v5, %v5752_v35  ;;  %v2811_v50 = vpop.f32.mrb[159].mxu0  ;;  %4697 = vst.msk [vmem:[%s7041_s27 + $0xe0] sm:$0xf] %vm4640_vm3, %v5352_v16  ;;  %v5353_v9 = vpack.c.bf16 %v4207_v49, %v4207_v49  ;;  %v4007_v40 = vmax.f32 %v3811_v8, %v3909_v20  ;;  %v3910_v56 = vmax.f32 %v7754_v10, %v5948_v4  ;;  %v3595_v21 = vpop.f32.mrb[159].mxu1  ;;  %v7763_v8 = vld [vmem:[#allocation75_spill] sm:$0xff] }
 0x225   : > { %v3810_v43 = vmax.f32 %v7755_v7, %v2811_v50  ;;  %4695 = vst.msk [vmem:[%s7041_s27 + $0xd8] sm:$0xf] %vm4640_vm3, %v5350_v19  ;;  %v5351_v59 = vpack.c.bf16 %v4205_v17, %v4205_v17  ;;  %v4005_v38 = vmax.f32 %v3809_v58, %v3907_v36  ;;  %v3908_v37 = vmax.f32 %v7756_v42, %v3595_v21 }
 0x226   : > { %4698 = vst.msk [vmem:[%s7041_s27 + $0xe4] sm:$0xf] %vm4640_vm3, %v5353_v9  ;;  %v4112_v6 = vadd.f32 %v7321_v12, %v4007_v40  ;;  %v4008_v55 = vmax.f32 %v3812_v22, %v3910_v56  ;;  %v7765_v22 = vld [vmem:[#allocation89_spill] sm:$0xff]  ;;  %v7766_v56 = vld [vmem:[#allocation90_spill] sm:$0xff] }
 0x227   : > { %4696 = vst.msk [vmem:[%s7041_s27 + $0xdc] sm:$0xf] %vm4640_vm3, %v5351_v59  ;;  %v4110_v29 = vadd.f32 %v7321_v12, %v4005_v38  ;;  %v4006_v39 = vmax.f32 %v3810_v43, %v3908_v37  ;;  %v7767_v43 = vld [vmem:[#allocation79_spill] sm:$0xff] }
 0x228   : > { %v4210_v23 = vmax.f32 %v4112_v6, 0.0  ;;  %v4113_v1 = vadd.f32 %v7321_v12, %v4008_v55  ;;  %v7768_v6 = vld [vmem:[#allocation80_spill] sm:$0xff] }
 0x229   : > { %v5755_v2 = vpop.f32.mrb[160].mxu0  ;;  %v4208_v18 = vmax.f32 %v4110_v29, 0.0  ;;  %v4111_v61 = vadd.f32 %v7321_v12, %v4006_v39  ;;  %v5951_v26 = vpop.f32.mrb[160].mxu1  ;;  %v7769_v29 = vld [vmem:[#allocation93_spill] sm:$0xff] }
 0x22a   : > { %v3815_v44 = vmax.f32 %v7757_v24, %v5755_v2  ;;  %v2824_v47 = vpop.f32.mrb[161].mxu0  ;;  %v5356_v33 = vpack.c.bf16 %v4210_v23, %v4210_v23  ;;  %v4211_v3 = vmax.f32 %v4113_v1, 0.0  ;;  %v3913_v46 = vmax.f32 %v7758_v25, %v5951_v26  ;;  %v3608_v28 = vpop.f32.mrb[161].mxu1  ;;  %v7772_v25 = vld [vmem:[#allocation84_spill] sm:$0xff] }
 0x22b   : > { %v3813_v41 = vmax.f32 %v7759_v48, %v2824_v47  ;;  %v5756_v13 = vpop.f32.mrb[162].mxu0  ;;  %v5354_v62 = vpack.c.bf16 %v4208_v18, %v4208_v18  ;;  %v4209_v45 = vmax.f32 %v4111_v61, 0.0  ;;  %v3911_v51 = vmax.f32 %v7760_v57, %v3608_v28  ;;  %v5952_v11 = vpop.f32.mrb[162].mxu1  ;;  %v7770_v61 = vld [vmem:[#allocation94_spill] sm:$0xff] }
 0x22c   : > { %v3816_v27 = vmax.f32 %v7761_v31, %v5756_v13  ;;  %v2827_v52 = vpop.f32.mrb[163].mxu0  ;;  %4701 = vst.msk [vmem:[%s7041_s27 + $0xf0] sm:$0xf] %vm4640_vm3, %v5356_v33  ;;  %v5357_v15 = vpack.c.bf16 %v4211_v3, %v4211_v3  ;;  %v4011_v63 = vmax.f32 %v3815_v44, %v3913_v46  ;;  %v3914_v30 = vmax.f32 %v7762_v32, %v5952_v11  ;;  %v3611_v34 = vpop.f32.mrb[163].mxu1  ;;  %v7771_v44 = vld [vmem:[#allocation83_spill] sm:$0xff] }
 0x22d   : > { %v3814_v53 = vmax.f32 %v7763_v8, %v2827_v52  ;;  %4699 = vst.msk [vmem:[%s7041_s27 + $0xe8] sm:$0xf] %vm4640_vm3, %v5354_v62  ;;  %v5355_v16 = vpack.c.bf16 %v4209_v45, %v4209_v45  ;;  %v4009_v49 = vmax.f32 %v3813_v41, %v3911_v51  ;;  %v3912_v20 = vmax.f32 %v7764_v0, %v3611_v34 }
 0x22e   : > { %4702 = vst.msk [vmem:[%s7041_s27 + $0xf4] sm:$0xf] %vm4640_vm3, %v5357_v15  ;;  %v4116_v14 = vadd.f32 %v7321_v12, %v4011_v63  ;;  %v4012_v58 = vmax.f32 %v3816_v27, %v3914_v30  ;;  %v7773_v27 = vld [vmem:[#allocation97_spill] sm:$0xff]  ;;  %v7774_v30 = vld [vmem:[#allocation98_spill] sm:$0xff] }
 0x22f   : > { %4700 = vst.msk [vmem:[%s7041_s27 + $0xec] sm:$0xf] %vm4640_vm3, %v5355_v16  ;;  %v4114_v54 = vadd.f32 %v7321_v12, %v4009_v49  ;;  %v4010_v35 = vmax.f32 %v3814_v53, %v3912_v20  ;;  %v7775_v53 = vld [vmem:[#allocation87_spill] sm:$0xff] }
 0x230   : > { %v4214_v19 = vmax.f32 %v4116_v14, 0.0  ;;  %v4117_v17 = vadd.f32 %v7321_v12, %v4012_v58  ;;  %v7776_v14 = vld [vmem:[#allocation88_spill] sm:$0xff] }
 0x231   : > { %v5759_v60 = vpop.f32.mrb[164].mxu0  ;;  %v4212_v36 = vmax.f32 %v4114_v54, 0.0  ;;  %v4115_v5 = vadd.f32 %v7321_v12, %v4010_v35  ;;  %v5955_v50 = vpop.f32.mrb[164].mxu1  ;;  %v7777_v54 = vld [vmem:[#allocation101_spill] sm:$0xff] }
 0x232   : > { %v3819_v4 = vmax.f32 %v7765_v22, %v5759_v60  ;;  %v2840_v9 = vpop.f32.mrb[165].mxu0  ;;  %v5360_v40 = vpack.c.bf16 %v4214_v19, %v4214_v19  ;;  %v4215_v10 = vmax.f32 %v4117_v17, 0.0  ;;  %v3917_v7 = vmax.f32 %v7766_v56, %v5955_v50  ;;  %v3624_v59 = vpop.f32.mrb[165].mxu1  ;;  %v7780_v56 = vld [vmem:[#allocation92_spill] sm:$0xff] }
 0x233   : > { %v3817_v21 = vmax.f32 %v7767_v43, %v2840_v9  ;;  %v5760_v38 = vpop.f32.mrb[166].mxu0  ;;  %v5358_v42 = vpack.c.bf16 %v4212_v36, %v4212_v36  ;;  %v4213_v37 = vmax.f32 %v4115_v5, 0.0  ;;  %v3915_v55 = vmax.f32 %v7768_v6, %v3624_v59  ;;  %v5956_v23 = vpop.f32.mrb[166].mxu1  ;;  %v7778_v5 = vld [vmem:[#allocation102_spill] sm:$0xff] }
 0x234   : > { %v3820_v39 = vmax.f32 %v7769_v29, %v5760_v38  ;;  %v2843_v1 = vpop.f32.mrb[167].mxu0  ;;  %4705 = vst.msk [vmem:[%s7041_s27 + $0x100] sm:$0xf] %vm4640_vm3, %v5360_v40  ;;  %v5361_v2 = vpack.c.bf16 %v4215_v10, %v4215_v10  ;;  %v4015_v18 = vmax.f32 %v3819_v4, %v3917_v7  ;;  %v3918_v24 = vmax.f32 %v7770_v61, %v5956_v23  ;;  %v3627_v47 = vpop.f32.mrb[167].mxu1  ;;  %v7779_v4 = vld [vmem:[#allocation91_spill] sm:$0xff] }
 0x235   : > { %v3818_v26 = vmax.f32 %v7771_v44, %v2843_v1  ;;  %4703 = vst.msk [vmem:[%s7041_s27 + $0xf8] sm:$0xf] %vm4640_vm3, %v5358_v42  ;;  %v5359_v33 = vpack.c.bf16 %v4213_v37, %v4213_v37  ;;  %v4013_v3 = vmax.f32 %v3817_v21, %v3915_v55  ;;  %v3916_v46 = vmax.f32 %v7772_v25, %v3627_v47 }
 0x236   : > { %4706 = vst.msk [vmem:[%s7041_s27 + $0x104] sm:$0xf] %vm4640_vm3, %v5361_v2  ;;  %v4120_v48 = vadd.f32 %v7321_v12, %v4015_v18  ;;  %v4016_v41 = vmax.f32 %v3820_v39, %v3918_v24  ;;  %v7781_v39 = vld [vmem:[#allocation105_spill] sm:$0xff]  ;;  %v7782_v24 = vld [vmem:[#allocation106_spill] sm:$0xff] }
 0x237   : > { %4704 = vst.msk [vmem:[%s7041_s27 + $0xfc] sm:$0xf] %vm4640_vm3, %v5359_v33  ;;  %v4118_v28 = vadd.f32 %v7321_v12, %v4013_v3  ;;  %v4014_v13 = vmax.f32 %v3818_v26, %v3916_v46  ;;  %v7783_v26 = vld [vmem:[#allocation95_spill] sm:$0xff] }
 0x238   : > { %v4218_v62 = vmax.f32 %v4120_v48, 0.0  ;;  %v4121_v45 = vadd.f32 %v7321_v12, %v4016_v41  ;;  %v7784_v48 = vld [vmem:[#allocation96_spill] sm:$0xff] }
 0x239   : > { %v5763_v57 = vpop.f32.mrb[168].mxu0  ;;  %v4216_v51 = vmax.f32 %v4118_v28, 0.0  ;;  %v4119_v31 = vadd.f32 %v7321_v12, %v4014_v13  ;;  %v5959_v52 = vpop.f32.mrb[168].mxu1  ;;  %v7785_v28 = vld [vmem:[#allocation109_spill] sm:$0xff] }
 0x23a   : > { %v3823_v11 = vmax.f32 %v7773_v27, %v5763_v57  ;;  %v2856_v15 = vpop.f32.mrb[169].mxu0  ;;  %v5364_v63 = vpack.c.bf16 %v4218_v62, %v4218_v62  ;;  %v4219_v32 = vmax.f32 %v4121_v45, 0.0  ;;  %v3921_v8 = vmax.f32 %v7774_v30, %v5959_v52  ;;  %v3640_v16 = vpop.f32.mrb[169].mxu1  ;;  %v7788_v30 = vld [vmem:[#allocation100_spill] sm:$0xff] }
 0x23b   : > { %v3821_v34 = vmax.f32 %v7775_v53, %v2856_v15  ;;  %v5764_v49 = vpop.f32.mrb[170].mxu0  ;;  %v5362_v0 = vpack.c.bf16 %v4216_v51, %v4216_v51  ;;  %v4217_v20 = vmax.f32 %v4119_v31, 0.0  ;;  %v3919_v58 = vmax.f32 %v7776_v14, %v3640_v16  ;;  %v5960_v19 = vpop.f32.mrb[170].mxu1  ;;  %v7786_v31 = vld [vmem:[#allocation110_spill] sm:$0xff] }
 0x23c   : > { %v3824_v35 = vmax.f32 %v7777_v54, %v5764_v49  ;;  %v2859_v17 = vpop.f32.mrb[171].mxu0  ;;  %4709 = vst.msk [vmem:[%s7041_s27 + $0x110] sm:$0xf] %vm4640_vm3, %v5364_v63  ;;  %v5365_v60 = vpack.c.bf16 %v4219_v32, %v4219_v32  ;;  %v4019_v36 = vmax.f32 %v3823_v11, %v3921_v8  ;;  %v3922_v22 = vmax.f32 %v7778_v5, %v5960_v19  ;;  %v3643_v9 = vpop.f32.mrb[171].mxu1  ;;  %v7787_v11 = vld [vmem:[#allocation99_spill] sm:$0xff] }
 0x23d   : > { %v3822_v50 = vmax.f32 %v7779_v4, %v2859_v17  ;;  %4707 = vst.msk [vmem:[%s7041_s27 + $0x108] sm:$0xf] %vm4640_vm3, %v5362_v0  ;;  %v5363_v40 = vpack.c.bf16 %v4217_v20, %v4217_v20  ;;  %v4017_v10 = vmax.f32 %v3821_v34, %v3919_v58  ;;  %v3920_v7 = vmax.f32 %v7780_v56, %v3643_v9 }
 0x23e   : > { %4710 = vst.msk [vmem:[%s7041_s27 + $0x114] sm:$0xf] %vm4640_vm3, %v5365_v60  ;;  %v4124_v43 = vadd.f32 %v7321_v12, %v4019_v36  ;;  %v4020_v21 = vmax.f32 %v3824_v35, %v3922_v22  ;;  %v7789_v35 = vld [vmem:[#allocation113_spill] sm:$0xff]  ;;  %v7790_v22 = vld [vmem:[#allocation114_spill] sm:$0xff] }
 0x23f   : > { %4708 = vst.msk [vmem:[%s7041_s27 + $0x10c] sm:$0xf] %vm4640_vm3, %v5363_v40  ;;  %v4122_v59 = vadd.f32 %v7321_v12, %v4017_v10  ;;  %v4018_v38 = vmax.f32 %v3822_v50, %v3920_v7  ;;  %v7791_v50 = vld [vmem:[#allocation103_spill] sm:$0xff] }
 0x240   : > { %v4222_v42 = vmax.f32 %v4124_v43, 0.0  ;;  %v4125_v37 = vadd.f32 %v7321_v12, %v4020_v21  ;;  %v7792_v43 = vld [vmem:[#allocation104_spill] sm:$0xff] }
 0x241   : > { %v5767_v6 = vpop.f32.mrb[172].mxu0  ;;  %v4220_v55 = vmax.f32 %v4122_v59, 0.0  ;;  %v4123_v29 = vadd.f32 %v7321_v12, %v4018_v38  ;;  %v5963_v1 = vpop.f32.mrb[172].mxu1  ;;  %v7793_v59 = vld [vmem:[#allocation117_spill] sm:$0xff] }
 0x242   : > { %v3827_v23 = vmax.f32 %v7781_v39, %v5767_v6  ;;  %v2872_v2 = vpop.f32.mrb[173].mxu0  ;;  %v5368_v18 = vpack.c.bf16 %v4222_v42, %v4222_v42  ;;  %v4223_v61 = vmax.f32 %v4125_v37, 0.0  ;;  %v3925_v44 = vmax.f32 %v7782_v24, %v5963_v1  ;;  %v3656_v33 = vpop.f32.mrb[173].mxu1  ;;  %v7796_v24 = vld [vmem:[#allocation108_spill] sm:$0xff] }
 0x243   : > { %v3825_v47 = vmax.f32 %v7783_v26, %v2872_v2  ;;  %v5768_v3 = vpop.f32.mrb[174].mxu0  ;;  %v5366_v25 = vpack.c.bf16 %v4220_v55, %v4220_v55  ;;  %v4221_v46 = vmax.f32 %v4123_v29, 0.0  ;;  %v3923_v41 = vmax.f32 %v7784_v48, %v3656_v33  ;;  %v5964_v62 = vpop.f32.mrb[174].mxu1  ;;  %v7794_v29 = vld [vmem:[#allocation118_spill] sm:$0xff] }
 0x244   : > { %v3828_v13 = vmax.f32 %v7785_v28, %v5768_v3  ;;  %v2875_v45 = vpop.f32.mrb[175].mxu0  ;;  %4713 = vst.msk [vmem:[%s7041_s27 + $0x120] sm:$0xf] %vm4640_vm3, %v5368_v18  ;;  %v5369_v57 = vpack.c.bf16 %v4223_v61, %v4223_v61  ;;  %v4023_v51 = vmax.f32 %v3827_v23, %v3925_v44  ;;  %v3926_v27 = vmax.f32 %v7786_v31, %v5964_v62  ;;  %v3659_v15 = vpop.f32.mrb[175].mxu1  ;;  %v7795_v23 = vld [vmem:[#allocation107_spill] sm:$0xff] }
 0x245   : > { %v3826_v52 = vmax.f32 %v7787_v11, %v2875_v45  ;;  %4711 = vst.msk [vmem:[%s7041_s27 + $0x118] sm:$0xf] %vm4640_vm3, %v5366_v25  ;;  %v5367_v63 = vpack.c.bf16 %v4221_v46, %v4221_v46  ;;  %v4021_v32 = vmax.f32 %v3825_v47, %v3923_v41  ;;  %v3924_v8 = vmax.f32 %v7788_v30, %v3659_v15 }
 0x246   : > { %4714 = vst.msk [vmem:[%s7041_s27 + $0x124] sm:$0xf] %vm4640_vm3, %v5369_v57  ;;  %v4128_v53 = vadd.f32 %v7321_v12, %v4023_v51  ;;  %v4024_v34 = vmax.f32 %v3828_v13, %v3926_v27  ;;  %v7797_v13 = vld [vmem:[#allocation121_spill] sm:$0xff]  ;;  %v7798_v27 = vld [vmem:[#allocation122_spill] sm:$0xff] }
 0x247   : > { %4712 = vst.msk [vmem:[%s7041_s27 + $0x11c] sm:$0xf] %vm4640_vm3, %v5367_v63  ;;  %v4126_v16 = vadd.f32 %v7321_v12, %v4021_v32  ;;  %v4022_v49 = vmax.f32 %v3826_v52, %v3924_v8  ;;  %v7799_v52 = vld [vmem:[#allocation111_spill] sm:$0xff] }
 0x248   : > { %v4226_v0 = vmax.f32 %v4128_v53, 0.0  ;;  %v4129_v20 = vadd.f32 %v7321_v12, %v4024_v34  ;;  %v7800_v53 = vld [vmem:[#allocation112_spill] sm:$0xff] }
 0x249   : > { %v5771_v14 = vpop.f32.mrb[176].mxu0  ;;  %v4224_v58 = vmax.f32 %v4126_v16, 0.0  ;;  %v4127_v54 = vadd.f32 %v7321_v12, %v4022_v49  ;;  %v5967_v17 = vpop.f32.mrb[176].mxu1  ;;  %v7801_v16 = vld [vmem:[#allocation125_spill] sm:$0xff] }
 0x24a   : > { %v3831_v19 = vmax.f32 %v7789_v35, %v5771_v14  ;;  %v2888_v60 = vpop.f32.mrb[177].mxu0  ;;  %v5372_v36 = vpack.c.bf16 %v4226_v0, %v4226_v0  ;;  %v4227_v5 = vmax.f32 %v4129_v20, 0.0  ;;  %v3929_v4 = vmax.f32 %v7790_v22, %v5967_v17  ;;  %v3672_v40 = vpop.f32.mrb[177].mxu1  ;;  %v7804_v22 = vld [vmem:[#allocation116_spill] sm:$0xff] }
 0x24b   : > { %v3829_v9 = vmax.f32 %v7791_v50, %v2888_v60  ;;  %v5772_v10 = vpop.f32.mrb[178].mxu0  ;;  %v5370_v56 = vpack.c.bf16 %v4224_v58, %v4224_v58  ;;  %v4225_v7 = vmax.f32 %v4127_v54, 0.0  ;;  %v3927_v21 = vmax.f32 %v7792_v43, %v3672_v40  ;;  %v5968_v42 = vpop.f32.mrb[178].mxu1  ;;  %v7802_v54 = vld [vmem:[#allocation126_spill] sm:$0xff] }
 0x24c   : > { %v3832_v38 = vmax.f32 %v7793_v59, %v5772_v10  ;;  %v2891_v37 = vpop.f32.mrb[179].mxu0  ;;  %4717 = vst.msk [vmem:[%s7041_s27 + $0x130] sm:$0xf] %vm4640_vm3, %v5372_v36  ;;  %v5373_v6 = vpack.c.bf16 %v4227_v5, %v4227_v5  ;;  %v4027_v55 = vmax.f32 %v3831_v19, %v3929_v4  ;;  %v3930_v39 = vmax.f32 %v7794_v29, %v5968_v42  ;;  %v3675_v2 = vpop.f32.mrb[179].mxu1  ;;  %v7803_v19 = vld [vmem:[#allocation115_spill] sm:$0xff] }
 0x24d   : > { %v3830_v1 = vmax.f32 %v7795_v23, %v2891_v37  ;;  %4715 = vst.msk [vmem:[%s7041_s27 + $0x128] sm:$0xf] %vm4640_vm3, %v5370_v56  ;;  %v5371_v18 = vpack.c.bf16 %v4225_v7, %v4225_v7  ;;  %v4025_v61 = vmax.f32 %v3829_v9, %v3927_v21  ;;  %v3928_v44 = vmax.f32 %v7796_v24, %v3675_v2 }
 0x24e   : > { %4718 = vst.msk [vmem:[%s7041_s27 + $0x134] sm:$0xf] %vm4640_vm3, %v5373_v6  ;;  %v4132_v26 = vadd.f32 %v7321_v12, %v4027_v55  ;;  %v4028_v47 = vmax.f32 %v3832_v38, %v3930_v39  ;;  %v7805_v38 = vld [vmem:[#allocation129_spill] sm:$0xff]  ;;  %v7806_v39 = vld [vmem:[#allocation130_spill] sm:$0xff] }
 0x24f   : > { %4716 = vst.msk [vmem:[%s7041_s27 + $0x12c] sm:$0xf] %vm4640_vm3, %v5371_v18  ;;  %v4130_v33 = vadd.f32 %v7321_v12, %v4025_v61  ;;  %v4026_v3 = vmax.f32 %v3830_v1, %v3928_v44  ;;  %v7807_v1 = vld [vmem:[#allocation119_spill] sm:$0xff] }
 0x250   : > { %v4230_v25 = vmax.f32 %v4132_v26, 0.0  ;;  %v4133_v46 = vadd.f32 %v7321_v12, %v4028_v47  ;;  %v7808_v26 = vld [vmem:[#allocation120_spill] sm:$0xff] }
 0x251   : > { %v5775_v48 = vpop.f32.mrb[180].mxu0  ;;  %v4228_v41 = vmax.f32 %v4130_v33, 0.0  ;;  %v4131_v28 = vadd.f32 %v7321_v12, %v4026_v3  ;;  %v5971_v45 = vpop.f32.mrb[180].mxu1  ;;  %v7809_v33 = vld [vmem:[#allocation133_spill] sm:$0xff] }
 0x252   : > { %v3835_v62 = vmax.f32 %v7797_v13, %v5775_v48  ;;  %v2904_v57 = vpop.f32.mrb[181].mxu0  ;;  %v5376_v51 = vpack.c.bf16 %v4230_v25, %v4230_v25  ;;  %v4231_v31 = vmax.f32 %v4133_v46, 0.0  ;;  %v3933_v11 = vmax.f32 %v7798_v27, %v5971_v45  ;;  %v3688_v63 = vpop.f32.mrb[181].mxu1  ;;  %v7812_v27 = vld [vmem:[#allocation124_spill] sm:$0xff] }
 0x253   : > { %v3833_v15 = vmax.f32 %v7799_v52, %v2904_v57  ;;  %v5776_v32 = vpop.f32.mrb[182].mxu0  ;;  %v5374_v30 = vpack.c.bf16 %v4228_v41, %v4228_v41  ;;  %v4229_v8 = vmax.f32 %v4131_v28, 0.0  ;;  %v3931_v34 = vmax.f32 %v7800_v53, %v3688_v63  ;;  %v5972_v0 = vpop.f32.mrb[182].mxu1  ;;  %v7810_v28 = vld [vmem:[#allocation134_spill] sm:$0xff] }
 0x254   : > { %v3836_v49 = vmax.f32 %v7801_v16, %v5776_v32  ;;  %v2907_v20 = vpop.f32.mrb[183].mxu0  ;;  %4721 = vst.msk [vmem:[%s7041_s27 + $0x140] sm:$0xf] %vm4640_vm3, %v5376_v51  ;;  %v5377_v14 = vpack.c.bf16 %v4231_v31, %v4231_v31  ;;  %v4031_v58 = vmax.f32 %v3835_v62, %v3933_v11  ;;  %v3934_v35 = vmax.f32 %v7802_v54, %v5972_v0  ;;  %v3691_v60 = vpop.f32.mrb[183].mxu1  ;;  %v7811_v62 = vld [vmem:[#allocation123_spill] sm:$0xff] }
 0x255   : > { %v3834_v17 = vmax.f32 %v7803_v19, %v2907_v20  ;;  %4719 = vst.msk [vmem:[%s7041_s27 + $0x138] sm:$0xf] %vm4640_vm3, %v5374_v30  ;;  %v5375_v36 = vpack.c.bf16 %v4229_v8, %v4229_v8  ;;  %v4029_v5 = vmax.f32 %v3833_v15, %v3931_v34  ;;  %v3932_v4 = vmax.f32 %v7804_v22, %v3691_v60 }
 0x256   : > { %4722 = vst.msk [vmem:[%s7041_s27 + $0x144] sm:$0xf] %vm4640_vm3, %v5377_v14  ;;  %v4136_v50 = vadd.f32 %v7321_v12, %v4031_v58  ;;  %v4032_v9 = vmax.f32 %v3836_v49, %v3934_v35  ;;  %v7813_v49 = vld [vmem:[#allocation137_spill] sm:$0xff]  ;;  %v7814_v35 = vld [vmem:[#allocation138_spill] sm:$0xff] }
 0x257   : > { %4720 = vst.msk [vmem:[%s7041_s27 + $0x13c] sm:$0xf] %vm4640_vm3, %v5375_v36  ;;  %v4134_v40 = vadd.f32 %v7321_v12, %v4029_v5  ;;  %v4030_v10 = vmax.f32 %v3834_v17, %v3932_v4  ;;  %v7815_v17 = vld [vmem:[#allocation127_spill] sm:$0xff] }
 0x258   : > { %v4234_v56 = vmax.f32 %v4136_v50, 0.0  ;;  %v4137_v7 = vadd.f32 %v7321_v12, %v4032_v9  ;;  %v7816_v50 = vld [vmem:[#allocation128_spill] sm:$0xff] }
 0x259   : > { %v5779_v43 = vpop.f32.mrb[184].mxu0  ;;  %v4232_v21 = vmax.f32 %v4134_v40, 0.0  ;;  %v4135_v59 = vadd.f32 %v7321_v12, %v4030_v10  ;;  %v5975_v37 = vpop.f32.mrb[184].mxu1  ;;  %v7817_v40 = vld [vmem:[#allocation141_spill] sm:$0xff] }
 0x25a   : > { %v3839_v42 = vmax.f32 %v7805_v38, %v5779_v43  ;;  %v2920_v6 = vpop.f32.mrb[185].mxu0  ;;  %v5380_v55 = vpack.c.bf16 %v4234_v56, %v4234_v56  ;;  %v4235_v29 = vmax.f32 %v4137_v7, 0.0  ;;  %v3937_v23 = vmax.f32 %v7806_v39, %v5975_v37  ;;  %v3704_v18 = vpop.f32.mrb[185].mxu1  ;;  %v7820_v39 = vld [vmem:[#allocation132_spill] sm:$0xff] }
 0x25b   : > { %v3837_v2 = vmax.f32 %v7807_v1, %v2920_v6  ;;  %v5780_v61 = vpop.f32.mrb[186].mxu0  ;;  %v5378_v24 = vpack.c.bf16 %v4232_v21, %v4232_v21  ;;  %v4233_v44 = vmax.f32 %v4135_v59, 0.0  ;;  %v3935_v47 = vmax.f32 %v7808_v26, %v3704_v18  ;;  %v5976_v25 = vpop.f32.mrb[186].mxu1  ;;  %v7818_v59 = vld [vmem:[#allocation142_spill] sm:$0xff] }
 0x25c   : > { %v3840_v3 = vmax.f32 %v7809_v33, %v5780_v61  ;;  %v2923_v46 = vpop.f32.mrb[187].mxu0  ;;  %4725 = vst.msk [vmem:[%s7041_s27 + $0x150] sm:$0xf] %vm4640_vm3, %v5380_v55  ;;  %v5381_v48 = vpack.c.bf16 %v4235_v29, %v4235_v29  ;;  %v4035_v41 = vmax.f32 %v3839_v42, %v3937_v23  ;;  %v3938_v13 = vmax.f32 %v7810_v28, %v5976_v25  ;;  %v3707_v57 = vpop.f32.mrb[187].mxu1  ;;  %v7819_v42 = vld [vmem:[#allocation131_spill] sm:$0xff] }
 0x25d   : > { %v3838_v45 = vmax.f32 %v7811_v62, %v2923_v46  ;;  %4723 = vst.msk [vmem:[%s7041_s27 + $0x148] sm:$0xf] %vm4640_vm3, %v5378_v24  ;;  %v5379_v51 = vpack.c.bf16 %v4233_v44, %v4233_v44  ;;  %v4033_v31 = vmax.f32 %v3837_v2, %v3935_v47  ;;  %v3936_v11 = vmax.f32 %v7812_v27, %v3707_v57 }
 0x25e   : > { %4726 = vst.msk [vmem:[%s7041_s27 + $0x154] sm:$0xf] %vm4640_vm3, %v5381_v48  ;;  %v4140_v52 = vadd.f32 %v7321_v12, %v4035_v41  ;;  %v4036_v15 = vmax.f32 %v3840_v3, %v3938_v13  ;;  %v7821_v3 = vld [vmem:[#allocation143_spill] sm:$0xff]  ;;  %v7822_v13 = vld [vmem:[#allocation144_spill] sm:$0xff] }
 0x25f   : > { %4724 = vst.msk [vmem:[%s7041_s27 + $0x14c] sm:$0xf] %vm4640_vm3, %v5379_v51  ;;  %v4138_v63 = vadd.f32 %v7321_v12, %v4033_v31  ;;  %v4034_v32 = vmax.f32 %v3838_v45, %v3936_v11  ;;  %v7823_v45 = vld [vmem:[#allocation135_spill] sm:$0xff] }
 0x260   : > { %v4238_v30 = vmax.f32 %v4140_v52, 0.0  ;;  %v4141_v8 = vadd.f32 %v7321_v12, %v4036_v15  ;;  %v7824_v52 = vld [vmem:[#allocation136_spill] sm:$0xff] }
 0x261   : > { %v5783_v53 = vpop.f32.mrb[188].mxu0  ;;  %v4236_v34 = vmax.f32 %v4138_v63, 0.0  ;;  %v4139_v16 = vadd.f32 %v7321_v12, %v4034_v32  ;;  %v5979_v20 = vpop.f32.mrb[188].mxu1  ;;  %v7825_v63 = vld [vmem:[#allocation145_spill] sm:$0xff] }
 0x262   : > { %v3843_v0 = vmax.f32 %v7813_v49, %v5783_v53  ;;  %v2936_v14 = vpop.f32.mrb[189].mxu0  ;;  %v5384_v58 = vpack.c.bf16 %v4238_v30, %v4238_v30  ;;  %v4239_v54 = vmax.f32 %v4141_v8, 0.0  ;;  %v3941_v19 = vmax.f32 %v7814_v35, %v5979_v20  ;;  %v3720_v36 = vpop.f32.mrb[189].mxu1  ;;  %v7828_v35 = vld [vmem:[#allocation140_spill] sm:$0xff] }
 0x263   : > { %v3841_v60 = vmax.f32 %v7815_v17, %v2936_v14  ;;  %v5784_v5 = vpop.f32.mrb[190].mxu0  ;;  %v5382_v22 = vpack.c.bf16 %v4236_v34, %v4236_v34  ;;  %v4237_v4 = vmax.f32 %v4139_v16, 0.0  ;;  %v3939_v9 = vmax.f32 %v7816_v50, %v3720_v36  ;;  %v5980_v56 = vpop.f32.mrb[190].mxu1  ;;  %v7826_v16 = vld [vmem:[#allocation146_spill] sm:$0xff] }
 0x264   : > { %v3844_v10 = vmax.f32 %v7817_v40, %v5784_v5  ;;  %v2939_v7 = vpop.f32.mrb[191].mxu0  ;;  %4729 = vst.msk [vmem:[%s7041_s27 + $0x160] sm:$0xf] %vm4640_vm3, %v5384_v58  ;;  %v5385_v43 = vpack.c.bf16 %v4239_v54, %v4239_v54  ;;  %v4039_v21 = vmax.f32 %v3843_v0, %v3941_v19  ;;  %v3942_v38 = vmax.f32 %v7818_v59, %v5980_v56  ;;  %v3723_v6 = vpop.f32.mrb[191].mxu1  ;;  %v7827_v0 = vld [vmem:[#allocation139_spill] sm:$0xff] }
 0x265   : > { %v3842_v37 = vmax.f32 %v7819_v42, %v2939_v7  ;;  %4727 = vst.msk [vmem:[%s7041_s27 + $0x158] sm:$0xf] %vm4640_vm3, %v5382_v22  ;;  %v5383_v55 = vpack.c.bf16 %v4237_v4, %v4237_v4  ;;  %v4037_v29 = vmax.f32 %v3841_v60, %v3939_v9  ;;  %v3940_v23 = vmax.f32 %v7820_v39, %v3723_v6 }
 0x266   : > { %4730 = vst.msk [vmem:[%s7041_s27 + $0x164] sm:$0xf] %vm4640_vm3, %v5385_v43  ;;  %v4144_v1 = vadd.f32 %v7321_v12, %v4039_v21  ;;  %v4040_v2 = vmax.f32 %v3844_v10, %v3942_v38 }
 0x267   : > { %4728 = vst.msk [vmem:[%s7041_s27 + $0x15c] sm:$0xf] %vm4640_vm3, %v5383_v55  ;;  %v4142_v18 = vadd.f32 %v7321_v12, %v4037_v29  ;;  %v4038_v61 = vmax.f32 %v3842_v37, %v3940_v23 }
 0x268   : > { %v4242_v24 = vmax.f32 %v4144_v1, 0.0  ;;  %v4145_v44 = vadd.f32 %v7321_v12, %v4040_v2 }
 0x269   : > { %v5787_v26 = vpop.f32.mrb[192].mxu0  ;;  %v4240_v47 = vmax.f32 %v4142_v18, 0.0  ;;  %v4143_v33 = vadd.f32 %v7321_v12, %v4038_v61  ;;  %v5983_v46 = vpop.f32.mrb[192].mxu1 }
 0x26a   : > { %v3847_v25 = vmax.f32 %v7821_v3, %v5787_v26  ;;  %v2952_v48 = vpop.f32.mrb[193].mxu0  ;;  %v5388_v41 = vpack.c.bf16 %v4242_v24, %v4242_v24  ;;  %v4243_v28 = vmax.f32 %v4145_v44, 0.0  ;;  %v3945_v62 = vmax.f32 %v7822_v13, %v5983_v46  ;;  %v3736_v51 = vpop.f32.mrb[193].mxu1 }
 0x26b   : > { %v3845_v57 = vmax.f32 %v7823_v45, %v2952_v48  ;;  %v5788_v31 = vpop.f32.mrb[194].mxu0  ;;  %v5386_v27 = vpack.c.bf16 %v4240_v47, %v4240_v47  ;;  %v4241_v11 = vmax.f32 %v4143_v33, 0.0  ;;  %v3943_v15 = vmax.f32 %v7824_v52, %v3736_v51  ;;  %v5984_v30 = vpop.f32.mrb[194].mxu1 }
 0x26c   : > { %v3848_v32 = vmax.f32 %v7825_v63, %v5788_v31  ;;  %v2955_v8 = vpop.f32.mrb[195].mxu0  ;;  %4733 = vst.msk [vmem:[%s7041_s27 + $0x170] sm:$0xf] %vm4640_vm3, %v5388_v41  ;;  %v5389_v53 = vpack.c.bf16 %v4243_v28, %v4243_v28  ;;  %v4043_v34 = vmax.f32 %v3847_v25, %v3945_v62  ;;  %v3946_v49 = vmax.f32 %v7826_v16, %v5984_v30  ;;  %v3739_v14 = vpop.f32.mrb[195].mxu1 }
 0x26d   : > { %v3846_v20 = vmax.f32 %v7827_v0, %v2955_v8  ;;  %4731 = vst.msk [vmem:[%s7041_s27 + $0x168] sm:$0xf] %vm4640_vm3, %v5386_v27  ;;  %v5387_v58 = vpack.c.bf16 %v4241_v11, %v4241_v11  ;;  %v4041_v54 = vmax.f32 %v3845_v57, %v3943_v15  ;;  %v3944_v19 = vmax.f32 %v7828_v35, %v3739_v14 }
 0x26e   : > { %4734 = vst.msk [vmem:[%s7041_s27 + $0x174] sm:$0xf] %vm4640_vm3, %v5389_v53  ;;  %v4148_v17 = vadd.f32 %v7321_v12, %v4043_v34  ;;  %v4044_v60 = vmax.f32 %v3848_v32, %v3946_v49 }
 0x26f   : > { %4732 = vst.msk [vmem:[%s7041_s27 + $0x16c] sm:$0xf] %vm4640_vm3, %v5387_v58  ;;  %v4146_v36 = vadd.f32 %v7321_v12, %v4041_v54  ;;  %v4042_v5 = vmax.f32 %v3846_v20, %v3944_v19 }
 0x270   : > { %v4246_v22 = vmax.f32 %v4148_v17, 0.0  ;;  %v4149_v4 = vadd.f32 %v7321_v12, %v4044_v60 }
 0x271   : > { %v4244_v50 = vmax.f32 %v4146_v36, 0.0  ;;  %v4147_v9 = vadd.f32 %v7321_v12, %v4042_v5 }
 0x272   : > { %v5392_v40 = vpack.c.bf16 %v4246_v22, %v4246_v22  ;;  %v4247_v10 = vmax.f32 %v4149_v4, 0.0 }
 0x273   : > { %v5390_v56 = vpack.c.bf16 %v4244_v50, %v4244_v50  ;;  %v4245_v7 = vmax.f32 %v4147_v9, 0.0 }
 0x274   : > { %4737 = vst.msk [vmem:[%s7041_s27 + $0x180] sm:$0xf] %vm4640_vm3, %v5392_v40  ;;  %v5393_v43 = vpack.c.bf16 %v4247_v10, %v4247_v10 }
 0x275   : > { %4735 = vst.msk [vmem:[%s7041_s27 + $0x178] sm:$0xf] %vm4640_vm3, %v5390_v56  ;;  %v5391_v21 = vpack.c.bf16 %v4245_v7, %v4245_v7 }
 0x276   : > { %4738 = vst.msk [vmem:[%s7041_s27 + $0x184] sm:$0xf] %vm4640_vm3, %v5393_v43 }
 0x277   : > { %4736 = vst.msk [vmem:[%s7041_s27 + $0x17c] sm:$0xf] %vm4640_vm3, %v5391_v21 }
 0x278 PF: > { %s13_s12 = sadd.s32 1, %s6200_s12  }
 0x279   : > { %p10_p5 = scmp.ge.s32.totalorder %s13_s12, 4  }
 0x27b   :  { %12 = sbr.rel (!%p10_p5) target bundleno = 1 (0x1), region = 62 }

// kernel: cnn_forward.4
= control target key start
LH: loop header
LB: loop body
LE: loop exit
PB: predicated region body
PF: predicated region fallthrough
CT: control target
= control target key end

     0   :  { %s2135_s12 = smov 0   ;;  %s2567_s0 = inlined_call_operand.vmem [shape: bf16[1600,144], index: 0, kind: input, shape index: {}]   ;;  %s2568_s1 = inlined_call_operand.vmem [shape: bf16[144,32], index: 1, kind: input, shape index: {}]   ;;  %s2569_s2 = inlined_call_operand.vmem [shape: f32[1,32], index: 2, kind: input, shape index: {}]   ;;  %s2570_s3 = inlined_call_operand.vmem [shape: bf16[400,32], index: 3, kind: output, shape index: {}]  }
   0x1 LB: > { %s1699_s13 = sadd.s32 4294967295, %s2112_s12   ;;  %p1703_p0 = scmp.ge.s32.totalorder %s2112_s12, 1  ;;  %s2112_s12 = sphi %s2135_s12, %s13_s12  }
   0x2   : > { %p139_p1 = scmp.lt.s32.totalorder %s2112_s12, 3 }
   0x4   : > { %p140_p2 = pnand %p1703_p0, %p139_p1 }
   0x5   : > { %v1947_v0 = vld [vmem:[%s2568_s1] sm:$0xff] (!%p140_p2)   ;;  %v2114_v1 = vmov (!%p140_p2), 0   ;;  %s164_s16 = smul.u32 (!%p140_p2), 100, %s1699_s13  ;;  %v1948_v2 = vld [vmem:[%s2568_s1 + $0x8] sm:$0xff] (!%p140_p2)   ;;  %v1949_v3 = vld [vmem:[%s2568_s1 + $0x10] sm:$0xff] (!%p140_p2)   ;;  %vm800_vm0 = vcmask (!%p140_p2), 130048  }
   0x6   : > { %143 = sbr.rel (%p140_p2) target bundleno = 459 (0x1cb), region = 32  ;;  %951 = vmatprep.subr.bf16.mxu0 (!%p140_p2), %v2114_v1  ;;  %1920 = vmatprep.subr.bf16.mxu1 (!%p140_p2), %v2114_v1  ;;  %v1950_v4 = vld [vmem:[%s2568_s1 + $0x18] sm:$0xff] (!%p140_p2)   ;;  %v1951_v7 = vld [vmem:[%s2568_s1 + $0x20] sm:$0xff] (!%p140_p2)   ;;  %v1952_v8 = vld [vmem:[%s2568_s1 + $0x28] sm:$0xff] (!%p140_p2)   ;;  %vm1617_vm1 = vcmask (!%p140_p2), 257024  }
   0x7   : > { %952 = vmatpush1.bf16.msra.mxu0 (!%p140_p2), %v1947_v0  ;;  %1929 = vmatpush1.bf16.msra.mxu1 (!%p140_p2), %v1947_v0  ;;  %p165_p3 = scmp.lt.s32.totalorder (!%p140_p2), %s164_s16, 199  ;;  %v1953_v9 = vld [vmem:[%s2568_s1 + $0x30] sm:$0xff] (!%p140_p2)   ;;  %v1954_v10 = vld [vmem:[%s2568_s1 + $0x38] sm:$0xff] (!%p140_p2)   ;;  %v1955_v11 = vld [vmem:[%s2568_s1 + $0x40] sm:$0xff] (!%p140_p2)   ;;  %s171_s10 = smul.u32 (!%p140_p2), 25, %s1699_s13 }
   0x8   : > { %953 = vmatprep.subr.bf16.mxu0 (!%p140_p2), %v2114_v1  ;;  %1921 = vmatprep.subr.bf16.mxu1 (!%p140_p2), %v2114_v1 }
   0x9   : > { %p172_p4 = scmp.lt.s32.totalorder (!%p140_p2), %s171_s10, 49 }
   0xb   : > { %954 = vmatpush1.bf16.msra.mxu0 (!%p140_p2), %v1948_v2  ;;  %1930 = vmatpush1.bf16.msra.mxu1 (!%p140_p2), %v1948_v2 }
   0xc   : > { %955 = vmatprep.subr.bf16.mxu0 (!%p140_p2), %v2114_v1  ;;  %1922 = vmatprep.subr.bf16.mxu1 (!%p140_p2), %v2114_v1 }
   0xd   : > { %s2572_s16 = smov (!%p165_p3, %s164_s16), 199  ;;  %s2574_s10 = smov (!%p172_p4, %s171_s10), 49 }
   0xe   : > { %s1894_s21 = sshll.u32 %s2572_s16, 3  ;;  %s1706_s13 = sshll.u32 %s2574_s10, 2 }
   0xf   : > { %s2157_s24 = scalar_lea.vmem %s2567_s0, %s1894_s21  ;;  %956 = vmatpush1.bf16.msra.mxu0 %v1949_v3  ;;  %1931 = vmatpush1.bf16.msra.mxu1 %v1949_v3  ;;  %s2442_s17 = scalar_lea.vmem %s2570_s3, %s1706_s13 }
  0x10   : > { %v1958_v5 = vld [vmem:[%s2157_s24 + $0x4] ss:$8 sps:$4 sm:$0xff]   ;;  %957 = vmatprep.subr.bf16.mxu0 %v2114_v1  ;;  %1923 = vmatprep.subr.bf16.mxu1 %v2114_v1  ;;  %v1961_v6 = vld [vmem:[%s2157_s24 + $0x194] ss:$8 sps:$4 sm:$0xff]   ;;  %v1956_v12 = vld [vmem:[%s2157_s24] ss:$8 sps:$4 sm:$0xff]  }
  0x11   : > { %1816 = vmatprep.mubr.msk.bf16.mxu0 %vm800_vm0, %v1958_v5  ;;  %1841 = vmatprep.mubr.msk.bf16.mxu1 %vm800_vm0, %v1961_v6  ;;  %v1959_v13 = vld [vmem:[%s2157_s24 + $0x190] ss:$8 sps:$4 sm:$0xff]   ;;  %v1962_v14 = vld [vmem:[%s2157_s24 + $0x14] ss:$8 sps:$4 sm:$0xff]   ;;  %v1964_v15 = vld [vmem:[%s2157_s24 + $0x1a4] ss:$8 sps:$4 sm:$0xff]  }
  0x12   : > { %v1966_v16 = vld [vmem:[%s2157_s24 + $0x10] ss:$8 sps:$4 sm:$0xff]   ;;  %v1967_v17 = vld [vmem:[%s2157_s24 + $0x1a0] ss:$8 sps:$4 sm:$0xff]   ;;  %v1968_v18 = vld [vmem:[%s2157_s24 + $0x24] ss:$8 sps:$4 sm:$0xff]  }
  0x13   : > { %958 = vmatpush1.bf16.msra.mxu0 %v1950_v4  ;;  %1932 = vmatpush1.bf16.msra.mxu1 %v1950_v4  ;;  %v1970_v19 = vld [vmem:[%s2157_s24 + $0x1b4] ss:$8 sps:$4 sm:$0xff]   ;;  %v1972_v20 = vld [vmem:[%s2157_s24 + $0x20] ss:$8 sps:$4 sm:$0xff]   ;;  %v1973_v21 = vld [vmem:[%s2157_s24 + $0x1b0] ss:$8 sps:$4 sm:$0xff]  }
  0x14   : > { %959 = vmatprep.subr.bf16.mxu0 %v2114_v1  ;;  %1924 = vmatprep.subr.bf16.mxu1 %v2114_v1  ;;  %v1974_v22 = vld [vmem:[%s2157_s24 + $0x34] ss:$8 sps:$4 sm:$0xff]   ;;  %v1976_v23 = vld [vmem:[%s2157_s24 + $0x1c4] ss:$8 sps:$4 sm:$0xff]   ;;  %v1978_v24 = vld [vmem:[%s2157_s24 + $0x30] ss:$8 sps:$4 sm:$0xff]  }
  0x15   : > { %v1979_v25 = vld [vmem:[%s2157_s24 + $0x1c0] ss:$8 sps:$4 sm:$0xff]   ;;  %v1980_v26 = vld [vmem:[%s2157_s24 + $0x44] ss:$8 sps:$4 sm:$0xff]   ;;  %v1982_v27 = vld [vmem:[%s2157_s24 + $0x1d4] ss:$8 sps:$4 sm:$0xff]  }
  0x16   : > { %v1984_v28 = vld [vmem:[%s2157_s24 + $0x40] ss:$8 sps:$4 sm:$0xff]   ;;  %v1985_v29 = vld [vmem:[%s2157_s24 + $0x1d0] ss:$8 sps:$4 sm:$0xff]   ;;  %v1986_v30 = vld [vmem:[%s2157_s24 + $0x54] ss:$8 sps:$4 sm:$0xff]  }
  0x17   : > { %960 = vmatpush1.bf16.msra.mxu0 %v1951_v7  ;;  %1933 = vmatpush1.bf16.msra.mxu1 %v1951_v7  ;;  %v1988_v31 = vld [vmem:[%s2157_s24 + $0x1e4] ss:$8 sps:$4 sm:$0xff]   ;;  %v1990_v32 = vld [vmem:[%s2157_s24 + $0x50] ss:$8 sps:$4 sm:$0xff]   ;;  %v1991_v33 = vld [vmem:[%s2157_s24 + $0x1e0] ss:$8 sps:$4 sm:$0xff]  }
  0x18   : > { %961 = vmatprep.subr.bf16.mxu0 %v2114_v1  ;;  %1925 = vmatprep.subr.bf16.mxu1 %v2114_v1  ;;  %v1992_v34 = vld [vmem:[%s2157_s24 + $0x64] ss:$8 sps:$4 sm:$0xff]   ;;  %v1994_v35 = vld [vmem:[%s2157_s24 + $0x1f4] ss:$8 sps:$4 sm:$0xff]   ;;  %v1996_v36 = vld [vmem:[%s2157_s24 + $0x60] ss:$8 sps:$4 sm:$0xff]  }
  0x19   : > { %v1997_v37 = vld [vmem:[%s2157_s24 + $0x1f0] ss:$8 sps:$4 sm:$0xff]   ;;  %v1998_v38 = vld [vmem:[%s2157_s24 + $0x74] ss:$8 sps:$4 sm:$0xff]   ;;  %v2000_v39 = vld [vmem:[%s2157_s24 + $0x204] ss:$8 sps:$4 sm:$0xff]  }
  0x1a   : > { %v2002_v40 = vld [vmem:[%s2157_s24 + $0x70] ss:$8 sps:$4 sm:$0xff]   ;;  %v2003_v41 = vld [vmem:[%s2157_s24 + $0x200] ss:$8 sps:$4 sm:$0xff]   ;;  %v2004_v42 = vld [vmem:[%s2157_s24 + $0x84] ss:$8 sps:$4 sm:$0xff]  }
  0x1b   : > { %962 = vmatpush1.bf16.msra.mxu0 %v1952_v8  ;;  %1934 = vmatpush1.bf16.msra.mxu1 %v1952_v8  ;;  %v2006_v43 = vld [vmem:[%s2157_s24 + $0x214] ss:$8 sps:$4 sm:$0xff]   ;;  %v2008_v44 = vld [vmem:[%s2157_s24 + $0x80] ss:$8 sps:$4 sm:$0xff]   ;;  %v2009_v45 = vld [vmem:[%s2157_s24 + $0x210] ss:$8 sps:$4 sm:$0xff]  }
  0x1c   : > { %963 = vmatprep.subr.bf16.mxu0 %v2114_v1  ;;  %1926 = vmatprep.subr.bf16.mxu1 %v2114_v1  ;;  %v2010_v46 = vld [vmem:[%s2157_s24 + $0x94] ss:$8 sps:$4 sm:$0xff]   ;;  %v2012_v47 = vld [vmem:[%s2157_s24 + $0x224] ss:$8 sps:$4 sm:$0xff]   ;;  %v2014_v48 = vld [vmem:[%s2157_s24 + $0x90] ss:$8 sps:$4 sm:$0xff]  }
  0x1d   : > { %v2015_v49 = vld [vmem:[%s2157_s24 + $0x220] ss:$8 sps:$4 sm:$0xff]   ;;  %v2016_v50 = vld [vmem:[%s2157_s24 + $0xa4] ss:$8 sps:$4 sm:$0xff]   ;;  %v2018_v51 = vld [vmem:[%s2157_s24 + $0x234] ss:$8 sps:$4 sm:$0xff]  }
  0x1e   : > { %v2020_v52 = vld [vmem:[%s2157_s24 + $0xa0] ss:$8 sps:$4 sm:$0xff]   ;;  %v2021_v53 = vld [vmem:[%s2157_s24 + $0x230] ss:$8 sps:$4 sm:$0xff]   ;;  %v2022_v54 = vld [vmem:[%s2157_s24 + $0xb4] ss:$8 sps:$4 sm:$0xff]  }
  0x1f   : > { %964 = vmatpush1.bf16.msra.mxu0 %v1953_v9  ;;  %1935 = vmatpush1.bf16.msra.mxu1 %v1953_v9  ;;  %v2024_v55 = vld [vmem:[%s2157_s24 + $0x244] ss:$8 sps:$4 sm:$0xff]   ;;  %v2026_v56 = vld [vmem:[%s2157_s24 + $0xb0] ss:$8 sps:$4 sm:$0xff]   ;;  %v2027_v57 = vld [vmem:[%s2157_s24 + $0x240] ss:$8 sps:$4 sm:$0xff]  }
  0x20   : > { %965 = vmatprep.subr.bf16.mxu0 %v2114_v1  ;;  %1927 = vmatprep.subr.bf16.mxu1 %v2114_v1  ;;  %v2028_v58 = vld [vmem:[%s2157_s24 + $0xc4] ss:$8 sps:$4 sm:$0xff]   ;;  %v2030_v59 = vld [vmem:[%s2157_s24 + $0x254] ss:$8 sps:$4 sm:$0xff]   ;;  %v2032_v60 = vld [vmem:[%s2157_s24 + $0xc0] ss:$8 sps:$4 sm:$0xff]  }
  0x21   : > { %v2033_v61 = vld [vmem:[%s2157_s24 + $0x250] ss:$8 sps:$4 sm:$0xff]   ;;  %v2034_v62 = vld [vmem:[%s2157_s24 + $0xd4] ss:$8 sps:$4 sm:$0xff]   ;;  %v2036_v63 = vld [vmem:[%s2157_s24 + $0x264] ss:$8 sps:$4 sm:$0xff]  }
  0x22   : > { %v2038_v0 = vld [vmem:[%s2157_s24 + $0xd0] ss:$8 sps:$4 sm:$0xff]   ;;  %v2040_v2 = vld [vmem:[%s2157_s24 + $0xe4] ss:$8 sps:$4 sm:$0xff]   ;;  %v2042_v3 = vld [vmem:[%s2157_s24 + $0x274] ss:$8 sps:$4 sm:$0xff]  }
  0x23   : > { %966 = vmatpush1.bf16.msra.mxu0 %v1954_v10  ;;  %1936 = vmatpush1.bf16.msra.mxu1 %v1954_v10  ;;  %v2044_v4 = vld [vmem:[%s2157_s24 + $0xe0] ss:$8 sps:$4 sm:$0xff]   ;;  %v2045_v5 = vld [vmem:[%s2157_s24 + $0x270] ss:$8 sps:$4 sm:$0xff]   ;;  %v2046_v6 = vld [vmem:[%s2157_s24 + $0xf4] ss:$8 sps:$4 sm:$0xff]  }
  0x24   : > { %967 = vmatprep.subr.bf16.mxu0 %v2114_v1  ;;  %1928 = vmatprep.subr.bf16.mxu1 %v2114_v1  ;;  %v2039_v1 = vld [vmem:[%s2157_s24 + $0x260] ss:$8 sps:$4 sm:$0xff]   ;;  %v2048_v7 = vld [vmem:[%s2157_s24 + $0x284] ss:$8 sps:$4 sm:$0xff]   ;;  %v2050_v8 = vld [vmem:[%s2157_s24 + $0xf0] ss:$8 sps:$4 sm:$0xff]  }
  0x25   : > { %v2051_v9 = vld [vmem:[%s2157_s24 + $0x280] ss:$8 sps:$4 sm:$0xff]   ;;  %v2052_v10 = vld [vmem:[%s2157_s24 + $0x104] ss:$8 sps:$4 sm:$0xff]  }
  0x27   : > { %968 = vmatpush1.bf16.msra.mxu0 %v1955_v11  ;;  %1937 = vmatpush1.bf16.msra.mxu1 %v1955_v11  ;;  %v2054_v11 = vld [vmem:[%s2157_s24 + $0x294] ss:$8 sps:$4 sm:$0xff]  }
  0x2a   : > { %984 = vmatmul.mubr.bf16.vlgmr.msra.gmra.mrb[0].mxu0 %v1956_v12  ;;  %1184 = vmatmul.mubr.bf16.vlgmr.msra.gmra.mrb[0].mxu1 %v1959_v13  ;;  %v2056_v12 = vld [vmem:[%s2157_s24 + $0x100] ss:$8 sps:$4 sm:$0xff]   ;;  %v2057_v13 = vld [vmem:[%s2157_s24 + $0x290] ss:$8 sps:$4 sm:$0xff]  }
  0x2b   : > { %1817 = vmatprep.mubr.msk.bf16.mxu0 %vm800_vm0, %v1962_v14  ;;  %1842 = vmatprep.mubr.msk.bf16.mxu1 %vm800_vm0, %v1964_v15  ;;  %v2058_v14 = vld [vmem:[%s2157_s24 + $0x114] ss:$8 sps:$4 sm:$0xff]   ;;  %v2060_v15 = vld [vmem:[%s2157_s24 + $0x2a4] ss:$8 sps:$4 sm:$0xff]  }
  0x32   : > { %992 = vmatmul.mubr.bf16.gmra.mrb[4].mxu0 %v1966_v16  ;;  %1192 = vmatmul.mubr.bf16.gmra.mrb[4].mxu1 %v1967_v17  ;;  %v2062_v16 = vld [vmem:[%s2157_s24 + $0x110] ss:$8 sps:$4 sm:$0xff]   ;;  %v2063_v17 = vld [vmem:[%s2157_s24 + $0x2a0] ss:$8 sps:$4 sm:$0xff]  }
  0x33   : > { %1818 = vmatprep.mubr.msk.bf16.mxu0 %vm800_vm0, %v1968_v18  ;;  %1843 = vmatprep.mubr.msk.bf16.mxu1 %vm800_vm0, %v1970_v19  ;;  %v2064_v18 = vld [vmem:[%s2157_s24 + $0x124] ss:$8 sps:$4 sm:$0xff]   ;;  %v2066_v19 = vld [vmem:[%s2157_s24 + $0x2b4] ss:$8 sps:$4 sm:$0xff]  }
  0x3a   : > { %1000 = vmatmul.mubr.bf16.gmra.mrb[8].mxu0 %v1972_v20  ;;  %1200 = vmatmul.mubr.bf16.gmra.mrb[8].mxu1 %v1973_v21  ;;  %v2068_v20 = vld [vmem:[%s2157_s24 + $0x120] ss:$8 sps:$4 sm:$0xff]   ;;  %v2069_v21 = vld [vmem:[%s2157_s24 + $0x2b0] ss:$8 sps:$4 sm:$0xff]  }
  0x3b   : > { %1819 = vmatprep.mubr.msk.bf16.mxu0 %vm800_vm0, %v1974_v22  ;;  %1844 = vmatprep.mubr.msk.bf16.mxu1 %vm800_vm0, %v1976_v23  ;;  %v2070_v22 = vld [vmem:[%s2157_s24 + $0x134] ss:$8 sps:$4 sm:$0xff]   ;;  %v2072_v23 = vld [vmem:[%s2157_s24 + $0x2c4] ss:$8 sps:$4 sm:$0xff]  }
  0x42   : > { %1008 = vmatmul.mubr.bf16.gmra.mrb[12].mxu0 %v1978_v24  ;;  %1208 = vmatmul.mubr.bf16.gmra.mrb[12].mxu1 %v1979_v25  ;;  %v2074_v24 = vld [vmem:[%s2157_s24 + $0x130] ss:$8 sps:$4 sm:$0xff]   ;;  %v2075_v25 = vld [vmem:[%s2157_s24 + $0x2c0] ss:$8 sps:$4 sm:$0xff]  }
  0x43   : > { %1820 = vmatprep.mubr.msk.bf16.mxu0 %vm800_vm0, %v1980_v26  ;;  %1845 = vmatprep.mubr.msk.bf16.mxu1 %vm800_vm0, %v1982_v27  ;;  %v2076_v26 = vld [vmem:[%s2157_s24 + $0x144] ss:$8 sps:$4 sm:$0xff]   ;;  %v2078_v27 = vld [vmem:[%s2157_s24 + $0x2d4] ss:$8 sps:$4 sm:$0xff]  }
  0x4a   : > { %1016 = vmatmul.mubr.bf16.gmra.mrb[16].mxu0 %v1984_v28  ;;  %1216 = vmatmul.mubr.bf16.gmra.mrb[16].mxu1 %v1985_v29  ;;  %v2080_v28 = vld [vmem:[%s2157_s24 + $0x140] ss:$8 sps:$4 sm:$0xff]   ;;  %v2081_v29 = vld [vmem:[%s2157_s24 + $0x2d0] ss:$8 sps:$4 sm:$0xff]  }
  0x4b   : > { %1821 = vmatprep.mubr.msk.bf16.mxu0 %vm800_vm0, %v1986_v30  ;;  %1846 = vmatprep.mubr.msk.bf16.mxu1 %vm800_vm0, %v1988_v31  ;;  %v2082_v30 = vld [vmem:[%s2157_s24 + $0x154] ss:$8 sps:$4 sm:$0xff]   ;;  %v2084_v31 = vld [vmem:[%s2157_s24 + $0x2e4] ss:$8 sps:$4 sm:$0xff]  }
  0x52   : > { %1024 = vmatmul.mubr.bf16.gmra.mrb[20].mxu0 %v1990_v32  ;;  %1224 = vmatmul.mubr.bf16.gmra.mrb[20].mxu1 %v1991_v33  ;;  %v2086_v32 = vld [vmem:[%s2157_s24 + $0x150] ss:$8 sps:$4 sm:$0xff]   ;;  %v2087_v33 = vld [vmem:[%s2157_s24 + $0x2e0] ss:$8 sps:$4 sm:$0xff]  }
  0x53   : > { %1822 = vmatprep.mubr.msk.bf16.mxu0 %vm800_vm0, %v1992_v34  ;;  %1847 = vmatprep.mubr.msk.bf16.mxu1 %vm800_vm0, %v1994_v35  ;;  %v2088_v34 = vld [vmem:[%s2157_s24 + $0x164] ss:$8 sps:$4 sm:$0xff]   ;;  %v2090_v35 = vld [vmem:[%s2157_s24 + $0x2f4] ss:$8 sps:$4 sm:$0xff]  }
  0x5a   : > { %1032 = vmatmul.mubr.bf16.gmra.mrb[24].mxu0 %v1996_v36  ;;  %1232 = vmatmul.mubr.bf16.gmra.mrb[24].mxu1 %v1997_v37  ;;  %v2092_v36 = vld [vmem:[%s2157_s24 + $0x160] ss:$8 sps:$4 sm:$0xff]   ;;  %v2093_v37 = vld [vmem:[%s2157_s24 + $0x2f0] ss:$8 sps:$4 sm:$0xff]  }
  0x5b   : > { %1823 = vmatprep.mubr.msk.bf16.mxu0 %vm800_vm0, %v1998_v38  ;;  %1848 = vmatprep.mubr.msk.bf16.mxu1 %vm800_vm0, %v2000_v39  ;;  %v2094_v38 = vld [vmem:[%s2157_s24 + $0x174] ss:$8 sps:$4 sm:$0xff]   ;;  %v2096_v39 = vld [vmem:[%s2157_s24 + $0x304] ss:$8 sps:$4 sm:$0xff]  }
  0x62   : > { %1040 = vmatmul.mubr.bf16.gmra.mrb[28].mxu0 %v2002_v40  ;;  %1240 = vmatmul.mubr.bf16.gmra.mrb[28].mxu1 %v2003_v41  ;;  %v2098_v40 = vld [vmem:[%s2157_s24 + $0x170] ss:$8 sps:$4 sm:$0xff]   ;;  %v2099_v41 = vld [vmem:[%s2157_s24 + $0x300] ss:$8 sps:$4 sm:$0xff]  }
  0x63   : > { %1824 = vmatprep.mubr.msk.bf16.mxu0 %vm800_vm0, %v2004_v42  ;;  %1849 = vmatprep.mubr.msk.bf16.mxu1 %vm800_vm0, %v2006_v43  ;;  %v2100_v42 = vld [vmem:[%s2157_s24 + $0x184] ss:$8 sps:$4 sm:$0xff]   ;;  %v2102_v43 = vld [vmem:[%s2157_s24 + $0x314] ss:$8 sps:$4 sm:$0xff]  }
  0x6a   : > { %1048 = vmatmul.mubr.bf16.gmra.mrb[32].mxu0 %v2008_v44  ;;  %1248 = vmatmul.mubr.bf16.gmra.mrb[32].mxu1 %v2009_v45  ;;  %v2104_v44 = vld [vmem:[%s2157_s24 + $0x180] ss:$8 sps:$4 sm:$0xff]   ;;  %v2105_v45 = vld [vmem:[%s2157_s24 + $0x310] ss:$8 sps:$4 sm:$0xff]  }
  0x6b   : > { %1825 = vmatprep.mubr.msk.bf16.mxu0 %vm800_vm0, %v2010_v46  ;;  %1850 = vmatprep.mubr.msk.bf16.mxu1 %vm800_vm0, %v2012_v47 }
  0x72   : > { %1056 = vmatmul.mubr.bf16.gmra.mrb[36].mxu0 %v2014_v48  ;;  %1256 = vmatmul.mubr.bf16.gmra.mrb[36].mxu1 %v2015_v49 }
  0x73   : > { %1826 = vmatprep.mubr.msk.bf16.mxu0 %vm800_vm0, %v2016_v50  ;;  %1851 = vmatprep.mubr.msk.bf16.mxu1 %vm800_vm0, %v2018_v51 }
  0x7a   : > { %1064 = vmatmul.mubr.bf16.gmra.mrb[40].mxu0 %v2020_v52  ;;  %1264 = vmatmul.mubr.bf16.gmra.mrb[40].mxu1 %v2021_v53 }
  0x7b   : > { %1827 = vmatprep.mubr.msk.bf16.mxu0 %vm800_vm0, %v2022_v54  ;;  %1852 = vmatprep.mubr.msk.bf16.mxu1 %vm800_vm0, %v2024_v55 }
  0x82   : > { %1072 = vmatmul.mubr.bf16.gmra.mrb[44].mxu0 %v2026_v56  ;;  %1272 = vmatmul.mubr.bf16.gmra.mrb[44].mxu1 %v2027_v57 }
  0x83   : > { %1828 = vmatprep.mubr.msk.bf16.mxu0 %vm800_vm0, %v2028_v58  ;;  %1853 = vmatprep.mubr.msk.bf16.mxu1 %vm800_vm0, %v2030_v59 }
  0x8a   : > { %1080 = vmatmul.mubr.bf16.gmra.mrb[48].mxu0 %v2032_v60  ;;  %1280 = vmatmul.mubr.bf16.gmra.mrb[48].mxu1 %v2033_v61 }
  0x8b   : > { %1829 = vmatprep.mubr.msk.bf16.mxu0 %vm800_vm0, %v2034_v62  ;;  %1854 = vmatprep.mubr.msk.bf16.mxu1 %vm800_vm0, %v2036_v63 }
  0x92   : > { %1088 = vmatmul.mubr.bf16.gmra.mrb[52].mxu0 %v2038_v0  ;;  %1288 = vmatmul.mubr.bf16.gmra.mrb[52].mxu1 %v2039_v1 }
  0x93   : > { %1830 = vmatprep.mubr.msk.bf16.mxu0 %vm800_vm0, %v2040_v2  ;;  %1855 = vmatprep.mubr.msk.bf16.mxu1 %vm800_vm0, %v2042_v3 }
  0x9a   : > { %1096 = vmatmul.mubr.bf16.gmra.mrb[56].mxu0 %v2044_v4  ;;  %1296 = vmatmul.mubr.bf16.gmra.mrb[56].mxu1 %v2045_v5 }
  0x9b   : > { %1831 = vmatprep.mubr.msk.bf16.mxu0 %vm800_vm0, %v2046_v6  ;;  %1856 = vmatprep.mubr.msk.bf16.mxu1 %vm800_vm0, %v2048_v7 }
  0xa2   : > { %1104 = vmatmul.mubr.bf16.gmra.mrb[60].mxu0 %v2050_v8  ;;  %1304 = vmatmul.mubr.bf16.gmra.mrb[60].mxu1 %v2051_v9 }
  0xa3   : > { %1832 = vmatprep.mubr.msk.bf16.mxu0 %vm800_vm0, %v2052_v10  ;;  %1857 = vmatprep.mubr.msk.bf16.mxu1 %vm800_vm0, %v2054_v11 }
  0xaa   : > { %1112 = vmatmul.mubr.bf16.gmra.mrb[64].mxu0 %v2056_v12  ;;  %1312 = vmatmul.mubr.bf16.gmra.mrb[64].mxu1 %v2057_v13 }
  0xab   : > { %1833 = vmatprep.mubr.msk.bf16.mxu0 %vm800_vm0, %v2058_v14  ;;  %1858 = vmatprep.mubr.msk.bf16.mxu1 %vm800_vm0, %v2060_v15 }
  0xb2   : > { %1120 = vmatmul.mubr.bf16.gmra.mrb[68].mxu0 %v2062_v16  ;;  %1320 = vmatmul.mubr.bf16.gmra.mrb[68].mxu1 %v2063_v17 }
  0xb3   : > { %1834 = vmatprep.mubr.msk.bf16.mxu0 %vm800_vm0, %v2064_v18  ;;  %1859 = vmatprep.mubr.msk.bf16.mxu1 %vm800_vm0, %v2066_v19 }
  0xba   : > { %1128 = vmatmul.mubr.bf16.gmra.mrb[72].mxu0 %v2068_v20  ;;  %1328 = vmatmul.mubr.bf16.gmra.mrb[72].mxu1 %v2069_v21 }
  0xbb   : > { %1835 = vmatprep.mubr.msk.bf16.mxu0 %vm800_vm0, %v2070_v22  ;;  %1860 = vmatprep.mubr.msk.bf16.mxu1 %vm800_vm0, %v2072_v23 }
  0xc2   : > { %1136 = vmatmul.mubr.bf16.gmra.mrb[76].mxu0 %v2074_v24  ;;  %1336 = vmatmul.mubr.bf16.gmra.mrb[76].mxu1 %v2075_v25 }
  0xc3   : > { %1836 = vmatprep.mubr.msk.bf16.mxu0 %vm800_vm0, %v2076_v26  ;;  %1861 = vmatprep.mubr.msk.bf16.mxu1 %vm800_vm0, %v2078_v27 }
  0xca   : > { %1144 = vmatmul.mubr.bf16.gmra.mrb[80].mxu0 %v2080_v28  ;;  %1344 = vmatmul.mubr.bf16.gmra.mrb[80].mxu1 %v2081_v29 }
  0xcb   : > { %1837 = vmatprep.mubr.msk.bf16.mxu0 %vm800_vm0, %v2082_v30  ;;  %1862 = vmatprep.mubr.msk.bf16.mxu1 %vm800_vm0, %v2084_v31 }
  0xd2   : > { %1152 = vmatmul.mubr.bf16.gmra.mrb[84].mxu0 %v2086_v32  ;;  %1352 = vmatmul.mubr.bf16.gmra.mrb[84].mxu1 %v2087_v33 }
  0xd3   : > { %1838 = vmatprep.mubr.msk.bf16.mxu0 %vm800_vm0, %v2088_v34  ;;  %1863 = vmatprep.mubr.msk.bf16.mxu1 %vm800_vm0, %v2090_v35 }
  0xda   : > { %1160 = vmatmul.mubr.bf16.gmra.mrb[88].mxu0 %v2092_v36  ;;  %1360 = vmatmul.mubr.bf16.gmra.mrb[88].mxu1 %v2093_v37 }
  0xdb   : > { %1839 = vmatprep.mubr.msk.bf16.mxu0 %vm800_vm0, %v2094_v38  ;;  %1864 = vmatprep.mubr.msk.bf16.mxu1 %vm800_vm0, %v2096_v39 }
  0xe2   : > { %1168 = vmatmul.mubr.bf16.gmra.mrb[92].mxu0 %v2098_v40  ;;  %1368 = vmatmul.mubr.bf16.gmra.mrb[92].mxu1 %v2099_v41 }
  0xe3   : > { %1840 = vmatprep.mubr.msk.bf16.mxu0 %vm800_vm0, %v2100_v42  ;;  %1865 = vmatprep.mubr.msk.bf16.mxu1 %vm800_vm0, %v2102_v43 }
  0xea   : > { %1176 = vmatmul.mubr.bf16.gmra.mrb[96].mxu0 %v2104_v44  ;;  %1376 = vmatmul.mubr.bf16.gmra.mrb[96].mxu1 %v2105_v45 }
  0xfd   : > { %v2327_v46 = vpop.f32.mrb[0].mxu0  ;;  %v2329_v47 = vpop.f32.mrb[0].mxu1 }
  0xfe   : > { %v987_v48 = vpop.f32.mrb[1].mxu0  ;;  %v1187_v49 = vpop.f32.mrb[1].mxu1 }
  0xff   : > { %v2331_v50 = vpop.f32.mrb[2].mxu0  ;;  %v2333_v51 = vpop.f32.mrb[2].mxu1 }
 0x100   : > { %v990_v52 = vpop.f32.mrb[3].mxu0  ;;  %v1190_v53 = vpop.f32.mrb[3].mxu1 }
 0x105   : > { %v2335_v54 = vpop.f32.mrb[4].mxu0  ;;  %v2337_v55 = vpop.f32.mrb[4].mxu1 }
 0x106   : > { %v995_v56 = vpop.f32.mrb[5].mxu0  ;;  %v1195_v57 = vpop.f32.mrb[5].mxu1 }
 0x107   : > { %v2339_v58 = vpop.f32.mrb[6].mxu0  ;;  %v2341_v59 = vpop.f32.mrb[6].mxu1 }
 0x108   : > { %v998_v60 = vpop.f32.mrb[7].mxu0  ;;  %v1198_v61 = vpop.f32.mrb[7].mxu1 }
 0x10d   : > { %v2343_v62 = vpop.f32.mrb[8].mxu0  ;;  %v2345_v63 = vpop.f32.mrb[8].mxu1 }
 0x10e   : > { %v1003_v0 = vpop.f32.mrb[9].mxu0  ;;  %v1203_v1 = vpop.f32.mrb[9].mxu1 }
 0x10f   : > { %v2347_v2 = vpop.f32.mrb[10].mxu0  ;;  %v2349_v3 = vpop.f32.mrb[10].mxu1 }
 0x110   : > { %v1006_v4 = vpop.f32.mrb[11].mxu0  ;;  %v1206_v5 = vpop.f32.mrb[11].mxu1 }
 0x115   : > { %v2351_v6 = vpop.f32.mrb[12].mxu0  ;;  %v2353_v7 = vpop.f32.mrb[12].mxu1 }
 0x116   : > { %v1011_v8 = vpop.f32.mrb[13].mxu0  ;;  %v1211_v9 = vpop.f32.mrb[13].mxu1 }
 0x117   : > { %v2355_v10 = vpop.f32.mrb[14].mxu0  ;;  %v2357_v11 = vpop.f32.mrb[14].mxu1 }
 0x118   : > { %v1014_v12 = vpop.f32.mrb[15].mxu0  ;;  %v1214_v13 = vpop.f32.mrb[15].mxu1 }
 0x11d   : > { %v2359_v14 = vpop.f32.mrb[16].mxu0  ;;  %v2361_v15 = vpop.f32.mrb[16].mxu1 }
 0x11e   : > { %v1019_v16 = vpop.f32.mrb[17].mxu0  ;;  %v1219_v17 = vpop.f32.mrb[17].mxu1 }
 0x11f   : > { %v2363_v18 = vpop.f32.mrb[18].mxu0  ;;  %v2365_v19 = vpop.f32.mrb[18].mxu1 }
 0x120   : > { %v1022_v20 = vpop.f32.mrb[19].mxu0  ;;  %v1222_v21 = vpop.f32.mrb[19].mxu1 }
 0x125   : > { %v2367_v22 = vpop.f32.mrb[20].mxu0  ;;  %v2369_v23 = vpop.f32.mrb[20].mxu1 }
 0x126   : > { %v1027_v24 = vpop.f32.mrb[21].mxu0  ;;  %v1227_v25 = vpop.f32.mrb[21].mxu1 }
 0x127   : > { %v2371_v26 = vpop.f32.mrb[22].mxu0  ;;  %v2373_v27 = vpop.f32.mrb[22].mxu1 }
 0x128   : > { %v1030_v28 = vpop.f32.mrb[23].mxu0  ;;  %v1230_v29 = vpop.f32.mrb[23].mxu1 }
 0x12d   : > { %v2375_v30 = vpop.f32.mrb[24].mxu0  ;;  %v2377_v31 = vpop.f32.mrb[24].mxu1 }
 0x12e   : > { %v1035_v32 = vpop.f32.mrb[25].mxu0  ;;  %v1235_v33 = vpop.f32.mrb[25].mxu1 }
 0x12f   : > { %v2379_v34 = vpop.f32.mrb[26].mxu0  ;;  %v2381_v35 = vpop.f32.mrb[26].mxu1 }
 0x130   : > { %v1038_v36 = vpop.f32.mrb[27].mxu0  ;;  %v1238_v37 = vpop.f32.mrb[27].mxu1 }
 0x135   : > { %v2383_v38 = vpop.f32.mrb[28].mxu0  ;;  %v2385_v39 = vpop.f32.mrb[28].mxu1 }
 0x136   : > { %v1043_v40 = vpop.f32.mrb[29].mxu0  ;;  %v1243_v41 = vpop.f32.mrb[29].mxu1 }
 0x137   : > { %v2387_v42 = vpop.f32.mrb[30].mxu0  ;;  %v2389_v43 = vpop.f32.mrb[30].mxu1 }
 0x138   : > { %v1046_v44 = vpop.f32.mrb[31].mxu0  ;;  %v1246_v45 = vpop.f32.mrb[31].mxu1 }
 0x13d   : > { %v2391_v48 = vpop.f32.mrb[32].mxu0  ;;  %v2393_v49 = vpop.f32.mrb[32].mxu1 }
 0x13e   : > { %v1051_v52 = vpop.f32.mrb[33].mxu0  ;;  %v1251_v53 = vpop.f32.mrb[33].mxu1 }
 0x13f   : > { %v2395_v56 = vpop.f32.mrb[34].mxu0  ;;  %v2397_v57 = vpop.f32.mrb[34].mxu1 }
 0x140   : > { %v1054_v60 = vpop.f32.mrb[35].mxu0  ;;  %v1254_v61 = vpop.f32.mrb[35].mxu1 }
 0x145   : > { %v2399_v0 = vpop.f32.mrb[36].mxu0  ;;  %v2401_v1 = vpop.f32.mrb[36].mxu1 }
 0x146   : > { %v1059_v4 = vpop.f32.mrb[37].mxu0  ;;  %v1259_v5 = vpop.f32.mrb[37].mxu1 }
 0x147   : > { %v2403_v8 = vpop.f32.mrb[38].mxu0  ;;  %v2405_v9 = vpop.f32.mrb[38].mxu1 }
 0x148   : > { %v1062_v12 = vpop.f32.mrb[39].mxu0  ;;  %v1262_v13 = vpop.f32.mrb[39].mxu1 }
 0x14d   : > { %v2407_v16 = vpop.f32.mrb[40].mxu0  ;;  %v2409_v17 = vpop.f32.mrb[40].mxu1 }
 0x14e   : > { %v1067_v20 = vpop.f32.mrb[41].mxu0  ;;  %v1267_v21 = vpop.f32.mrb[41].mxu1 }
 0x14f   : > { %v2411_v24 = vpop.f32.mrb[42].mxu0  ;;  %v2413_v25 = vpop.f32.mrb[42].mxu1 }
 0x150   : > { %v1070_v28 = vpop.f32.mrb[43].mxu0  ;;  %v1270_v29 = vpop.f32.mrb[43].mxu1 }
 0x151   : > { %v2434_v28 = vld [vmem:[%s2569_s2] ss:$0 sm:$0xff] }
 0x155   : > { %v2415_v32 = vpop.f32.mrb[44].mxu0  ;;  %v2417_v33 = vpop.f32.mrb[44].mxu1 }
 0x156   : > { %v1075_v36 = vpop.f32.mrb[45].mxu0  ;;  %v1275_v37 = vpop.f32.mrb[45].mxu1 }
 0x157   : > { %v2419_v40 = vpop.f32.mrb[46].mxu0  ;;  %v2421_v41 = vpop.f32.mrb[46].mxu1 }
 0x158   : > { %v1078_v44 = vpop.f32.mrb[47].mxu0  ;;  %v1278_v45 = vpop.f32.mrb[47].mxu1 }
 0x15d   : > { %v2425_v52 = vpop.f32.mrb[48].mxu0  ;;  %v2427_v53 = vpop.f32.mrb[48].mxu1 }
 0x15e   : > { %v1083_v60 = vpop.f32.mrb[49].mxu0  ;;  %v1283_v61 = vpop.f32.mrb[49].mxu1 }
 0x15f   : > { %v1084_v4 = vpop.f32.mrb[50].mxu0  ;;  %v1284_v5 = vpop.f32.mrb[50].mxu1 }
 0x160   : > { %v1384_v12 = vmax.f32 %v2327_v46, %v1084_v4  ;;  %v1409_v13 = vmax.f32 %v2329_v47, %v1284_v5  ;;  %v1086_v20 = vpop.f32.mrb[51].mxu0  ;;  %v1286_v21 = vpop.f32.mrb[51].mxu1 }
 0x162   : > { %v1434_v29 = vmax.f32 %v1384_v12, %v1409_v13 }
 0x164   : > { %v1466_v36 = vadd.f32 %v2434_v28, %v1434_v29 }
 0x165   : > { %v1089_v37 = vpop.f32.mrb[52].mxu0  ;;  %v1289_v44 = vpop.f32.mrb[52].mxu1 }
 0x166   : > { %v1491_v45 = vmax.f32 %v1466_v36, 0.0  ;;  %v1385_v60 = vmax.f32 %v2331_v50, %v1089_v37  ;;  %v1410_v46 = vmax.f32 %v2333_v51, %v1289_v44  ;;  %v1091_v61 = vpop.f32.mrb[53].mxu0  ;;  %v1291_v47 = vpop.f32.mrb[53].mxu1 }
 0x167   : > { %v1092_v4 = vpop.f32.mrb[54].mxu0  ;;  %v1292_v5 = vpop.f32.mrb[54].mxu1 }
 0x168   : > { %v1895_v12 = vpack.c.bf16 %v1491_v45, %v1491_v45  ;;  %v1435_v13 = vmax.f32 %v1385_v60, %v1410_v46  ;;  %v1386_v20 = vmax.f32 %v2335_v54, %v1092_v4  ;;  %v1411_v21 = vmax.f32 %v2337_v55, %v1292_v5  ;;  %v1094_v50 = vpop.f32.mrb[55].mxu0  ;;  %v1294_v29 = vpop.f32.mrb[55].mxu1 }
 0x16a   : > { %1618 = vst.msk [vmem:[%s2442_s17] sm:$0xf] %vm1617_vm1, %v1895_v12  ;;  %v1467_v51 = vadd.f32 %v2434_v28, %v1435_v13  ;;  %v1436_v36 = vmax.f32 %v1386_v20, %v1411_v21 }
 0x16c   : > { %v1492_v37 = vmax.f32 %v1467_v51, 0.0  ;;  %v1468_v44 = vadd.f32 %v2434_v28, %v1436_v36 }
 0x16d   : > { %v1097_v61 = vpop.f32.mrb[56].mxu0  ;;  %v1297_v47 = vpop.f32.mrb[56].mxu1 }
 0x16e   : > { %v1896_v45 = vpack.c.bf16 %v1492_v37, %v1492_v37  ;;  %v1493_v60 = vmax.f32 %v1468_v44, 0.0  ;;  %v1387_v54 = vmax.f32 %v2339_v58, %v1097_v61  ;;  %v1412_v55 = vmax.f32 %v2341_v59, %v1297_v47  ;;  %v1099_v46 = vpop.f32.mrb[57].mxu0  ;;  %v1299_v4 = vpop.f32.mrb[57].mxu1 }
 0x16f   : > { %v1100_v5 = vpop.f32.mrb[58].mxu0  ;;  %v1300_v50 = vpop.f32.mrb[58].mxu1 }
 0x170   : > { %1619 = vst.msk [vmem:[%s2442_s17 + $0x4] sm:$0xf] %vm1617_vm1, %v1896_v45  ;;  %v1897_v12 = vpack.c.bf16 %v1493_v60, %v1493_v60  ;;  %v1437_v13 = vmax.f32 %v1387_v54, %v1412_v55  ;;  %v1388_v20 = vmax.f32 %v2343_v62, %v1100_v5  ;;  %v1413_v21 = vmax.f32 %v2345_v63, %v1300_v50  ;;  %v1102_v29 = vpop.f32.mrb[59].mxu0  ;;  %v1302_v51 = vpop.f32.mrb[59].mxu1 }
 0x172   : > { %1620 = vst.msk [vmem:[%s2442_s17 + $0x8] sm:$0xf] %vm1617_vm1, %v1897_v12  ;;  %v1469_v58 = vadd.f32 %v2434_v28, %v1437_v13  ;;  %v1438_v59 = vmax.f32 %v1388_v20, %v1413_v21 }
 0x174   : > { %v1494_v36 = vmax.f32 %v1469_v58, 0.0  ;;  %v1470_v37 = vadd.f32 %v2434_v28, %v1438_v59 }
 0x175   : > { %v1105_v44 = vpop.f32.mrb[60].mxu0  ;;  %v1305_v61 = vpop.f32.mrb[60].mxu1 }
 0x176   : > { %v1898_v47 = vpack.c.bf16 %v1494_v36, %v1494_v36  ;;  %v1495_v45 = vmax.f32 %v1470_v37, 0.0  ;;  %v1389_v62 = vmax.f32 %v2347_v2, %v1105_v44  ;;  %v1414_v63 = vmax.f32 %v2349_v3, %v1305_v61  ;;  %v1107_v60 = vpop.f32.mrb[61].mxu0  ;;  %v1307_v54 = vpop.f32.mrb[61].mxu1 }
 0x177   : > { %v1108_v55 = vpop.f32.mrb[62].mxu0  ;;  %v1308_v46 = vpop.f32.mrb[62].mxu1 }
 0x178   : > { %1621 = vst.msk [vmem:[%s2442_s17 + $0xc] sm:$0xf] %vm1617_vm1, %v1898_v47  ;;  %v1899_v4 = vpack.c.bf16 %v1495_v45, %v1495_v45  ;;  %v1439_v5 = vmax.f32 %v1389_v62, %v1414_v63  ;;  %v1390_v50 = vmax.f32 %v2351_v6, %v1108_v55  ;;  %v1415_v12 = vmax.f32 %v2353_v7, %v1308_v46  ;;  %v1110_v13 = vpop.f32.mrb[63].mxu0  ;;  %v1310_v20 = vpop.f32.mrb[63].mxu1 }
 0x17a   : > { %1622 = vst.msk [vmem:[%s2442_s17 + $0x10] sm:$0xf] %vm1617_vm1, %v1899_v4  ;;  %v1471_v2 = vadd.f32 %v2434_v28, %v1439_v5  ;;  %v1440_v3 = vmax.f32 %v1390_v50, %v1415_v12 }
 0x17c   : > { %v1496_v21 = vmax.f32 %v1471_v2, 0.0  ;;  %v1472_v29 = vadd.f32 %v2434_v28, %v1440_v3 }
 0x17d   : > { %v1113_v51 = vpop.f32.mrb[64].mxu0  ;;  %v1313_v58 = vpop.f32.mrb[64].mxu1 }
 0x17e   : > { %v1900_v59 = vpack.c.bf16 %v1496_v21, %v1496_v21  ;;  %v1497_v36 = vmax.f32 %v1472_v29, 0.0  ;;  %v1391_v6 = vmax.f32 %v2355_v10, %v1113_v51  ;;  %v1416_v7 = vmax.f32 %v2357_v11, %v1313_v58  ;;  %v1115_v37 = vpop.f32.mrb[65].mxu0  ;;  %v1315_v44 = vpop.f32.mrb[65].mxu1 }
 0x17f   : > { %v1116_v61 = vpop.f32.mrb[66].mxu0  ;;  %v1316_v47 = vpop.f32.mrb[66].mxu1 }
 0x180   : > { %1623 = vst.msk [vmem:[%s2442_s17 + $0x14] sm:$0xf] %vm1617_vm1, %v1900_v59  ;;  %v1901_v45 = vpack.c.bf16 %v1497_v36, %v1497_v36  ;;  %v1441_v62 = vmax.f32 %v1391_v6, %v1416_v7  ;;  %v1392_v63 = vmax.f32 %v2359_v14, %v1116_v61  ;;  %v1417_v60 = vmax.f32 %v2361_v15, %v1316_v47  ;;  %v1118_v54 = vpop.f32.mrb[67].mxu0  ;;  %v1318_v55 = vpop.f32.mrb[67].mxu1 }
 0x182   : > { %1624 = vst.msk [vmem:[%s2442_s17 + $0x18] sm:$0xf] %vm1617_vm1, %v1901_v45  ;;  %v1473_v10 = vadd.f32 %v2434_v28, %v1441_v62  ;;  %v1442_v11 = vmax.f32 %v1392_v63, %v1417_v60 }
 0x184   : > { %v1498_v46 = vmax.f32 %v1473_v10, 0.0  ;;  %v1474_v4 = vadd.f32 %v2434_v28, %v1442_v11 }
 0x185   : > { %v1121_v5 = vpop.f32.mrb[68].mxu0  ;;  %v1321_v50 = vpop.f32.mrb[68].mxu1 }
 0x186   : > { %v1902_v12 = vpack.c.bf16 %v1498_v46, %v1498_v46  ;;  %v1499_v13 = vmax.f32 %v1474_v4, 0.0  ;;  %v1393_v14 = vmax.f32 %v2363_v18, %v1121_v5  ;;  %v1418_v15 = vmax.f32 %v2365_v19, %v1321_v50  ;;  %v1123_v20 = vpop.f32.mrb[69].mxu0  ;;  %v1323_v2 = vpop.f32.mrb[69].mxu1 }
 0x187   : > { %v1124_v3 = vpop.f32.mrb[70].mxu0  ;;  %v1324_v21 = vpop.f32.mrb[70].mxu1 }
 0x188   : > { %1625 = vst.msk [vmem:[%s2442_s17 + $0x1c] sm:$0xf] %vm1617_vm1, %v1902_v12  ;;  %v1903_v29 = vpack.c.bf16 %v1499_v13, %v1499_v13  ;;  %v1443_v51 = vmax.f32 %v1393_v14, %v1418_v15  ;;  %v1394_v58 = vmax.f32 %v2367_v22, %v1124_v3  ;;  %v1419_v59 = vmax.f32 %v2369_v23, %v1324_v21  ;;  %v1126_v36 = vpop.f32.mrb[71].mxu0  ;;  %v1326_v6 = vpop.f32.mrb[71].mxu1 }
 0x18a   : > { %1626 = vst.msk [vmem:[%s2442_s17 + $0x20] sm:$0xf] %vm1617_vm1, %v1903_v29  ;;  %v1475_v18 = vadd.f32 %v2434_v28, %v1443_v51  ;;  %v1444_v19 = vmax.f32 %v1394_v58, %v1419_v59 }
 0x18c   : > { %v1500_v7 = vmax.f32 %v1475_v18, 0.0  ;;  %v1476_v37 = vadd.f32 %v2434_v28, %v1444_v19 }
 0x18d   : > { %v1129_v44 = vpop.f32.mrb[72].mxu0  ;;  %v1329_v61 = vpop.f32.mrb[72].mxu1 }
 0x18e   : > { %v1904_v47 = vpack.c.bf16 %v1500_v7, %v1500_v7  ;;  %v1501_v45 = vmax.f32 %v1476_v37, 0.0  ;;  %v1395_v22 = vmax.f32 %v2371_v26, %v1129_v44  ;;  %v1420_v23 = vmax.f32 %v2373_v27, %v1329_v61  ;;  %v1131_v62 = vpop.f32.mrb[73].mxu0  ;;  %v1331_v63 = vpop.f32.mrb[73].mxu1 }
 0x18f   : > { %v1132_v60 = vpop.f32.mrb[74].mxu0  ;;  %v1332_v54 = vpop.f32.mrb[74].mxu1 }
 0x190   : > { %1627 = vst.msk [vmem:[%s2442_s17 + $0x24] sm:$0xf] %vm1617_vm1, %v1904_v47  ;;  %v1905_v55 = vpack.c.bf16 %v1501_v45, %v1501_v45  ;;  %v1445_v10 = vmax.f32 %v1395_v22, %v1420_v23  ;;  %v1396_v11 = vmax.f32 %v2375_v30, %v1132_v60  ;;  %v1421_v46 = vmax.f32 %v2377_v31, %v1332_v54  ;;  %v1134_v4 = vpop.f32.mrb[75].mxu0  ;;  %v1334_v5 = vpop.f32.mrb[75].mxu1 }
 0x192   : > { %1628 = vst.msk [vmem:[%s2442_s17 + $0x28] sm:$0xf] %vm1617_vm1, %v1905_v55  ;;  %v1477_v26 = vadd.f32 %v2434_v28, %v1445_v10  ;;  %v1446_v27 = vmax.f32 %v1396_v11, %v1421_v46 }
 0x194   : > { %v1502_v50 = vmax.f32 %v1477_v26, 0.0  ;;  %v1478_v12 = vadd.f32 %v2434_v28, %v1446_v27 }
 0x195   : > { %v1137_v13 = vpop.f32.mrb[76].mxu0  ;;  %v1337_v14 = vpop.f32.mrb[76].mxu1 }
 0x196   : > { %v1906_v15 = vpack.c.bf16 %v1502_v50, %v1502_v50  ;;  %v1503_v20 = vmax.f32 %v1478_v12, 0.0  ;;  %v1397_v30 = vmax.f32 %v2379_v34, %v1137_v13  ;;  %v1422_v31 = vmax.f32 %v2381_v35, %v1337_v14  ;;  %v1139_v2 = vpop.f32.mrb[77].mxu0  ;;  %v1339_v3 = vpop.f32.mrb[77].mxu1 }
 0x197   : > { %v1140_v21 = vpop.f32.mrb[78].mxu0  ;;  %v1340_v29 = vpop.f32.mrb[78].mxu1 }
 0x198   : > { %1629 = vst.msk [vmem:[%s2442_s17 + $0x2c] sm:$0xf] %vm1617_vm1, %v1906_v15  ;;  %v1907_v51 = vpack.c.bf16 %v1503_v20, %v1503_v20  ;;  %v1447_v58 = vmax.f32 %v1397_v30, %v1422_v31  ;;  %v1398_v59 = vmax.f32 %v2383_v38, %v1140_v21  ;;  %v1423_v36 = vmax.f32 %v2385_v39, %v1340_v29  ;;  %v1142_v6 = vpop.f32.mrb[79].mxu0  ;;  %v1342_v18 = vpop.f32.mrb[79].mxu1 }
 0x19a   : > { %1630 = vst.msk [vmem:[%s2442_s17 + $0x30] sm:$0xf] %vm1617_vm1, %v1907_v51  ;;  %v1479_v34 = vadd.f32 %v2434_v28, %v1447_v58  ;;  %v1448_v35 = vmax.f32 %v1398_v59, %v1423_v36 }
 0x19c   : > { %v1504_v19 = vmax.f32 %v1479_v34, 0.0  ;;  %v1480_v7 = vadd.f32 %v2434_v28, %v1448_v35 }
 0x19d   : > { %v1145_v37 = vpop.f32.mrb[80].mxu0  ;;  %v1345_v44 = vpop.f32.mrb[80].mxu1 }
 0x19e   : > { %v1908_v61 = vpack.c.bf16 %v1504_v19, %v1504_v19  ;;  %v1505_v47 = vmax.f32 %v1480_v7, 0.0  ;;  %v1399_v38 = vmax.f32 %v2387_v42, %v1145_v37  ;;  %v1424_v39 = vmax.f32 %v2389_v43, %v1345_v44  ;;  %v1147_v45 = vpop.f32.mrb[81].mxu0  ;;  %v1347_v22 = vpop.f32.mrb[81].mxu1 }
 0x19f   : > { %v1148_v23 = vpop.f32.mrb[82].mxu0  ;;  %v1348_v62 = vpop.f32.mrb[82].mxu1 }
 0x1a0   : > { %1631 = vst.msk [vmem:[%s2442_s17 + $0x34] sm:$0xf] %vm1617_vm1, %v1908_v61  ;;  %v1909_v63 = vpack.c.bf16 %v1505_v47, %v1505_v47  ;;  %v1449_v60 = vmax.f32 %v1399_v38, %v1424_v39  ;;  %v1400_v54 = vmax.f32 %v2391_v48, %v1148_v23  ;;  %v1425_v55 = vmax.f32 %v2393_v49, %v1348_v62  ;;  %v1150_v10 = vpop.f32.mrb[83].mxu0  ;;  %v1350_v11 = vpop.f32.mrb[83].mxu1 }
 0x1a2   : > { %1632 = vst.msk [vmem:[%s2442_s17 + $0x38] sm:$0xf] %vm1617_vm1, %v1909_v63  ;;  %v1481_v42 = vadd.f32 %v2434_v28, %v1449_v60  ;;  %v1450_v43 = vmax.f32 %v1400_v54, %v1425_v55 }
 0x1a4   : > { %v1506_v46 = vmax.f32 %v1481_v42, 0.0  ;;  %v1482_v4 = vadd.f32 %v2434_v28, %v1450_v43 }
 0x1a5   : > { %v1153_v5 = vpop.f32.mrb[84].mxu0  ;;  %v1353_v26 = vpop.f32.mrb[84].mxu1 }
 0x1a6   : > { %v1910_v27 = vpack.c.bf16 %v1506_v46, %v1506_v46  ;;  %v1507_v50 = vmax.f32 %v1482_v4, 0.0  ;;  %v1401_v48 = vmax.f32 %v2395_v56, %v1153_v5  ;;  %v1426_v49 = vmax.f32 %v2397_v57, %v1353_v26  ;;  %v1155_v12 = vpop.f32.mrb[85].mxu0  ;;  %v1355_v13 = vpop.f32.mrb[85].mxu1 }
 0x1a7   : > { %v1156_v14 = vpop.f32.mrb[86].mxu0  ;;  %v1356_v15 = vpop.f32.mrb[86].mxu1 }
 0x1a8   : > { %1633 = vst.msk [vmem:[%s2442_s17 + $0x3c] sm:$0xf] %vm1617_vm1, %v1910_v27  ;;  %v1911_v20 = vpack.c.bf16 %v1507_v50, %v1507_v50  ;;  %v1451_v30 = vmax.f32 %v1401_v48, %v1426_v49  ;;  %v1402_v31 = vmax.f32 %v2399_v0, %v1156_v14  ;;  %v1427_v2 = vmax.f32 %v2401_v1, %v1356_v15  ;;  %v1158_v3 = vpop.f32.mrb[87].mxu0  ;;  %v1358_v21 = vpop.f32.mrb[87].mxu1 }
 0x1aa   : > { %1634 = vst.msk [vmem:[%s2442_s17 + $0x40] sm:$0xf] %vm1617_vm1, %v1911_v20  ;;  %v1483_v56 = vadd.f32 %v2434_v28, %v1451_v30  ;;  %v1452_v57 = vmax.f32 %v1402_v31, %v1427_v2 }
 0x1ac   : > { %v1508_v29 = vmax.f32 %v1483_v56, 0.0  ;;  %v1484_v51 = vadd.f32 %v2434_v28, %v1452_v57 }
 0x1ad   : > { %v1161_v58 = vpop.f32.mrb[88].mxu0  ;;  %v1361_v59 = vpop.f32.mrb[88].mxu1 }
 0x1ae   : > { %v1912_v36 = vpack.c.bf16 %v1508_v29, %v1508_v29  ;;  %v1509_v6 = vmax.f32 %v1484_v51, 0.0  ;;  %v1403_v0 = vmax.f32 %v2403_v8, %v1161_v58  ;;  %v1428_v1 = vmax.f32 %v2405_v9, %v1361_v59  ;;  %v1163_v18 = vpop.f32.mrb[89].mxu0  ;;  %v1363_v34 = vpop.f32.mrb[89].mxu1 }
 0x1af   : > { %v1164_v35 = vpop.f32.mrb[90].mxu0  ;;  %v1364_v19 = vpop.f32.mrb[90].mxu1 }
 0x1b0   : > { %1635 = vst.msk [vmem:[%s2442_s17 + $0x44] sm:$0xf] %vm1617_vm1, %v1912_v36  ;;  %v1913_v7 = vpack.c.bf16 %v1509_v6, %v1509_v6  ;;  %v1453_v37 = vmax.f32 %v1403_v0, %v1428_v1  ;;  %v1404_v44 = vmax.f32 %v2407_v16, %v1164_v35  ;;  %v1429_v61 = vmax.f32 %v2409_v17, %v1364_v19  ;;  %v1166_v47 = vpop.f32.mrb[91].mxu0  ;;  %v1366_v38 = vpop.f32.mrb[91].mxu1 }
 0x1b2   : > { %1636 = vst.msk [vmem:[%s2442_s17 + $0x48] sm:$0xf] %vm1617_vm1, %v1913_v7  ;;  %v1485_v8 = vadd.f32 %v2434_v28, %v1453_v37  ;;  %v1454_v9 = vmax.f32 %v1404_v44, %v1429_v61 }
 0x1b4   : > { %v1510_v39 = vmax.f32 %v1485_v8, 0.0  ;;  %v1486_v45 = vadd.f32 %v2434_v28, %v1454_v9 }
 0x1b5   : > { %v1169_v22 = vpop.f32.mrb[92].mxu0  ;;  %v1369_v23 = vpop.f32.mrb[92].mxu1 }
 0x1b6   : > { %v1914_v62 = vpack.c.bf16 %v1510_v39, %v1510_v39  ;;  %v1511_v63 = vmax.f32 %v1486_v45, 0.0  ;;  %v1405_v16 = vmax.f32 %v2411_v24, %v1169_v22  ;;  %v1430_v17 = vmax.f32 %v2413_v25, %v1369_v23  ;;  %v1171_v60 = vpop.f32.mrb[93].mxu0  ;;  %v1371_v54 = vpop.f32.mrb[93].mxu1 }
 0x1b7   : > { %v1172_v55 = vpop.f32.mrb[94].mxu0  ;;  %v1372_v10 = vpop.f32.mrb[94].mxu1 }
 0x1b8   : > { %1637 = vst.msk [vmem:[%s2442_s17 + $0x4c] sm:$0xf] %vm1617_vm1, %v1914_v62  ;;  %v1915_v11 = vpack.c.bf16 %v1511_v63, %v1511_v63  ;;  %v1455_v42 = vmax.f32 %v1405_v16, %v1430_v17  ;;  %v1406_v43 = vmax.f32 %v2415_v32, %v1172_v55  ;;  %v1431_v46 = vmax.f32 %v2417_v33, %v1372_v10  ;;  %v1174_v4 = vpop.f32.mrb[95].mxu0  ;;  %v1374_v5 = vpop.f32.mrb[95].mxu1 }
 0x1ba   : > { %1638 = vst.msk [vmem:[%s2442_s17 + $0x50] sm:$0xf] %vm1617_vm1, %v1915_v11  ;;  %v1487_v24 = vadd.f32 %v2434_v28, %v1455_v42  ;;  %v1456_v25 = vmax.f32 %v1406_v43, %v1431_v46 }
 0x1bc   : > { %v1512_v26 = vmax.f32 %v1487_v24, 0.0  ;;  %v1488_v27 = vadd.f32 %v2434_v28, %v1456_v25 }
 0x1bd   : > { %v1177_v50 = vpop.f32.mrb[96].mxu0  ;;  %v1377_v48 = vpop.f32.mrb[96].mxu1 }
 0x1be   : > { %v1916_v49 = vpack.c.bf16 %v1512_v26, %v1512_v26  ;;  %v1513_v12 = vmax.f32 %v1488_v27, 0.0  ;;  %v1407_v32 = vmax.f32 %v2419_v40, %v1177_v50  ;;  %v1432_v33 = vmax.f32 %v2421_v41, %v1377_v48  ;;  %v1179_v13 = vpop.f32.mrb[97].mxu0  ;;  %v1379_v14 = vpop.f32.mrb[97].mxu1 }
 0x1bf   : > { %v1180_v15 = vpop.f32.mrb[98].mxu0  ;;  %v1380_v20 = vpop.f32.mrb[98].mxu1 }
 0x1c0   : > { %1639 = vst.msk [vmem:[%s2442_s17 + $0x54] sm:$0xf] %vm1617_vm1, %v1916_v49  ;;  %v1917_v30 = vpack.c.bf16 %v1513_v12, %v1513_v12  ;;  %v1457_v31 = vmax.f32 %v1407_v32, %v1432_v33  ;;  %v1408_v2 = vmax.f32 %v2425_v52, %v1180_v15  ;;  %v1433_v3 = vmax.f32 %v2427_v53, %v1380_v20  ;;  %v1182_v21 = vpop.f32.mrb[99].mxu0  ;;  %v1382_v56 = vpop.f32.mrb[99].mxu1 }
 0x1c2   : > { %1640 = vst.msk [vmem:[%s2442_s17 + $0x58] sm:$0xf] %vm1617_vm1, %v1917_v30  ;;  %v1489_v40 = vadd.f32 %v2434_v28, %v1457_v31  ;;  %v1458_v41 = vmax.f32 %v1408_v2, %v1433_v3 }
 0x1c4   : > { %v1514_v57 = vmax.f32 %v1489_v40, 0.0  ;;  %v1490_v29 = vadd.f32 %v2434_v28, %v1458_v41 }
 0x1c6   : > { %v1918_v51 = vpack.c.bf16 %v1514_v57, %v1514_v57  ;;  %v1515_v58 = vmax.f32 %v1490_v29, 0.0 }
 0x1c8   : > { %1641 = vst.msk [vmem:[%s2442_s17 + $0x5c] sm:$0xf] %vm1617_vm1, %v1918_v51  ;;  %v1919_v59 = vpack.c.bf16 %v1515_v58, %v1515_v58 }
 0x1ca   : > { %1642 = vst.msk [vmem:[%s2442_s17 + $0x60] sm:$0xf] %vm1617_vm1, %v1919_v59 }
 0x1cb PF: > { %s13_s12 = sadd.s32 1, %s2112_s12  }
 0x1cc   : > { %p10_p5 = scmp.ge.s32.totalorder %s13_s12, 4  }
 0x1ce   :  { %12 = sbr.rel (!%p10_p5) target bundleno = 1 (0x1), region = 62 }

// kernel: cnn_forward.5
= control target key start
LH: loop header
LB: loop body
LE: loop exit
PB: predicated region body
PF: predicated region fallthrough
CT: control target
= control target key end

     0   :  { %vm871_vm0 = vcmask 261120   ;;  %vm1836_vm1 = vmmov 0   ;;  %s2267_s0 = inlined_call_operand.vmem [shape: bf16[8,1568], index: 0, kind: input, shape index: {}]   ;;  %s2268_s1 = inlined_call_operand.vmem [shape: bf16[1568,128], index: 1, kind: input, shape index: {}]   ;;  %s2269_s2 = inlined_call_operand.vmem [shape: f32[1,128], index: 2, kind: input, shape index: {}]   ;;  %s2270_s3 = inlined_call_operand.vmem [shape: bf16[128,64], index: 3, kind: input, shape index: {}]   ;;  %s2271_s4 = inlined_call_operand.vmem [shape: f32[1,64], index: 4, kind: input, shape index: {}]   ;;  %s2272_s5 = inlined_call_operand.vmem [shape: bf16[64,128], index: 5, kind: input, shape index: {}]   ;;  %s2273_s6 = inlined_call_operand.vmem [shape: f32[1,128], index: 6, kind: input, shape index: {}]   ;;  %s2274_s7 = inlined_call_operand.hbm [shape: f32[8,128], index: 7, kind: output, shape index: {}]  }
   0x1   :  { %v1688_v0 = vld [vmem:[%s2268_s1 + $0x40] sm:$0xff]   ;;  %v1692_v4 = vld [vmem:[%s2268_s1 + $0x48] sm:$0xff]   ;;  %v1696_v8 = vld [vmem:[%s2268_s1 + $0x50] sm:$0xff]  }
   0x2   :  { %v1689_v1 = vld [vmem:[%s2268_s1] sm:$0xff]   ;;  %1496 = vmatprep.subr.bf16.mxu0 %v1688_v0  ;;  %v1693_v5 = vld [vmem:[%s2268_s1 + $0x8] sm:$0xff]   ;;  %v1697_v9 = vld [vmem:[%s2268_s1 + $0x10] sm:$0xff]  }
   0x3   :  { %v1690_v2 = vld [vmem:[%s2268_s1 + $0xc0] sm:$0xff]   ;;  %1497 = vmatpush3.bf16.msra.mxu0 %v1689_v1  ;;  %v1694_v6 = vld [vmem:[%s2268_s1 + $0xc8] sm:$0xff]   ;;  %v1698_v10 = vld [vmem:[%s2268_s1 + $0xd0] sm:$0xff]  }
   0x4   :  { %v1691_v3 = vld [vmem:[%s2268_s1 + $0x80] sm:$0xff]   ;;  %1518 = vmatprep.subr.bf16.mxu1 %v1690_v2  ;;  %1498 = vmatprep.subr.bf16.mxu0 %v1692_v4  ;;  %v1695_v7 = vld [vmem:[%s2268_s1 + $0x88] sm:$0xff]   ;;  %v1699_v11 = vld [vmem:[%s2268_s1 + $0x90] sm:$0xff]  }
   0x5   :  { %1519 = vmatpush3.bf16.msra.mxu1 %v1691_v3  ;;  %v1700_v12 = vld [vmem:[%s2268_s1 + $0x58] sm:$0xff]   ;;  %v1704_v16 = vld [vmem:[%s2268_s1 + $0x60] sm:$0xff]   ;;  %v1708_v20 = vld [vmem:[%s2268_s1 + $0x68] sm:$0xff]  }
   0x6   :  { %1520 = vmatprep.subr.bf16.mxu1 %v1694_v6  ;;  %v1701_v13 = vld [vmem:[%s2268_s1 + $0x18] sm:$0xff]   ;;  %v1705_v17 = vld [vmem:[%s2268_s1 + $0x20] sm:$0xff]   ;;  %v1709_v21 = vld [vmem:[%s2268_s1 + $0x28] sm:$0xff]  }
   0x7   :  { %1499 = vmatpush3.bf16.msra.mxu0 %v1693_v5  ;;  %v1702_v14 = vld [vmem:[%s2268_s1 + $0xd8] sm:$0xff]   ;;  %v1706_v18 = vld [vmem:[%s2268_s1 + $0xe0] sm:$0xff]   ;;  %v1710_v22 = vld [vmem:[%s2268_s1 + $0xe8] sm:$0xff]  }
   0x8   :  { %1500 = vmatprep.subr.bf16.mxu0 %v1696_v8  ;;  %v1703_v15 = vld [vmem:[%s2268_s1 + $0x98] sm:$0xff]   ;;  %v1707_v19 = vld [vmem:[%s2268_s1 + $0xa0] sm:$0xff]   ;;  %v1711_v23 = vld [vmem:[%s2268_s1 + $0xa8] sm:$0xff]  }
   0x9   :  { %1521 = vmatpush3.bf16.msra.mxu1 %v1695_v7  ;;  %v1712_v24 = vld [vmem:[%s2268_s1 + $0x70] sm:$0xff]   ;;  %v1716_v28 = vld [vmem:[%s2268_s1 + $0x78] sm:$0xff]   ;;  %v28_v32 = vld [vmem:[%s2267_s0] sm:$0xff] }
   0xa   :  { %1522 = vmatprep.subr.bf16.mxu1 %v1698_v10  ;;  %v1713_v25 = vld [vmem:[%s2268_s1 + $0x30] sm:$0xff]   ;;  %v1717_v29 = vld [vmem:[%s2268_s1 + $0x38] sm:$0xff]   ;;  %v1369_v33 = vcombine.low %v28_v32, %v28_v32  ;;  %v1370_v34 = vcombine.high %v28_v32, %v28_v32  ;;  %v1722_v35 = vld [vmem:[%s2268_s1 + $0x140] sm:$0xff]  }
   0xb   :  { %1501 = vmatpush3.bf16.msra.mxu0 %v1697_v9  ;;  %v1714_v26 = vld [vmem:[%s2268_s1 + $0xf0] sm:$0xff]   ;;  %v1718_v30 = vld [vmem:[%s2268_s1 + $0xf8] sm:$0xff]   ;;  %v29_v36 = vld [vmem:[%s2267_s0 + $0x8] sm:$0xff] }
   0xc   :  { %1502 = vmatprep.subr.bf16.mxu0 %v1700_v12  ;;  %v1715_v27 = vld [vmem:[%s2268_s1 + $0xb0] sm:$0xff]   ;;  %v1719_v31 = vld [vmem:[%s2268_s1 + $0xb8] sm:$0xff]   ;;  %v1371_v37 = vcombine.low %v29_v36, %v29_v36  ;;  %v1372_v38 = vcombine.high %v29_v36, %v29_v36  ;;  %v1725_v39 = vld [vmem:[%s2268_s1 + $0x100] sm:$0xff]   ;;  %907 = vmatprep.mubr.bf16.mxu0 %v1370_v34 }
   0xd   :  { %1523 = vmatpush3.bf16.msra.mxu1 %v1699_v11  ;;  %v1726_v40 = vld [vmem:[%s2268_s1 + $0x1c0] sm:$0xff]   ;;  %v1728_v42 = vld [vmem:[%s2268_s1 + $0x148] sm:$0xff]   ;;  %v1732_v46 = vld [vmem:[%s2268_s1 + $0x150] sm:$0xff]  }
   0xe   :  { %1524 = vmatprep.subr.bf16.mxu1 %v1702_v14  ;;  %947 = vmatprep.mubr.bf16.mxu1 %v1372_v38  ;;  %v1727_v41 = vld [vmem:[%s2268_s1 + $0x180] sm:$0xff]   ;;  %v1729_v43 = vld [vmem:[%s2268_s1 + $0x108] sm:$0xff]   ;;  %v1733_v47 = vld [vmem:[%s2268_s1 + $0x110] sm:$0xff]  }
   0xf   :  { %1503 = vmatpush3.bf16.msra.mxu0 %v1701_v13  ;;  %v1730_v44 = vld [vmem:[%s2268_s1 + $0x1c8] sm:$0xff]   ;;  %v1734_v48 = vld [vmem:[%s2268_s1 + $0x1d0] sm:$0xff]   ;;  %v1736_v50 = vld [vmem:[%s2268_s1 + $0x158] sm:$0xff]  }
  0x10   :  { %1504 = vmatprep.subr.bf16.mxu0 %v1704_v16  ;;  %v1731_v45 = vld [vmem:[%s2268_s1 + $0x188] sm:$0xff]   ;;  %v1735_v49 = vld [vmem:[%s2268_s1 + $0x190] sm:$0xff]   ;;  %v1737_v51 = vld [vmem:[%s2268_s1 + $0x118] sm:$0xff]  }
  0x11   :  { %1525 = vmatpush3.bf16.msra.mxu1 %v1703_v15  ;;  %v1738_v52 = vld [vmem:[%s2268_s1 + $0x1d8] sm:$0xff]   ;;  %v1740_v54 = vld [vmem:[%s2268_s1 + $0x160] sm:$0xff]   ;;  %v1744_v58 = vld [vmem:[%s2268_s1 + $0x168] sm:$0xff]  }
  0x12   :  { %1526 = vmatprep.subr.bf16.mxu1 %v1706_v18  ;;  %v1739_v53 = vld [vmem:[%s2268_s1 + $0x198] sm:$0xff]   ;;  %v1741_v55 = vld [vmem:[%s2268_s1 + $0x120] sm:$0xff]   ;;  %v1745_v59 = vld [vmem:[%s2268_s1 + $0x128] sm:$0xff]  }
  0x13   :  { %1505 = vmatpush3.bf16.msra.mxu0 %v1705_v17  ;;  %v1742_v56 = vld [vmem:[%s2268_s1 + $0x1e0] sm:$0xff]   ;;  %v1746_v60 = vld [vmem:[%s2268_s1 + $0x1e8] sm:$0xff]   ;;  %v1748_v62 = vld [vmem:[%s2268_s1 + $0x170] sm:$0xff]  }
  0x14   :  { %1506 = vmatprep.subr.bf16.mxu0 %v1708_v20  ;;  %v1743_v57 = vld [vmem:[%s2268_s1 + $0x1a0] sm:$0xff]   ;;  %v1747_v61 = vld [vmem:[%s2268_s1 + $0x1a8] sm:$0xff]   ;;  %v1749_v63 = vld [vmem:[%s2268_s1 + $0x130] sm:$0xff]  }
  0x15   :  { %1527 = vmatpush3.bf16.msra.mxu1 %v1707_v19  ;;  %v1750_v0 = vld [vmem:[%s2268_s1 + $0x1f0] sm:$0xff]   ;;  %v1752_v2 = vld [vmem:[%s2268_s1 + $0x178] sm:$0xff]   ;;  %v1758_v9 = vld [vmem:[%s2268_s1 + $0x240] sm:$0xff]  }
  0x16   :  { %1528 = vmatprep.subr.bf16.mxu1 %v1710_v22  ;;  %v1751_v1 = vld [vmem:[%s2268_s1 + $0x1b0] sm:$0xff]   ;;  %v1753_v3 = vld [vmem:[%s2268_s1 + $0x138] sm:$0xff]   ;;  %v1761_v13 = vld [vmem:[%s2268_s1 + $0x200] sm:$0xff]  }
  0x17   :  { %1507 = vmatpush3.bf16.msra.mxu0 %v1709_v21  ;;  %v1754_v4 = vld [vmem:[%s2268_s1 + $0x1f8] sm:$0xff]   ;;  %v30_v6 = vld [vmem:[%s2267_s0 + $0x10] sm:$0xff]  ;;  %v1762_v14 = vld [vmem:[%s2268_s1 + $0x2c0] sm:$0xff]  }
  0x18   :  { %1508 = vmatprep.subr.bf16.mxu0 %v1712_v24  ;;  %v1755_v5 = vld [vmem:[%s2268_s1 + $0x1b8] sm:$0xff]   ;;  %v1373_v7 = vcombine.low %v30_v6, %v30_v6  ;;  %v1374_v8 = vcombine.high %v30_v6, %v30_v6  ;;  %v1763_v15 = vld [vmem:[%s2268_s1 + $0x280] sm:$0xff]   ;;  %v1764_v16 = vld [vmem:[%s2268_s1 + $0x248] sm:$0xff]  }
  0x19   :  { %1529 = vmatpush3.bf16.msra.mxu1 %v1711_v23  ;;  %v31_v10 = vld [vmem:[%s2267_s0 + $0x18] sm:$0xff]  ;;  %v1765_v17 = vld [vmem:[%s2268_s1 + $0x208] sm:$0xff]   ;;  %v1768_v20 = vld [vmem:[%s2268_s1 + $0x250] sm:$0xff]  }
  0x1a   :  { %1530 = vmatprep.subr.bf16.mxu1 %v1714_v26  ;;  %v1375_v11 = vcombine.low %v31_v10, %v31_v10  ;;  %v1376_v12 = vcombine.high %v31_v10, %v31_v10  ;;  %v1766_v18 = vld [vmem:[%s2268_s1 + $0x2c8] sm:$0xff]   ;;  %v1769_v21 = vld [vmem:[%s2268_s1 + $0x210] sm:$0xff]   ;;  %v1772_v24 = vld [vmem:[%s2268_s1 + $0x258] sm:$0xff]  }
  0x1b   :  { %1509 = vmatpush3.bf16.msra.mxu0 %v1713_v25  ;;  %v1767_v19 = vld [vmem:[%s2268_s1 + $0x288] sm:$0xff]   ;;  %v1770_v22 = vld [vmem:[%s2268_s1 + $0x2d0] sm:$0xff]   ;;  %v1773_v25 = vld [vmem:[%s2268_s1 + $0x218] sm:$0xff]  }
  0x1c   :  { %1510 = vmatprep.subr.bf16.mxu0 %v1716_v28  ;;  %v1771_v23 = vld [vmem:[%s2268_s1 + $0x290] sm:$0xff]   ;;  %v1774_v26 = vld [vmem:[%s2268_s1 + $0x2d8] sm:$0xff]   ;;  %v1776_v28 = vld [vmem:[%s2268_s1 + $0x260] sm:$0xff]  }
  0x1d   :  { %1531 = vmatpush3.bf16.msra.mxu1 %v1715_v27  ;;  %v1775_v27 = vld [vmem:[%s2268_s1 + $0x298] sm:$0xff]   ;;  %v1780_v32 = vld [vmem:[%s2268_s1 + $0x268] sm:$0xff]   ;;  %v1784_v36 = vld [vmem:[%s2268_s1 + $0x270] sm:$0xff]  }
  0x1e   :  { %1532 = vmatprep.subr.bf16.mxu1 %v1718_v30  ;;  %v1778_v30 = vld [vmem:[%s2268_s1 + $0x2e0] sm:$0xff]   ;;  %v1782_v34 = vld [vmem:[%s2268_s1 + $0x2e8] sm:$0xff]   ;;  %v1786_v38 = vld [vmem:[%s2268_s1 + $0x2f0] sm:$0xff]  }
  0x1f   :  { %1511 = vmatpush3.bf16.msra.mxu0 %v1717_v29  ;;  %v1777_v29 = vld [vmem:[%s2268_s1 + $0x220] sm:$0xff]  }
  0x20   :  { %1540 = vmatprep.subr.bf16.mxu0 %v1722_v35  ;;  %v1783_v35 = vld [vmem:[%s2268_s1 + $0x2a8] sm:$0xff]  }
  0x21   :  { %1533 = vmatpush3.bf16.msra.mxu1 %v1719_v31  ;;  %v1779_v31 = vld [vmem:[%s2268_s1 + $0x2a0] sm:$0xff]  }
  0x22   :  { %908 = vmatmul.mubr.bf16.vlgmr.msra.gmra.mrb[0].mxu0 %v1369_v33  ;;  %1562 = vmatprep.subr.bf16.mxu1 %v1726_v40  ;;  %v1781_v33 = vld [vmem:[%s2268_s1 + $0x228] sm:$0xff]   ;;  %v1788_v40 = vld [vmem:[%s2268_s1 + $0x278] sm:$0xff]  }
  0x23   :  { %1541 = vmatpush3.bf16.msra.mxu0 %v1725_v39  ;;  %987 = vmatprep.mubr.bf16.mxu0 %v1374_v8  ;;  %v1787_v39 = vld [vmem:[%s2268_s1 + $0x2b0] sm:$0xff]  }
  0x24   :  { %948 = vmatmul.mubr.bf16.vlgmr.msra.gmra.mrb[0].mxu1 %v1371_v37  ;;  %1542 = vmatprep.subr.bf16.mxu0 %v1728_v42  ;;  %v1785_v37 = vld [vmem:[%s2268_s1 + $0x230] sm:$0xff]   ;;  %v1790_v42 = vld [vmem:[%s2268_s1 + $0x2f8] sm:$0xff]  }
  0x25   :  { %1563 = vmatpush3.bf16.msra.mxu1 %v1727_v41  ;;  %1027 = vmatprep.mubr.bf16.mxu1 %v1376_v12  ;;  %v1789_v41 = vld [vmem:[%s2268_s1 + $0x238] sm:$0xff]  }
  0x26   :  { %1564 = vmatprep.subr.bf16.mxu1 %v1730_v44  ;;  %v32_v44 = vld [vmem:[%s2267_s0 + $0x20] sm:$0xff] }
  0x27   :  { %1543 = vmatpush3.bf16.msra.mxu0 %v1729_v43  ;;  %v1791_v43 = vld [vmem:[%s2268_s1 + $0x2b8] sm:$0xff]  }
  0x28   :  { %1544 = vmatprep.subr.bf16.mxu0 %v1732_v46  ;;  %v1377_v46 = vcombine.low %v32_v44, %v32_v44 }
  0x29   :  { %1565 = vmatpush3.bf16.msra.mxu1 %v1731_v45  ;;  %v33_v45 = vld [vmem:[%s2267_s0 + $0x28] sm:$0xff] }
  0x2a   :  { %1566 = vmatprep.subr.bf16.mxu1 %v1734_v48  ;;  %v1379_v48 = vcombine.low %v33_v45, %v33_v45 }
  0x2b   :  { %1545 = vmatpush3.bf16.msra.mxu0 %v1733_v47  ;;  %v1378_v47 = vcombine.high %v32_v44, %v32_v44 }
  0x2c   :  { %1546 = vmatprep.subr.bf16.mxu0 %v1736_v50  ;;  %v1796_v50 = vld [vmem:[%s2268_s1 + $0x300] sm:$0xff]  }
  0x2d   :  { %1567 = vmatpush3.bf16.msra.mxu1 %v1735_v49  ;;  %v1380_v49 = vcombine.high %v33_v45, %v33_v45 }
  0x2e   :  { %1568 = vmatprep.subr.bf16.mxu1 %v1738_v52  ;;  %v1797_v52 = vld [vmem:[%s2268_s1 + $0x308] sm:$0xff]  }
  0x2f   :  { %1547 = vmatpush3.bf16.msra.mxu0 %v1737_v51  ;;  %v1835_v51 = vmov 0.0  }
  0x30   :  { %1548 = vmatprep.subr.bf16.mxu0 %v1740_v54 }
  0x31   :  { %1569 = vmatpush3.bf16.msra.mxu1 %v1739_v53  ;;  %v1798_v53 = vld [vmem:[%s2267_s0 + $0x30] ss:$0 sps:$4 sm:$0xff]  }
  0x32   :  { %1570 = vmatprep.subr.bf16.mxu1 %v1742_v56 }
  0x33   :  { %1549 = vmatpush3.bf16.msra.mxu0 %v1741_v55 }
  0x34   :  { %1550 = vmatprep.subr.bf16.mxu0 %v1744_v58 }
  0x35   :  { %1571 = vmatpush3.bf16.msra.mxu1 %v1743_v57 }
  0x36   :  { %1572 = vmatprep.subr.bf16.mxu1 %v1746_v60 }
  0x37   :  { %1551 = vmatpush3.bf16.msra.mxu0 %v1745_v59 }
  0x38   :  { %1552 = vmatprep.subr.bf16.mxu0 %v1748_v62 }
  0x39   :  { %1573 = vmatpush3.bf16.msra.mxu1 %v1747_v61 }
  0x3a   :  { %1574 = vmatprep.subr.bf16.mxu1 %v1750_v0 }
  0x3b   :  { %1553 = vmatpush3.bf16.msra.mxu0 %v1749_v63 }
  0x3c   :  { %1554 = vmatprep.subr.bf16.mxu0 %v1752_v2 }
  0x3d   :  { %1575 = vmatpush3.bf16.msra.mxu1 %v1751_v1 }
  0x3e   :  { %1576 = vmatprep.subr.bf16.mxu1 %v1754_v4 }
  0x3f   :  { %1555 = vmatpush3.bf16.msra.mxu0 %v1753_v3 }
  0x40   :  { %1584 = vmatprep.subr.bf16.mxu0 %v1758_v9 }
  0x41   :  { %1577 = vmatpush3.bf16.msra.mxu1 %v1755_v5 }
  0x42   :  { %988 = vmatmul.mubr.bf16.vlgmr.msra.gmra.mrb[4].mxu0 %v1373_v7  ;;  %1606 = vmatprep.subr.bf16.mxu1 %v1762_v14 }
  0x43   :  { %1585 = vmatpush3.bf16.msra.mxu0 %v1761_v13  ;;  %1067 = vmatprep.mubr.bf16.mxu0 %v1378_v47 }
  0x44   :  { %1028 = vmatmul.mubr.bf16.vlgmr.msra.gmra.mrb[4].mxu1 %v1375_v11  ;;  %1586 = vmatprep.subr.bf16.mxu0 %v1764_v16 }
  0x45   :  { %1607 = vmatpush3.bf16.msra.mxu1 %v1763_v15  ;;  %1107 = vmatprep.mubr.bf16.mxu1 %v1380_v49 }
  0x46   :  { %1608 = vmatprep.subr.bf16.mxu1 %v1766_v18 }
  0x47   :  { %1587 = vmatpush3.bf16.msra.mxu0 %v1765_v17 }
  0x48   :  { %1588 = vmatprep.subr.bf16.mxu0 %v1768_v20 }
  0x49   :  { %1609 = vmatpush3.bf16.msra.mxu1 %v1767_v19 }
  0x4a   :  { %1610 = vmatprep.subr.bf16.mxu1 %v1770_v22 }
  0x4b   :  { %1589 = vmatpush3.bf16.msra.mxu0 %v1769_v21 }
  0x4c   :  { %1590 = vmatprep.subr.bf16.mxu0 %v1772_v24 }
  0x4d   :  { %1611 = vmatpush3.bf16.msra.mxu1 %v1771_v23 }
  0x4e   :  { %1612 = vmatprep.subr.bf16.mxu1 %v1774_v26 }
  0x4f   :  { %1591 = vmatpush3.bf16.msra.mxu0 %v1773_v25 }
  0x50   :  { %1592 = vmatprep.subr.bf16.mxu0 %v1776_v28 }
  0x51   :  { %1613 = vmatpush3.bf16.msra.mxu1 %v1775_v27 }
  0x52   :  { %1614 = vmatprep.subr.bf16.mxu1 %v1778_v30 }
  0x53   :  { %1593 = vmatpush3.bf16.msra.mxu0 %v1777_v29 }
  0x54   :  { %1594 = vmatprep.subr.bf16.mxu0 %v1780_v32 }
  0x55   :  { %1615 = vmatpush3.bf16.msra.mxu1 %v1779_v31 }
  0x56   :  { %1616 = vmatprep.subr.bf16.mxu1 %v1782_v34 }
  0x57   :  { %1595 = vmatpush3.bf16.msra.mxu0 %v1781_v33 }
  0x58   :  { %1596 = vmatprep.subr.bf16.mxu0 %v1784_v36 }
  0x59   :  { %1617 = vmatpush3.bf16.msra.mxu1 %v1783_v35 }
  0x5a   :  { %1618 = vmatprep.subr.bf16.mxu1 %v1786_v38 }
  0x5b   :  { %1597 = vmatpush3.bf16.msra.mxu0 %v1785_v37 }
  0x5c   :  { %1598 = vmatprep.subr.bf16.mxu0 %v1788_v40 }
  0x5d   :  { %1619 = vmatpush3.bf16.msra.mxu1 %v1787_v39 }
  0x5e   :  { %1620 = vmatprep.subr.bf16.mxu1 %v1790_v42 }
  0x5f   :  { %1599 = vmatpush3.bf16.msra.mxu0 %v1789_v41 }
  0x60   :  { %1645 = vmatprep.subr.bf16.mxu0 %v1835_v51 }
  0x61   :  { %1621 = vmatpush3.bf16.msra.mxu1 %v1791_v43 }
  0x62   :  { %1068 = vmatmul.mubr.bf16.vlgmr.msra.gmra.mrb[8].mxu0 %v1377_v46  ;;  %1653 = vmatprep.subr.bf16.mxu1 %v1835_v51 }
  0x63   :  { %1646 = vmatpush3.bf16.msra.mxu0 %v1796_v50  ;;  %1649 = vmatprep.mubr.msk.bf16.mxu0 %vm1836_vm1, %v1835_v51 }
  0x64   :  { %1108 = vmatmul.mubr.bf16.vlgmr.msra.gmra.mrb[8].mxu1 %v1379_v48  ;;  %1647 = vmatprep.subr.bf16.mxu0 %v1835_v51 }
  0x65   :  { %1669 = vmatprep.mubr.msk.bf16.mxu1 %vm1836_vm1, %v1835_v51 }
  0x67   :  { %1648 = vmatpush3.bf16.msra.mxu0 %v1797_v52 }
  0x68   :  { %1673 = vmatprep.subr.bf16.mxu0 %v1835_v51 }
  0x69   :  { %12 = vsyncpa [#allocation3], 0  ;;  %v1799_v54 = vld [vmem:[%s2270_s3] sm:$0xff]   ;;  %v1800_v55 = vld [vmem:[%s2270_s3 + $0x8] sm:$0xff]   ;;  %vm1309_vm2 = vcmask 523264   ;;  %s1837_s29 = smov [#allocation2]  }
  0x6a   :  { %1650 = vmatmul.mubr.msk.bf16.vlgmr.msra.gmra.mrb[12].mxu0 %vm871_vm0, %v1798_v53  ;;  %1654 = vmatpush3.bf16.msra.mxu1 %v1799_v54  ;;  %v1801_v56 = vld [vmem:[%s2270_s3 + $0x10] sm:$0xff]   ;;  %v1802_v57 = vld [vmem:[%s2270_s3 + $0x18] sm:$0xff]   ;;  %v1803_v58 = vld [vmem:[%s2270_s3 + $0x20] sm:$0xff]  }
  0x6b   :  { %1681 = vmatprep.mubr.msk.bf16.mxu0 %vm1836_vm1, %v1835_v51  ;;  %1655 = vmatprep.subr.bf16.mxu1 %v1835_v51  ;;  %v1804_v59 = vld [vmem:[%s2270_s3 + $0x28] sm:$0xff]   ;;  %v1805_v60 = vld [vmem:[%s2270_s3 + $0x30] sm:$0xff]   ;;  %v1806_v61 = vld [vmem:[%s2270_s3 + $0x38] sm:$0xff]  }
  0x6c   :  { %v1807_v62 = vld [vmem:[%s2272_s5] sm:$0xff]   ;;  %v1808_v63 = vld [vmem:[%s2272_s5 + $0x8] sm:$0xff]   ;;  %v1809_v44 = vld [vmem:[%s2272_s5 + $0x10] sm:$0xff]  }
  0x6d   :  { %1674 = vmatpush3.bf16.msra.mxu0 %v1807_v62  ;;  %v1368_v1 = vld [vmem:[%s2269_s2] ss:$0 sm:$0xff]  ;;  %v1810_v45 = vld [vmem:[%s2272_s5 + $0x18] sm:$0xff]   ;;  %s1360_s5 = sshll.u32 %s1837_s29, 4  ;;  %s1361_s5 = int_to_ptr.vmem [resolvable:$true] %s1360_s5 }
  0x6e   :  { %1656 = vmatpush3.bf16.msra.mxu1 %v1800_v55  ;;  %1675 = vmatprep.subr.bf16.mxu0 %v1835_v51  ;;  %v1481_v46 = vld [vmem:[%s2271_s4] ss:$0 sm:$0xff]  ;;  %s1811_s4 = scalar_lea.vmem %s1361_s5, 128  ;;  %p1816_p1 = scmp.lt.s32.totalorder %s1361_s5, %s1361_s5 }
  0x6f   :  { %1657 = vmatprep.subr.bf16.mxu1 %v1835_v51  ;;  %p1812_p0 = scmp.ne.s32.totalorder %s1361_s5, %s1811_s4  ;;  %p1817_p2 = scmp.lt.s32.totalorder %s1811_s4, %s1811_s4 }
  0x71   :  { %1676 = vmatpush3.bf16.msra.mxu0 %v1808_v63  ;;  %p1818_p3 = por %p1817_p2, %p1816_p1 }
  0x72   :  { %1658 = vmatpush3.bf16.msra.mxu1 %v1801_v56  ;;  %1677 = vmatprep.subr.bf16.mxu0 %v1835_v51 }
  0x73   :  { %1659 = vmatprep.subr.bf16.mxu1 %v1835_v51  ;;  %p1819_p4 = pnand %p1818_p3, %p1812_p0 }
  0x75   :  { %1678 = vmatpush3.bf16.msra.mxu0 %v1809_v44 }
  0x76   :  { %1660 = vmatpush3.bf16.msra.mxu1 %v1802_v57  ;;  %1679 = vmatprep.subr.bf16.mxu0 %v1835_v51 }
  0x77   :  { %1661 = vmatprep.subr.bf16.mxu1 %v1835_v51 }
  0x79   :  { %1680 = vmatpush3.bf16.msra.mxu0 %v1810_v45 }
  0x7a   :  { %1662 = vmatpush3.bf16.msra.mxu1 %v1803_v58 }
  0x7b   :  { %1663 = vmatprep.subr.bf16.mxu1 %v1835_v51 }
  0x7e   :  { %1664 = vmatpush3.bf16.msra.mxu1 %v1804_v59 }
  0x7f   :  { %1665 = vmatprep.subr.bf16.mxu1 %v1835_v51 }
  0x82   :  { %1666 = vmatpush3.bf16.msra.mxu1 %v1805_v60 }
  0x83   :  { %1667 = vmatprep.subr.bf16.mxu1 %v1835_v51  ;;  %v1490_v51 = vld [vmem:[%s2273_s6] ss:$0 sm:$0xff] }
  0x86   :  { %1668 = vmatpush3.bf16.msra.mxu1 %v1806_v61 }
  0xf5   :  { %v1512_v0 = vpop.f32.mrb[0].mxu0 }
  0xf6   :  { %v1513_v2 = vpop.f32.mrb[1].mxu0 }
  0xf7   :  { %v1514_v3 = vadd.f32 %v1513_v2, %v1512_v0  ;;  %v1515_v4 = vpop.f32.mrb[2].mxu0  ;;  %v1534_v5 = vpop.f32.mrb[0].mxu1 }
  0xf8   :  { %v1516_v6 = vpop.f32.mrb[3].mxu0  ;;  %v1535_v7 = vpop.f32.mrb[1].mxu1 }
  0xf9   :  { %v910_v8 = vadd.f32 %v1514_v3, %v1368_v1  ;;  %v1536_v9 = vadd.f32 %v1535_v7, %v1534_v5  ;;  %v1537_v10 = vpop.f32.mrb[2].mxu1 }
  0xfa   :  { %v1538_v11 = vpop.f32.mrb[3].mxu1 }
  0xfb   :  { %v950_v12 = vadd.f32 %v1536_v9, %v910_v8 }
 0x115   :  { %v1556_v13 = vpop.f32.mrb[4].mxu0 }
 0x116   :  { %v1557_v14 = vpop.f32.mrb[5].mxu0 }
 0x117   :  { %v1558_v15 = vadd.f32 %v1557_v14, %v1556_v13  ;;  %v1559_v16 = vpop.f32.mrb[6].mxu0  ;;  %v1578_v17 = vpop.f32.mrb[4].mxu1 }
 0x118   :  { %v1560_v18 = vpop.f32.mrb[7].mxu0  ;;  %v1579_v19 = vpop.f32.mrb[5].mxu1 }
 0x119   :  { %v990_v20 = vadd.f32 %v1558_v15, %v950_v12  ;;  %v1580_v21 = vadd.f32 %v1579_v19, %v1578_v17  ;;  %v1581_v22 = vpop.f32.mrb[6].mxu1 }
 0x11a   :  { %v1582_v23 = vpop.f32.mrb[7].mxu1 }
 0x11b   :  { %v1030_v24 = vadd.f32 %v1580_v21, %v990_v20 }
 0x135   :  { %v1600_v25 = vpop.f32.mrb[8].mxu0 }
 0x136   :  { %v1601_v26 = vpop.f32.mrb[9].mxu0 }
 0x137   :  { %v1622_v27 = vpop.f32.mrb[8].mxu1  ;;  %v1602_v28 = vadd.f32 %v1601_v26, %v1600_v25  ;;  %v1603_v29 = vpop.f32.mrb[10].mxu0 }
 0x138   :  { %v1623_v30 = vpop.f32.mrb[9].mxu1  ;;  %v1604_v32 = vpop.f32.mrb[11].mxu0 }
 0x139   :  { %v1624_v31 = vadd.f32 %v1623_v30, %v1622_v27  ;;  %v1625_v33 = vpop.f32.mrb[10].mxu1  ;;  %v1070_v34 = vadd.f32 %v1602_v28, %v1030_v24 }
 0x13a   :  { %v1626_v35 = vpop.f32.mrb[11].mxu1 }
 0x13b   :  { %v1110_v36 = vadd.f32 %v1624_v31, %v1070_v34 }
 0x13d   :  { %v1149_v37 = vpop.f32.mrb[12].mxu0 }
 0x13e   :  { %v1150_v38 = vadd.f32 %v1149_v37, %v1110_v36  ;;  %v1651_v39 = vpop.f32.mrb[13].mxu0 }
 0x13f   :  { %v1152_v40 = vpop.f32.mrb[14].mxu0 }
 0x140   :  { %v1155_v41 = vmax.f32 %v1150_v38, 0.0  ;;  %v1652_v42 = vpop.f32.mrb[15].mxu0 }
 0x142   :  { %v1156_v43 = vpack.c.bf16 %v1155_v41, %v1155_v41 }
 0x144   :  { %1670 = vmatmul.mubr.bf16.vlgmr.msra.gmra.mrb[12].mxu1 %v1156_v43 }
 0x217   :  { %v1262_v47 = vpop.f32.mrb[12].mxu1 }
 0x218   :  { %v1263_v48 = vadd.f32 %v1481_v46, %v1262_v47  ;;  %v1671_v49 = vpop.f32.mrb[13].mxu1 }
 0x219   :  { %v1265_v50 = vpop.f32.mrb[14].mxu1 }
 0x21a   :  { %v1268_v52 = vmax.f32 %v1263_v48, 0.0  ;;  %v1672_v53 = vpop.f32.mrb[15].mxu1 }
 0x21c   :  { %v1269_v54 = vpack.c.bf16 %v1268_v52, %v1268_v52 }
 0x21e   :  { %1682 = vmatmul.mubr.msk.bf16.vlgmr.msra.gmra.mrb[16].mxu0 %vm1309_vm2, %v1269_v54 }
 0x2f1   :  { %v1347_v55 = vpop.f32.mrb[16].mxu0 }
 0x2f2   :  { %v1348_v56 = vadd.f32 %v1490_v51, %v1347_v55  ;;  %v1683_v57 = vpop.f32.mrb[17].mxu0 }
 0x2f3   :  { %v1350_v58 = vpop.f32.mrb[18].mxu0 }
 0x2f4   :  { %1353 = vst [vmem:[#allocation2] sm:$0xff] %v1348_v56  ;;  %v1684_v59 = vpop.f32.mrb[19].mxu0 }
 0x2f5   :  { %1822 = shalt.err (!%p1819_p4)
}
 0x2f6   :  { %s1823_s6 = scalar_lea.hbm %s2274_s7, 128 }
 0x2f7   :  { %p1824_p5 = scmp.ne.s32.totalorder %s2274_s7, %s1823_s6  ;;  %p1827_p6 = scmp.lt.u32.totalorder %s1823_s6, %s2274_s7 }
 0x2f9   :  { %p1829_p7 = pnand %p1827_p6, %p1824_p5 }
 0x2fb   :  { %1832 = shalt.err (!%p1829_p7)
}
 0x2fc   :  { %1363 = dma.vmem_to_hbm [thread:$0]  %s1361_s5, 128, %s2274_s7, [#allocation3]  }
 0x2fd   :  { %1833 = dma.done.wait [#allocation3], 128  }
 0x2fe   :  { %1834 = vsyncadd [#allocation3], 4294967168 }
 0x2ff   :  { %1367 = vsyncpa [#allocation3], 1 }

</bundles_post_ra>
